<compile_context>
chip_gen: v7x
topology: tpu7x:2x2x1
jax: 0.10.0
libtpu: 0.0.40
codegen_flags: <defaults>
</compile_context>

<pallas_src>
import jax
import jax.numpy as jnp
from jax import lax
from jax.experimental import pallas as pl
from jax.experimental.pallas import tpu as pltpu

H = W = 7
HW = H * W               # 49
CIN = 128
COUT = 32
KH = KW = 3
KK = KH * KW             # 9

C_TOTAL = 896 + 32 * 12          # 1280 output channels of the concat
CONV_ROW0 = 896 + 32 * 10        # 1216: channel offset of x558 in the concat
N_PASS = 12                      # pass-through tensors
N_SEMS = N_PASS + 1              # + 1 for the conv writeback DMA


def fused_conv_cat_kernel(x_ref, w_ref,
                          x481_ref, x488_ref, x495_ref, x502_ref, x509_ref,
                          x516_ref, x523_ref, x530_ref, x537_ref, x544_ref,
                          x551_ref, x565_ref,
                          o_ref,
                          conv_vmem, sems):
    # x_ref: [CIN, HW] VMEM slab of x557 (NCHW flattened)
    # w_ref: [KK, COUT, CIN] VMEM tap-major conv weight
    # x*_ref: HBM (ANY) pass-through activations, [C_i, HW]
    # o_ref: HBM (ANY) output, [C_TOTAL, HW]

    # ---- 1) Fused concat: 12 HBM->HBM DMAs straight into the output rows.
    #         Issued first so they overlap with the conv compute below.
    pre_conv = (x481_ref, x488_ref, x495_ref, x502_ref, x509_ref, x516_ref,
                x523_ref, x530_ref, x537_ref, x544_ref, x551_ref)
    copies = []
    row = 0
    for i, src in enumerate(pre_conv):
        c = src.shape[0]
        cp = pltpu.make_async_copy(src, o_ref.at[row:row + c, :], sems.at[i])
        cp.start()
        copies.append(cp)
        row += c                                         # ends at CONV_ROW0
    cp = pltpu.make_async_copy(
        x565_ref, o_ref.at[CONV_ROW0 + COUT:C_TOTAL, :], sems.at[N_PASS - 1])
    cp.start()
    copies.append(cp)

    # ---- 2) 3x3 "same" conv on the raw [CIN, HW] slab: 9 MXU taps.
    x = x_ref[...]                                                  # [128, 49]

    # 2-D iotas over (source index j, output index s); no div/mod needed.
    jj = lax.broadcasted_iota(jnp.int32, (HW, HW), 0)
    ss = lax.broadcasted_iota(jnp.int32, (HW, HW), 1)
    # "output pixel is in column 0 / column W-1" masks built from 7 compares.
    w_is_first = (ss == 0)
    w_is_last = (ss == W - 1)
    for r in range(1, H):
        w_is_first = w_is_first | (ss == r * W)
        w_is_last = w_is_last | (ss == r * W + W - 1)

    acc = jnp.zeros((COUT, HW), jnp.float32)
    for kh in range(KH):
        for kw in range(KW):
            dh, dw = kh - 1, kw - 1
            if dh == 0 and dw == 0:
                shifted = x                               # center tap: no shift
            else:
                delta = dh * W + dw
                # S_t[j, s] = 1  iff  j == s + delta  and the move stays inside
                # the 7x7 image (zero padding handled by masked-out columns).
                cond = (jj == ss + delta)
                if dh < 0:
                    cond = cond & (ss >= W)
                if dh > 0:
                    cond = cond & (ss < (H - 1) * W)
                if dw < 0:
                    cond = cond & jnp.logical_not(w_is_first)
                if dw > 0:
                    cond = cond & jnp.logical_not(w_is_last)
                s_mat = jnp.where(cond, 1.0, 0.0).astype(jnp.float32)
                shifted = jnp.dot(x, s_mat,
                                  preferred_element_type=jnp.float32)
            acc = acc + jnp.dot(w_ref[kh * KW + kw], shifted,
                                preferred_element_type=jnp.float32)
    conv_vmem[...] = acc

    # ---- 3) DMA the conv slice into its concat rows and wait for everything.
    cp = pltpu.make_async_copy(conv_vmem,
                               o_ref.at[CONV_ROW0:CONV_ROW0 + COUT, :],
                               sems.at[N_SEMS - 1])
    cp.start()
    copies.append(cp)
    for cp in copies:
        cp.wait()


def forward(x557, x481, x488, x495, x502, x509, x516, x523, x530, x537, x544,
            x551, x565, conv_w):
    x_slab = x557.reshape(CIN, HW)                         # free reshape
    # tap-major weight: OIHW -> [KH*KW, COUT, CIN]  (tiny 147 KB transpose)
    w_taps = jnp.transpose(conv_w, (2, 3, 0, 1)).reshape(KK, COUT, CIN)

    passthrough = (x481, x488, x495, x502, x509, x516, x523, x530, x537, x544,
                   x551, x565)
    pass_flat = tuple(t.reshape(t.shape[1], HW) for t in passthrough)  # free

    flops = KK * (2 * CIN * HW * HW + 2 * COUT * CIN * HW)
    bytes_accessed = 4 * (CIN * HW + KK * COUT * CIN
                          + sum(p.shape[0] * HW for p in pass_flat)
                          + C_TOTAL * HW)

    out = pl.pallas_call(
        fused_conv_cat_kernel,
        out_shape=jax.ShapeDtypeStruct((C_TOTAL, HW), jnp.float32),
        grid=(1,),
        in_specs=[pl.BlockSpec((CIN, HW), lambda i: (0, 0)),
                  pl.BlockSpec((KK, COUT, CIN), lambda i: (0, 0, 0))]
                 + [pl.BlockSpec(memory_space=pl.ANY) for _ in pass_flat],
        out_specs=pl.BlockSpec(memory_space=pl.ANY),
        scratch_shapes=[pltpu.VMEM((COUT, HW), jnp.float32),
                        pltpu.SemaphoreType.DMA((N_SEMS,))],
        compiler_params=pltpu.CompilerParams(
            dimension_semantics=("arbitrary",)),
        cost_estimate=pl.CostEstimate(flops=flops, transcendentals=0,
                                      bytes_accessed=bytes_accessed),
    )(x_slab, w_taps, *pass_flat)

    return out.reshape(1, C_TOTAL, H, W)                   # free reshape back


if __name__ == "__main__":
    key = jax.random.PRNGKey(0)
    keys = jax.random.split(key, 14)

    # Deterministic parameter init (Conv2d(128, 32, 3, 3), no bias).
    conv_w = jax.random.normal(keys[0], (COUT, CIN, KH, KW), jnp.float32) * 0.05

    # Inputs, matching the module's shapes.
    x481 = jax.random.normal(keys[1], (1, 896, H, W), jnp.float32)
    x488 = jax.random.normal(keys[2], (1, 32, H, W), jnp.float32)
    x495 = jax.random.normal(keys[3], (1, 32, H, W), jnp.float32)
    x502 = jax.random.normal(keys[4], (1, 32, H, W), jnp.float32)
    x509 = jax.random.normal(keys[5], (1, 32, H, W), jnp.float32)
    x516 = jax.random.normal(keys[6], (1, 32, H, W), jnp.float32)
    x523 = jax.random.normal(keys[7], (1, 32, H, W), jnp.float32)
    x530 = jax.random.normal(keys[8], (1, 32, H, W), jnp.float32)
    x537 = jax.random.normal(keys[9], (1, 32, H, W), jnp.float32)
    x544 = jax.random.normal(keys[10], (1, 32, H, W), jnp.float32)
    x551 = jax.random.normal(keys[11], (1, 32, H, W), jnp.float32)
    x557 = jax.random.normal(keys[12], (1, CIN, H, W), jnp.float32)
    x565 = jax.random.normal(keys[13], (1, 32, H, W), jnp.float32)

    out = jax.jit(forward)(x557, x481, x488, x495, x502, x509, x516, x523,
                           x530, x537, x544, x551, x565, conv_w)
    out = jax.block_until_ready(out)

    assert out.shape == (1, C_TOTAL, H, W), out.shape

    # Cross-check the Pallas conv against lax.conv_general_dilated.
    ref_conv = jax.lax.conv_general_dilated(
        x557, conv_w, window_strides=(1, 1), padding=((1, 1), (1, 1)),
        dimension_numbers=("NCHW", "OIHW", "NCHW"))
    got_conv = out[:, CONV_ROW0:CONV_ROW0 + COUT]   # the x558 slice of the concat
    assert jnp.allclose(got_conv, ref_conv, atol=5e-4, rtol=5e-4)

    # Cross-check pass-through slices of the fused (DMA) concat — exact copies.
    assert jnp.allclose(out[:, :896], x481)
    assert jnp.allclose(out[:, 896:928], x488)
    assert jnp.allclose(out[:, 1184:1216], x551)
    assert jnp.allclose(out[:, 1248:1280], x565)

    print("KERNEL_OK")
</pallas_src>

<mosaic_0001>
module attributes {stable_mosaic.version = 11 : i64} {
  func.func @fused_conv_cat_kernel(%arg0: i32, %arg1: memref<128x49xf32, #tpu.memory_space<vmem>>, %arg2: memref<9x32x128xf32, #tpu.memory_space<vmem>>, %arg3: memref<896x49xf32, #tpu.memory_space<any>>, %arg4: memref<32x49xf32, #tpu.memory_space<any>>, %arg5: memref<32x49xf32, #tpu.memory_space<any>>, %arg6: memref<32x49xf32, #tpu.memory_space<any>>, %arg7: memref<32x49xf32, #tpu.memory_space<any>>, %arg8: memref<32x49xf32, #tpu.memory_space<any>>, %arg9: memref<32x49xf32, #tpu.memory_space<any>>, %arg10: memref<32x49xf32, #tpu.memory_space<any>>, %arg11: memref<32x49xf32, #tpu.memory_space<any>>, %arg12: memref<32x49xf32, #tpu.memory_space<any>>, %arg13: memref<32x49xf32, #tpu.memory_space<any>>, %arg14: memref<32x49xf32, #tpu.memory_space<any>>, %arg15: memref<1280x49xf32, #tpu.memory_space<any>>, %arg16: memref<32x49xf32, #tpu.memory_space<vmem>>, %arg17: memref<13x!tpu.dma_semaphore, #tpu.memory_space<semaphore_mem>>) attributes {dimension_semantics = [#tpu.dimension_semantics<arbitrary>], iteration_bounds = array<i64: 1>, scalar_prefetch = 0 : i64, scratch_operands = 2 : i64, tpu.core_type = #tpu.core_type<tc>, window_params = [{pipeline_mode = #tpu.pipeline_mode<synchronous>, transform_indices = @transform_0, window_bounds = array<i64: 128, 49>}, {pipeline_mode = #tpu.pipeline_mode<synchronous>, transform_indices = @transform_1, window_bounds = array<i64: 9, 32, 128>}, {}, {}, {}, {}, {}, {}, {}, {}, {}, {}, {}, {}, {}]} {
    %c0_i32 = arith.constant 0 : i32
    %c0_i32_0 = arith.constant 0 : i32
    %c0_i32_1 = arith.constant 0 : i32
    %0 = tpu.memref_slice %arg15[%c0_i32_0, %c0_i32_1] : memref<1280x49xf32, #tpu.memory_space<any>> -> memref<896x49xf32, #tpu.memory_space<any>>
    %1 = tpu.memref_slice %arg17[%c0_i32] : memref<13x!tpu.dma_semaphore, #tpu.memory_space<semaphore_mem>> -> memref<1x!tpu.dma_semaphore, #tpu.memory_space<semaphore_mem>>
    %2 = tpu.memref_squeeze %1 : memref<1x!tpu.dma_semaphore, #tpu.memory_space<semaphore_mem>> -> memref<!tpu.dma_semaphore, #tpu.memory_space<semaphore_mem>>
    tpu.enqueue_dma source(%arg3 : memref<896x49xf32, #tpu.memory_space<any>>) target(%0 : memref<896x49xf32, #tpu.memory_space<any>>) target_semaphore(%2 : memref<!tpu.dma_semaphore, #tpu.memory_space<semaphore_mem>>)
    %c1_i32 = arith.constant 1 : i32
    %c896_i32 = arith.constant 896 : i32
    %c0_i32_2 = arith.constant 0 : i32
    %3 = tpu.memref_slice %arg15[%c896_i32, %c0_i32_2] : memref<1280x49xf32, #tpu.memory_space<any>> -> memref<32x49xf32, #tpu.memory_space<any>>
    %4 = tpu.memref_slice %arg17[%c1_i32] : memref<13x!tpu.dma_semaphore, #tpu.memory_space<semaphore_mem>> -> memref<1x!tpu.dma_semaphore, #tpu.memory_space<semaphore_mem>>
    %5 = tpu.memref_squeeze %4 : memref<1x!tpu.dma_semaphore, #tpu.memory_space<semaphore_mem>> -> memref<!tpu.dma_semaphore, #tpu.memory_space<semaphore_mem>>
    tpu.enqueue_dma source(%arg4 : memref<32x49xf32, #tpu.memory_space<any>>) target(%3 : memref<32x49xf32, #tpu.memory_space<any>>) target_semaphore(%5 : memref<!tpu.dma_semaphore, #tpu.memory_space<semaphore_mem>>)
    %c2_i32 = arith.constant 2 : i32
    %c928_i32 = arith.constant 928 : i32
    %c0_i32_3 = arith.constant 0 : i32
    %6 = tpu.memref_slice %arg15[%c928_i32, %c0_i32_3] : memref<1280x49xf32, #tpu.memory_space<any>> -> memref<32x49xf32, #tpu.memory_space<any>>
    %7 = tpu.memref_slice %arg17[%c2_i32] : memref<13x!tpu.dma_semaphore, #tpu.memory_space<semaphore_mem>> -> memref<1x!tpu.dma_semaphore, #tpu.memory_space<semaphore_mem>>
    %8 = tpu.memref_squeeze %7 : memref<1x!tpu.dma_semaphore, #tpu.memory_space<semaphore_mem>> -> memref<!tpu.dma_semaphore, #tpu.memory_space<semaphore_mem>>
    tpu.enqueue_dma source(%arg5 : memref<32x49xf32, #tpu.memory_space<any>>) target(%6 : memref<32x49xf32, #tpu.memory_space<any>>) target_semaphore(%8 : memref<!tpu.dma_semaphore, #tpu.memory_space<semaphore_mem>>)
    %c3_i32 = arith.constant 3 : i32
    %c960_i32 = arith.constant 960 : i32
    %c0_i32_4 = arith.constant 0 : i32
    %9 = tpu.memref_slice %arg15[%c960_i32, %c0_i32_4] : memref<1280x49xf32, #tpu.memory_space<any>> -> memref<32x49xf32, #tpu.memory_space<any>>
    %10 = tpu.memref_slice %arg17[%c3_i32] : memref<13x!tpu.dma_semaphore, #tpu.memory_space<semaphore_mem>> -> memref<1x!tpu.dma_semaphore, #tpu.memory_space<semaphore_mem>>
    %11 = tpu.memref_squeeze %10 : memref<1x!tpu.dma_semaphore, #tpu.memory_space<semaphore_mem>> -> memref<!tpu.dma_semaphore, #tpu.memory_space<semaphore_mem>>
    tpu.enqueue_dma source(%arg6 : memref<32x49xf32, #tpu.memory_space<any>>) target(%9 : memref<32x49xf32, #tpu.memory_space<any>>) target_semaphore(%11 : memref<!tpu.dma_semaphore, #tpu.memory_space<semaphore_mem>>)
    %c4_i32 = arith.constant 4 : i32
    %c992_i32 = arith.constant 992 : i32
    %c0_i32_5 = arith.constant 0 : i32
    %12 = tpu.memref_slice %arg15[%c992_i32, %c0_i32_5] : memref<1280x49xf32, #tpu.memory_space<any>> -> memref<32x49xf32, #tpu.memory_space<any>>
    %13 = tpu.memref_slice %arg17[%c4_i32] : memref<13x!tpu.dma_semaphore, #tpu.memory_space<semaphore_mem>> -> memref<1x!tpu.dma_semaphore, #tpu.memory_space<semaphore_mem>>
    %14 = tpu.memref_squeeze %13 : memref<1x!tpu.dma_semaphore, #tpu.memory_space<semaphore_mem>> -> memref<!tpu.dma_semaphore, #tpu.memory_space<semaphore_mem>>
    tpu.enqueue_dma source(%arg7 : memref<32x49xf32, #tpu.memory_space<any>>) target(%12 : memref<32x49xf32, #tpu.memory_space<any>>) target_semaphore(%14 : memref<!tpu.dma_semaphore, #tpu.memory_space<semaphore_mem>>)
    %c5_i32 = arith.constant 5 : i32
    %c1024_i32 = arith.constant 1024 : i32
    %c0_i32_6 = arith.constant 0 : i32
    %15 = tpu.memref_slice %arg15[%c1024_i32, %c0_i32_6] : memref<1280x49xf32, #tpu.memory_space<any>> -> memref<32x49xf32, #tpu.memory_space<any>>
    %16 = tpu.memref_slice %arg17[%c5_i32] : memref<13x!tpu.dma_semaphore, #tpu.memory_space<semaphore_mem>> -> memref<1x!tpu.dma_semaphore, #tpu.memory_space<semaphore_mem>>
    %17 = tpu.memref_squeeze %16 : memref<1x!tpu.dma_semaphore, #tpu.memory_space<semaphore_mem>> -> memref<!tpu.dma_semaphore, #tpu.memory_space<semaphore_mem>>
    tpu.enqueue_dma source(%arg8 : memref<32x49xf32, #tpu.memory_space<any>>) target(%15 : memref<32x49xf32, #tpu.memory_space<any>>) target_semaphore(%17 : memref<!tpu.dma_semaphore, #tpu.memory_space<semaphore_mem>>)
    %c6_i32 = arith.constant 6 : i32
    %c1056_i32 = arith.constant 1056 : i32
    %c0_i32_7 = arith.constant 0 : i32
    %18 = tpu.memref_slice %arg15[%c1056_i32, %c0_i32_7] : memref<1280x49xf32, #tpu.memory_space<any>> -> memref<32x49xf32, #tpu.memory_space<any>>
    %19 = tpu.memref_slice %arg17[%c6_i32] : memref<13x!tpu.dma_semaphore, #tpu.memory_space<semaphore_mem>> -> memref<1x!tpu.dma_semaphore, #tpu.memory_space<semaphore_mem>>
    %20 = tpu.memref_squeeze %19 : memref<1x!tpu.dma_semaphore, #tpu.memory_space<semaphore_mem>> -> memref<!tpu.dma_semaphore, #tpu.memory_space<semaphore_mem>>
    tpu.enqueue_dma source(%arg9 : memref<32x49xf32, #tpu.memory_space<any>>) target(%18 : memref<32x49xf32, #tpu.memory_space<any>>) target_semaphore(%20 : memref<!tpu.dma_semaphore, #tpu.memory_space<semaphore_mem>>)
    %c7_i32 = arith.constant 7 : i32
    %c1088_i32 = arith.constant 1088 : i32
    %c0_i32_8 = arith.constant 0 : i32
    %21 = tpu.memref_slice %arg15[%c1088_i32, %c0_i32_8] : memref<1280x49xf32, #tpu.memory_space<any>> -> memref<32x49xf32, #tpu.memory_space<any>>
    %22 = tpu.memref_slice %arg17[%c7_i32] : memref<13x!tpu.dma_semaphore, #tpu.memory_space<semaphore_mem>> -> memref<1x!tpu.dma_semaphore, #tpu.memory_space<semaphore_mem>>
    %23 = tpu.memref_squeeze %22 : memref<1x!tpu.dma_semaphore, #tpu.memory_space<semaphore_mem>> -> memref<!tpu.dma_semaphore, #tpu.memory_space<semaphore_mem>>
    tpu.enqueue_dma source(%arg10 : memref<32x49xf32, #tpu.memory_space<any>>) target(%21 : memref<32x49xf32, #tpu.memory_space<any>>) target_semaphore(%23 : memref<!tpu.dma_semaphore, #tpu.memory_space<semaphore_mem>>)
    %c8_i32 = arith.constant 8 : i32
    %c1120_i32 = arith.constant 1120 : i32
    %c0_i32_9 = arith.constant 0 : i32
    %24 = tpu.memref_slice %arg15[%c1120_i32, %c0_i32_9] : memref<1280x49xf32, #tpu.memory_space<any>> -> memref<32x49xf32, #tpu.memory_space<any>>
    %25 = tpu.memref_slice %arg17[%c8_i32] : memref<13x!tpu.dma_semaphore, #tpu.memory_space<semaphore_mem>> -> memref<1x!tpu.dma_semaphore, #tpu.memory_space<semaphore_mem>>
    %26 = tpu.memref_squeeze %25 : memref<1x!tpu.dma_semaphore, #tpu.memory_space<semaphore_mem>> -> memref<!tpu.dma_semaphore, #tpu.memory_space<semaphore_mem>>
    tpu.enqueue_dma source(%arg11 : memref<32x49xf32, #tpu.memory_space<any>>) target(%24 : memref<32x49xf32, #tpu.memory_space<any>>) target_semaphore(%26 : memref<!tpu.dma_semaphore, #tpu.memory_space<semaphore_mem>>)
    %c9_i32 = arith.constant 9 : i32
    %c1152_i32 = arith.constant 1152 : i32
    %c0_i32_10 = arith.constant 0 : i32
    %27 = tpu.memref_slice %arg15[%c1152_i32, %c0_i32_10] : memref<1280x49xf32, #tpu.memory_space<any>> -> memref<32x49xf32, #tpu.memory_space<any>>
    %28 = tpu.memref_slice %arg17[%c9_i32] : memref<13x!tpu.dma_semaphore, #tpu.memory_space<semaphore_mem>> -> memref<1x!tpu.dma_semaphore, #tpu.memory_space<semaphore_mem>>
    %29 = tpu.memref_squeeze %28 : memref<1x!tpu.dma_semaphore, #tpu.memory_space<semaphore_mem>> -> memref<!tpu.dma_semaphore, #tpu.memory_space<semaphore_mem>>
    tpu.enqueue_dma source(%arg12 : memref<32x49xf32, #tpu.memory_space<any>>) target(%27 : memref<32x49xf32, #tpu.memory_space<any>>) target_semaphore(%29 : memref<!tpu.dma_semaphore, #tpu.memory_space<semaphore_mem>>)
    %c10_i32 = arith.constant 10 : i32
    %c1184_i32 = arith.constant 1184 : i32
    %c0_i32_11 = arith.constant 0 : i32
    %30 = tpu.memref_slice %arg15[%c1184_i32, %c0_i32_11] : memref<1280x49xf32, #tpu.memory_space<any>> -> memref<32x49xf32, #tpu.memory_space<any>>
    %31 = tpu.memref_slice %arg17[%c10_i32] : memref<13x!tpu.dma_semaphore, #tpu.memory_space<semaphore_mem>> -> memref<1x!tpu.dma_semaphore, #tpu.memory_space<semaphore_mem>>
    %32 = tpu.memref_squeeze %31 : memref<1x!tpu.dma_semaphore, #tpu.memory_space<semaphore_mem>> -> memref<!tpu.dma_semaphore, #tpu.memory_space<semaphore_mem>>
    tpu.enqueue_dma source(%arg13 : memref<32x49xf32, #tpu.memory_space<any>>) target(%30 : memref<32x49xf32, #tpu.memory_space<any>>) target_semaphore(%32 : memref<!tpu.dma_semaphore, #tpu.memory_space<semaphore_mem>>)
    %c11_i32 = arith.constant 11 : i32
    %c1248_i32 = arith.constant 1248 : i32
    %c0_i32_12 = arith.constant 0 : i32
    %33 = tpu.memref_slice %arg15[%c1248_i32, %c0_i32_12] : memref<1280x49xf32, #tpu.memory_space<any>> -> memref<32x49xf32, #tpu.memory_space<any>>
    %34 = tpu.memref_slice %arg17[%c11_i32] : memref<13x!tpu.dma_semaphore, #tpu.memory_space<semaphore_mem>> -> memref<1x!tpu.dma_semaphore, #tpu.memory_space<semaphore_mem>>
    %35 = tpu.memref_squeeze %34 : memref<1x!tpu.dma_semaphore, #tpu.memory_space<semaphore_mem>> -> memref<!tpu.dma_semaphore, #tpu.memory_space<semaphore_mem>>
    tpu.enqueue_dma source(%arg14 : memref<32x49xf32, #tpu.memory_space<any>>) target(%33 : memref<32x49xf32, #tpu.memory_space<any>>) target_semaphore(%35 : memref<!tpu.dma_semaphore, #tpu.memory_space<semaphore_mem>>)
    %c0 = arith.constant 0 : index
    %c0_13 = arith.constant 0 : index
    %36 = vector.load %arg1[%c0, %c0_13] : memref<128x49xf32, #tpu.memory_space<vmem>>, vector<128x49xf32>
    %37 = tpu.iota {dimensions = array<i32: 0>} : vector<49x49xi32>
    %38 = tpu.iota {dimensions = array<i32: 1>} : vector<49x49xi32>
    %c0_i32_14 = arith.constant 0 : i32
    %39 = vector.broadcast %c0_i32_14 : i32 to vector<49x49xi32>
    %40 = arith.cmpi eq, %38, %39 : vector<49x49xi32>
    %c6_i32_15 = arith.constant 6 : i32
    %41 = vector.broadcast %c6_i32_15 : i32 to vector<49x49xi32>
    %42 = arith.cmpi eq, %38, %41 : vector<49x49xi32>
    %c7_i32_16 = arith.constant 7 : i32
    %43 = vector.broadcast %c7_i32_16 : i32 to vector<49x49xi32>
    %44 = arith.cmpi eq, %38, %43 : vector<49x49xi32>
    %45 = arith.ori %40, %44 : vector<49x49xi1>
    %c13_i32 = arith.constant 13 : i32
    %46 = vector.broadcast %c13_i32 : i32 to vector<49x49xi32>
    %47 = arith.cmpi eq, %38, %46 : vector<49x49xi32>
    %48 = arith.ori %42, %47 : vector<49x49xi1>
    %c14_i32 = arith.constant 14 : i32
    %49 = vector.broadcast %c14_i32 : i32 to vector<49x49xi32>
    %50 = arith.cmpi eq, %38, %49 : vector<49x49xi32>
    %51 = arith.ori %45, %50 : vector<49x49xi1>
    %c20_i32 = arith.constant 20 : i32
    %52 = vector.broadcast %c20_i32 : i32 to vector<49x49xi32>
    %53 = arith.cmpi eq, %38, %52 : vector<49x49xi32>
    %54 = arith.ori %48, %53 : vector<49x49xi1>
    %c21_i32 = arith.constant 21 : i32
    %55 = vector.broadcast %c21_i32 : i32 to vector<49x49xi32>
    %56 = arith.cmpi eq, %38, %55 : vector<49x49xi32>
    %57 = arith.ori %51, %56 : vector<49x49xi1>
    %c27_i32 = arith.constant 27 : i32
    %58 = vector.broadcast %c27_i32 : i32 to vector<49x49xi32>
    %59 = arith.cmpi eq, %38, %58 : vector<49x49xi32>
    %60 = arith.ori %54, %59 : vector<49x49xi1>
    %c28_i32 = arith.constant 28 : i32
    %61 = vector.broadcast %c28_i32 : i32 to vector<49x49xi32>
    %62 = arith.cmpi eq, %38, %61 : vector<49x49xi32>
    %63 = arith.ori %57, %62 : vector<49x49xi1>
    %c34_i32 = arith.constant 34 : i32
    %64 = vector.broadcast %c34_i32 : i32 to vector<49x49xi32>
    %65 = arith.cmpi eq, %38, %64 : vector<49x49xi32>
    %66 = arith.ori %60, %65 : vector<49x49xi1>
    %c35_i32 = arith.constant 35 : i32
    %67 = vector.broadcast %c35_i32 : i32 to vector<49x49xi32>
    %68 = arith.cmpi eq, %38, %67 : vector<49x49xi32>
    %69 = arith.ori %63, %68 : vector<49x49xi1>
    %c41_i32 = arith.constant 41 : i32
    %70 = vector.broadcast %c41_i32 : i32 to vector<49x49xi32>
    %71 = arith.cmpi eq, %38, %70 : vector<49x49xi32>
    %72 = arith.ori %66, %71 : vector<49x49xi1>
    %c42_i32 = arith.constant 42 : i32
    %73 = vector.broadcast %c42_i32 : i32 to vector<49x49xi32>
    %74 = arith.cmpi eq, %38, %73 : vector<49x49xi32>
    %75 = arith.ori %69, %74 : vector<49x49xi1>
    %c48_i32 = arith.constant 48 : i32
    %76 = vector.broadcast %c48_i32 : i32 to vector<49x49xi32>
    %77 = arith.cmpi eq, %38, %76 : vector<49x49xi32>
    %78 = arith.ori %72, %77 : vector<49x49xi1>
    %cst = arith.constant 0.000000e+00 : f32
    %79 = vector.broadcast %cst : f32 to vector<32x49xf32>
    %c-8_i32 = arith.constant -8 : i32
    %80 = vector.broadcast %c-8_i32 : i32 to vector<49x49xi32>
    %81 = arith.addi %38, %80 : vector<49x49xi32>
    %82 = arith.cmpi eq, %37, %81 : vector<49x49xi32>
    %c7_i32_17 = arith.constant 7 : i32
    %83 = vector.broadcast %c7_i32_17 : i32 to vector<49x49xi32>
    %84 = arith.cmpi sge, %38, %83 : vector<49x49xi32>
    %85 = arith.andi %82, %84 : vector<49x49xi1>
    %cst_18 = arith.constant dense<true> : vector<49x49xi1>
    %86 = arith.xori %75, %cst_18 : vector<49x49xi1>
    %87 = arith.andi %85, %86 : vector<49x49xi1>
    %cst_19 = arith.constant 1.000000e+00 : f32
    %cst_20 = arith.constant 0.000000e+00 : f32
    %88 = vector.broadcast %cst_19 : f32 to vector<49x49xf32>
    %89 = vector.broadcast %cst_20 : f32 to vector<49x49xf32>
    %90 = arith.select %87, %88, %89 : vector<49x49xi1>, vector<49x49xf32>
    %cst_21 = arith.constant dense<0.000000e+00> : vector<128x49xf32>
    %91 = tpu.matmul %36, %90, %cst_21 {dimension_numbers = #tpu.dot_dimension_numbers<[1], [0], [0], [1], [0, 0, 1, 1], [], []>} : vector<128x49xf32>, vector<49x49xf32>, vector<128x49xf32> -> vector<128x49xf32>
    %c0_22 = arith.constant 0 : index
    %c0_23 = arith.constant 0 : index
    %c0_24 = arith.constant 0 : index
    %92 = vector.load %arg2[%c0_22, %c0_23, %c0_24] : memref<9x32x128xf32, #tpu.memory_space<vmem>>, vector<1x32x128xf32>
    %93 = vector.shape_cast %92 : vector<1x32x128xf32> to vector<32x128xf32>
    %cst_25 = arith.constant dense<0.000000e+00> : vector<32x49xf32>
    %94 = tpu.matmul %93, %91, %cst_25 {dimension_numbers = #tpu.dot_dimension_numbers<[1], [0], [0], [1], [0, 0, 1, 1], [], []>} : vector<32x128xf32>, vector<128x49xf32>, vector<32x49xf32> -> vector<32x49xf32>
    %95 = arith.addf %79, %94 : vector<32x49xf32>
    %c-7_i32 = arith.constant -7 : i32
    %96 = vector.broadcast %c-7_i32 : i32 to vector<49x49xi32>
    %97 = arith.addi %38, %96 : vector<49x49xi32>
    %98 = arith.cmpi eq, %37, %97 : vector<49x49xi32>
    %c7_i32_26 = arith.constant 7 : i32
    %99 = vector.broadcast %c7_i32_26 : i32 to vector<49x49xi32>
    %100 = arith.cmpi sge, %38, %99 : vector<49x49xi32>
    %101 = arith.andi %98, %100 : vector<49x49xi1>
    %cst_27 = arith.constant 1.000000e+00 : f32
    %cst_28 = arith.constant 0.000000e+00 : f32
    %102 = vector.broadcast %cst_27 : f32 to vector<49x49xf32>
    %103 = vector.broadcast %cst_28 : f32 to vector<49x49xf32>
    %104 = arith.select %101, %102, %103 : vector<49x49xi1>, vector<49x49xf32>
    %cst_29 = arith.constant dense<0.000000e+00> : vector<128x49xf32>
    %105 = tpu.matmul %36, %104, %cst_29 {dimension_numbers = #tpu.dot_dimension_numbers<[1], [0], [0], [1], [0, 0, 1, 1], [], []>} : vector<128x49xf32>, vector<49x49xf32>, vector<128x49xf32> -> vector<128x49xf32>
    %c1 = arith.constant 1 : index
    %c0_30 = arith.constant 0 : index
    %c0_31 = arith.constant 0 : index
    %106 = vector.load %arg2[%c1, %c0_30, %c0_31] : memref<9x32x128xf32, #tpu.memory_space<vmem>>, vector<1x32x128xf32>
    %107 = vector.shape_cast %106 : vector<1x32x128xf32> to vector<32x128xf32>
    %cst_32 = arith.constant dense<0.000000e+00> : vector<32x49xf32>
    %108 = tpu.matmul %107, %105, %cst_32 {dimension_numbers = #tpu.dot_dimension_numbers<[1], [0], [0], [1], [0, 0, 1, 1], [], []>} : vector<32x128xf32>, vector<128x49xf32>, vector<32x49xf32> -> vector<32x49xf32>
    %109 = arith.addf %95, %108 : vector<32x49xf32>
    %c-6_i32 = arith.constant -6 : i32
    %110 = vector.broadcast %c-6_i32 : i32 to vector<49x49xi32>
    %111 = arith.addi %38, %110 : vector<49x49xi32>
    %112 = arith.cmpi eq, %37, %111 : vector<49x49xi32>
    %c7_i32_33 = arith.constant 7 : i32
    %113 = vector.broadcast %c7_i32_33 : i32 to vector<49x49xi32>
    %114 = arith.cmpi sge, %38, %113 : vector<49x49xi32>
    %115 = arith.andi %112, %114 : vector<49x49xi1>
    %cst_34 = arith.constant dense<true> : vector<49x49xi1>
    %116 = arith.xori %78, %cst_34 : vector<49x49xi1>
    %117 = arith.andi %115, %116 : vector<49x49xi1>
    %cst_35 = arith.constant 1.000000e+00 : f32
    %cst_36 = arith.constant 0.000000e+00 : f32
    %118 = vector.broadcast %cst_35 : f32 to vector<49x49xf32>
    %119 = vector.broadcast %cst_36 : f32 to vector<49x49xf32>
    %120 = arith.select %117, %118, %119 : vector<49x49xi1>, vector<49x49xf32>
    %cst_37 = arith.constant dense<0.000000e+00> : vector<128x49xf32>
    %121 = tpu.matmul %36, %120, %cst_37 {dimension_numbers = #tpu.dot_dimension_numbers<[1], [0], [0], [1], [0, 0, 1, 1], [], []>} : vector<128x49xf32>, vector<49x49xf32>, vector<128x49xf32> -> vector<128x49xf32>
    %c2 = arith.constant 2 : index
    %c0_38 = arith.constant 0 : index
    %c0_39 = arith.constant 0 : index
    %122 = vector.load %arg2[%c2, %c0_38, %c0_39] : memref<9x32x128xf32, #tpu.memory_space<vmem>>, vector<1x32x128xf32>
    %123 = vector.shape_cast %122 : vector<1x32x128xf32> to vector<32x128xf32>
    %cst_40 = arith.constant dense<0.000000e+00> : vector<32x49xf32>
    %124 = tpu.matmul %123, %121, %cst_40 {dimension_numbers = #tpu.dot_dimension_numbers<[1], [0], [0], [1], [0, 0, 1, 1], [], []>} : vector<32x128xf32>, vector<128x49xf32>, vector<32x49xf32> -> vector<32x49xf32>
    %125 = arith.addf %109, %124 : vector<32x49xf32>
    %c-1_i32 = arith.constant -1 : i32
    %126 = vector.broadcast %c-1_i32 : i32 to vector<49x49xi32>
    %127 = arith.addi %38, %126 : vector<49x49xi32>
    %128 = arith.cmpi eq, %37, %127 : vector<49x49xi32>
    %cst_41 = arith.constant dense<true> : vector<49x49xi1>
    %129 = arith.xori %75, %cst_41 : vector<49x49xi1>
    %130 = arith.andi %128, %129 : vector<49x49xi1>
    %cst_42 = arith.constant 1.000000e+00 : f32
    %cst_43 = arith.constant 0.000000e+00 : f32
    %131 = vector.broadcast %cst_42 : f32 to vector<49x49xf32>
    %132 = vector.broadcast %cst_43 : f32 to vector<49x49xf32>
    %133 = arith.select %130, %131, %132 : vector<49x49xi1>, vector<49x49xf32>
    %cst_44 = arith.constant dense<0.000000e+00> : vector<128x49xf32>
    %134 = tpu.matmul %36, %133, %cst_44 {dimension_numbers = #tpu.dot_dimension_numbers<[1], [0], [0], [1], [0, 0, 1, 1], [], []>} : vector<128x49xf32>, vector<49x49xf32>, vector<128x49xf32> -> vector<128x49xf32>
    %c3 = arith.constant 3 : index
    %c0_45 = arith.constant 0 : index
    %c0_46 = arith.constant 0 : index
    %135 = vector.load %arg2[%c3, %c0_45, %c0_46] : memref<9x32x128xf32, #tpu.memory_space<vmem>>, vector<1x32x128xf32>
    %136 = vector.shape_cast %135 : vector<1x32x128xf32> to vector<32x128xf32>
    %cst_47 = arith.constant dense<0.000000e+00> : vector<32x49xf32>
    %137 = tpu.matmul %136, %134, %cst_47 {dimension_numbers = #tpu.dot_dimension_numbers<[1], [0], [0], [1], [0, 0, 1, 1], [], []>} : vector<32x128xf32>, vector<128x49xf32>, vector<32x49xf32> -> vector<32x49xf32>
    %138 = arith.addf %125, %137 : vector<32x49xf32>
    %c4 = arith.constant 4 : index
    %c0_48 = arith.constant 0 : index
    %c0_49 = arith.constant 0 : index
    %139 = vector.load %arg2[%c4, %c0_48, %c0_49] : memref<9x32x128xf32, #tpu.memory_space<vmem>>, vector<1x32x128xf32>
    %140 = vector.shape_cast %139 : vector<1x32x128xf32> to vector<32x128xf32>
    %cst_50 = arith.constant dense<0.000000e+00> : vector<32x49xf32>
    %141 = tpu.matmul %140, %36, %cst_50 {dimension_numbers = #tpu.dot_dimension_numbers<[1], [0], [0], [1], [0, 0, 1, 1], [], []>} : vector<32x128xf32>, vector<128x49xf32>, vector<32x49xf32> -> vector<32x49xf32>
    %142 = arith.addf %138, %141 : vector<32x49xf32>
    %c1_i32_51 = arith.constant 1 : i32
    %143 = vector.broadcast %c1_i32_51 : i32 to vector<49x49xi32>
    %144 = arith.addi %38, %143 : vector<49x49xi32>
    %145 = arith.cmpi eq, %37, %144 : vector<49x49xi32>
    %cst_52 = arith.constant dense<true> : vector<49x49xi1>
    %146 = arith.xori %78, %cst_52 : vector<49x49xi1>
    %147 = arith.andi %145, %146 : vector<49x49xi1>
    %cst_53 = arith.constant 1.000000e+00 : f32
    %cst_54 = arith.constant 0.000000e+00 : f32
    %148 = vector.broadcast %cst_53 : f32 to vector<49x49xf32>
    %149 = vector.broadcast %cst_54 : f32 to vector<49x49xf32>
    %150 = arith.select %147, %148, %149 : vector<49x49xi1>, vector<49x49xf32>
    %cst_55 = arith.constant dense<0.000000e+00> : vector<128x49xf32>
    %151 = tpu.matmul %36, %150, %cst_55 {dimension_numbers = #tpu.dot_dimension_numbers<[1], [0], [0], [1], [0, 0, 1, 1], [], []>} : vector<128x49xf32>, vector<49x49xf32>, vector<128x49xf32> -> vector<128x49xf32>
    %c5 = arith.constant 5 : index
    %c0_56 = arith.constant 0 : index
    %c0_57 = arith.constant 0 : index
    %152 = vector.load %arg2[%c5, %c0_56, %c0_57] : memref<9x32x128xf32, #tpu.memory_space<vmem>>, vector<1x32x128xf32>
    %153 = vector.shape_cast %152 : vector<1x32x128xf32> to vector<32x128xf32>
    %cst_58 = arith.constant dense<0.000000e+00> : vector<32x49xf32>
    %154 = tpu.matmul %153, %151, %cst_58 {dimension_numbers = #tpu.dot_dimension_numbers<[1], [0], [0], [1], [0, 0, 1, 1], [], []>} : vector<32x128xf32>, vector<128x49xf32>, vector<32x49xf32> -> vector<32x49xf32>
    %155 = arith.addf %142, %154 : vector<32x49xf32>
    %c6_i32_59 = arith.constant 6 : i32
    %156 = vector.broadcast %c6_i32_59 : i32 to vector<49x49xi32>
    %157 = arith.addi %38, %156 : vector<49x49xi32>
    %158 = arith.cmpi eq, %37, %157 : vector<49x49xi32>
    %c42_i32_60 = arith.constant 42 : i32
    %159 = vector.broadcast %c42_i32_60 : i32 to vector<49x49xi32>
    %160 = arith.cmpi slt, %38, %159 : vector<49x49xi32>
    %161 = arith.andi %158, %160 : vector<49x49xi1>
    %cst_61 = arith.constant dense<true> : vector<49x49xi1>
    %162 = arith.xori %75, %cst_61 : vector<49x49xi1>
    %163 = arith.andi %161, %162 : vector<49x49xi1>
    %cst_62 = arith.constant 1.000000e+00 : f32
    %cst_63 = arith.constant 0.000000e+00 : f32
    %164 = vector.broadcast %cst_62 : f32 to vector<49x49xf32>
    %165 = vector.broadcast %cst_63 : f32 to vector<49x49xf32>
    %166 = arith.select %163, %164, %165 : vector<49x49xi1>, vector<49x49xf32>
    %cst_64 = arith.constant dense<0.000000e+00> : vector<128x49xf32>
    %167 = tpu.matmul %36, %166, %cst_64 {dimension_numbers = #tpu.dot_dimension_numbers<[1], [0], [0], [1], [0, 0, 1, 1], [], []>} : vector<128x49xf32>, vector<49x49xf32>, vector<128x49xf32> -> vector<128x49xf32>
    %c6 = arith.constant 6 : index
    %c0_65 = arith.constant 0 : index
    %c0_66 = arith.constant 0 : index
    %168 = vector.load %arg2[%c6, %c0_65, %c0_66] : memref<9x32x128xf32, #tpu.memory_space<vmem>>, vector<1x32x128xf32>
    %169 = vector.shape_cast %168 : vector<1x32x128xf32> to vector<32x128xf32>
    %cst_67 = arith.constant dense<0.000000e+00> : vector<32x49xf32>
    %170 = tpu.matmul %169, %167, %cst_67 {dimension_numbers = #tpu.dot_dimension_numbers<[1], [0], [0], [1], [0, 0, 1, 1], [], []>} : vector<32x128xf32>, vector<128x49xf32>, vector<32x49xf32> -> vector<32x49xf32>
    %171 = arith.addf %155, %170 : vector<32x49xf32>
    %c7_i32_68 = arith.constant 7 : i32
    %172 = vector.broadcast %c7_i32_68 : i32 to vector<49x49xi32>
    %173 = arith.addi %38, %172 : vector<49x49xi32>
    %174 = arith.cmpi eq, %37, %173 : vector<49x49xi32>
    %c42_i32_69 = arith.constant 42 : i32
    %175 = vector.broadcast %c42_i32_69 : i32 to vector<49x49xi32>
    %176 = arith.cmpi slt, %38, %175 : vector<49x49xi32>
    %177 = arith.andi %174, %176 : vector<49x49xi1>
    %cst_70 = arith.constant 1.000000e+00 : f32
    %cst_71 = arith.constant 0.000000e+00 : f32
    %178 = vector.broadcast %cst_70 : f32 to vector<49x49xf32>
    %179 = vector.broadcast %cst_71 : f32 to vector<49x49xf32>
    %180 = arith.select %177, %178, %179 : vector<49x49xi1>, vector<49x49xf32>
    %cst_72 = arith.constant dense<0.000000e+00> : vector<128x49xf32>
    %181 = tpu.matmul %36, %180, %cst_72 {dimension_numbers = #tpu.dot_dimension_numbers<[1], [0], [0], [1], [0, 0, 1, 1], [], []>} : vector<128x49xf32>, vector<49x49xf32>, vector<128x49xf32> -> vector<128x49xf32>
    %c7 = arith.constant 7 : index
    %c0_73 = arith.constant 0 : index
    %c0_74 = arith.constant 0 : index
    %182 = vector.load %arg2[%c7, %c0_73, %c0_74] : memref<9x32x128xf32, #tpu.memory_space<vmem>>, vector<1x32x128xf32>
    %183 = vector.shape_cast %182 : vector<1x32x128xf32> to vector<32x128xf32>
    %cst_75 = arith.constant dense<0.000000e+00> : vector<32x49xf32>
    %184 = tpu.matmul %183, %181, %cst_75 {dimension_numbers = #tpu.dot_dimension_numbers<[1], [0], [0], [1], [0, 0, 1, 1], [], []>} : vector<32x128xf32>, vector<128x49xf32>, vector<32x49xf32> -> vector<32x49xf32>
    %185 = arith.addf %171, %184 : vector<32x49xf32>
    %c8_i32_76 = arith.constant 8 : i32
    %186 = vector.broadcast %c8_i32_76 : i32 to vector<49x49xi32>
    %187 = arith.addi %38, %186 : vector<49x49xi32>
    %188 = arith.cmpi eq, %37, %187 : vector<49x49xi32>
    %c42_i32_77 = arith.constant 42 : i32
    %189 = vector.broadcast %c42_i32_77 : i32 to vector<49x49xi32>
    %190 = arith.cmpi slt, %38, %189 : vector<49x49xi32>
    %191 = arith.andi %188, %190 : vector<49x49xi1>
    %cst_78 = arith.constant dense<true> : vector<49x49xi1>
    %192 = arith.xori %78, %cst_78 : vector<49x49xi1>
    %193 = arith.andi %191, %192 : vector<49x49xi1>
    %cst_79 = arith.constant 1.000000e+00 : f32
    %cst_80 = arith.constant 0.000000e+00 : f32
    %194 = vector.broadcast %cst_79 : f32 to vector<49x49xf32>
    %195 = vector.broadcast %cst_80 : f32 to vector<49x49xf32>
    %196 = arith.select %193, %194, %195 : vector<49x49xi1>, vector<49x49xf32>
    %cst_81 = arith.constant dense<0.000000e+00> : vector<128x49xf32>
    %197 = tpu.matmul %36, %196, %cst_81 {dimension_numbers = #tpu.dot_dimension_numbers<[1], [0], [0], [1], [0, 0, 1, 1], [], []>} : vector<128x49xf32>, vector<49x49xf32>, vector<128x49xf32> -> vector<128x49xf32>
    %c8 = arith.constant 8 : index
    %c0_82 = arith.constant 0 : index
    %c0_83 = arith.constant 0 : index
    %198 = vector.load %arg2[%c8, %c0_82, %c0_83] : memref<9x32x128xf32, #tpu.memory_space<vmem>>, vector<1x32x128xf32>
    %199 = vector.shape_cast %198 : vector<1x32x128xf32> to vector<32x128xf32>
    %cst_84 = arith.constant dense<0.000000e+00> : vector<32x49xf32>
    %200 = tpu.matmul %199, %197, %cst_84 {dimension_numbers = #tpu.dot_dimension_numbers<[1], [0], [0], [1], [0, 0, 1, 1], [], []>} : vector<32x128xf32>, vector<128x49xf32>, vector<32x49xf32> -> vector<32x49xf32>
    %201 = arith.addf %185, %200 : vector<32x49xf32>
    %c0_85 = arith.constant 0 : index
    %c0_86 = arith.constant 0 : index
    %202 = vector.load %arg16[%c0_85, %c0_86] : memref<32x49xf32, #tpu.memory_space<vmem>>, vector<32x49xf32>
    tpu.vector_store %arg16[%c0_85, %c0_86], %201 {strides = array<i32>} : memref<32x49xf32, #tpu.memory_space<vmem>>, vector<32x49xf32>,
    %c12_i32 = arith.constant 12 : i32
    %c1216_i32 = arith.constant 1216 : i32
    %c0_i32_87 = arith.constant 0 : i32
    %203 = tpu.memref_slice %arg15[%c1216_i32, %c0_i32_87] : memref<1280x49xf32, #tpu.memory_space<any>> -> memref<32x49xf32, #tpu.memory_space<any>>
    %204 = tpu.memref_slice %arg17[%c12_i32] : memref<13x!tpu.dma_semaphore, #tpu.memory_space<semaphore_mem>> -> memref<1x!tpu.dma_semaphore, #tpu.memory_space<semaphore_mem>>
    %205 = tpu.memref_squeeze %204 : memref<1x!tpu.dma_semaphore, #tpu.memory_space<semaphore_mem>> -> memref<!tpu.dma_semaphore, #tpu.memory_space<semaphore_mem>>
    tpu.enqueue_dma source(%arg16 : memref<32x49xf32, #tpu.memory_space<vmem>>) target(%203 : memref<32x49xf32, #tpu.memory_space<any>>) target_semaphore(%205 : memref<!tpu.dma_semaphore, #tpu.memory_space<semaphore_mem>>)
    %c0_i32_88 = arith.constant 0 : i32
    %c0_i32_89 = arith.constant 0 : i32
    %c0_i32_90 = arith.constant 0 : i32
    %206 = tpu.memref_slice %arg15[%c0_i32_89, %c0_i32_90] : memref<1280x49xf32, #tpu.memory_space<any>> -> memref<896x49xf32, #tpu.memory_space<any>>
    %207 = tpu.memref_slice %arg17[%c0_i32_88] : memref<13x!tpu.dma_semaphore, #tpu.memory_space<semaphore_mem>> -> memref<1x!tpu.dma_semaphore, #tpu.memory_space<semaphore_mem>>
    %208 = tpu.memref_squeeze %207 : memref<1x!tpu.dma_semaphore, #tpu.memory_space<semaphore_mem>> -> memref<!tpu.dma_semaphore, #tpu.memory_space<semaphore_mem>>
    tpu.wait_dma2 semaphore(%208 : memref<!tpu.dma_semaphore, #tpu.memory_space<semaphore_mem>>) src(%arg3 : memref<896x49xf32, #tpu.memory_space<any>>) dst(%206 : memref<896x49xf32, #tpu.memory_space<any>>)
    %c1_i32_91 = arith.constant 1 : i32
    %c896_i32_92 = arith.constant 896 : i32
    %c0_i32_93 = arith.constant 0 : i32
    %209 = tpu.memref_slice %arg15[%c896_i32_92, %c0_i32_93] : memref<1280x49xf32, #tpu.memory_space<any>> -> memref<32x49xf32, #tpu.memory_space<any>>
    %210 = tpu.memref_slice %arg17[%c1_i32_91] : memref<13x!tpu.dma_semaphore, #tpu.memory_space<semaphore_mem>> -> memref<1x!tpu.dma_semaphore, #tpu.memory_space<semaphore_mem>>
    %211 = tpu.memref_squeeze %210 : memref<1x!tpu.dma_semaphore, #tpu.memory_space<semaphore_mem>> -> memref<!tpu.dma_semaphore, #tpu.memory_space<semaphore_mem>>
    tpu.wait_dma2 semaphore(%211 : memref<!tpu.dma_semaphore, #tpu.memory_space<semaphore_mem>>) src(%arg4 : memref<32x49xf32, #tpu.memory_space<any>>) dst(%209 : memref<32x49xf32, #tpu.memory_space<any>>)
    %c2_i32_94 = arith.constant 2 : i32
    %c928_i32_95 = arith.constant 928 : i32
    %c0_i32_96 = arith.constant 0 : i32
    %212 = tpu.memref_slice %arg15[%c928_i32_95, %c0_i32_96] : memref<1280x49xf32, #tpu.memory_space<any>> -> memref<32x49xf32, #tpu.memory_space<any>>
    %213 = tpu.memref_slice %arg17[%c2_i32_94] : memref<13x!tpu.dma_semaphore, #tpu.memory_space<semaphore_mem>> -> memref<1x!tpu.dma_semaphore, #tpu.memory_space<semaphore_mem>>
    %214 = tpu.memref_squeeze %213 : memref<1x!tpu.dma_semaphore, #tpu.memory_space<semaphore_mem>> -> memref<!tpu.dma_semaphore, #tpu.memory_space<semaphore_mem>>
    tpu.wait_dma2 semaphore(%214 : memref<!tpu.dma_semaphore, #tpu.memory_space<semaphore_mem>>) src(%arg5 : memref<32x49xf32, #tpu.memory_space<any>>) dst(%212 : memref<32x49xf32, #tpu.memory_space<any>>)
    %c3_i32_97 = arith.constant 3 : i32
    %c960_i32_98 = arith.constant 960 : i32
    %c0_i32_99 = arith.constant 0 : i32
    %215 = tpu.memref_slice %arg15[%c960_i32_98, %c0_i32_99] : memref<1280x49xf32, #tpu.memory_space<any>> -> memref<32x49xf32, #tpu.memory_space<any>>
    %216 = tpu.memref_slice %arg17[%c3_i32_97] : memref<13x!tpu.dma_semaphore, #tpu.memory_space<semaphore_mem>> -> memref<1x!tpu.dma_semaphore, #tpu.memory_space<semaphore_mem>>
    %217 = tpu.memref_squeeze %216 : memref<1x!tpu.dma_semaphore, #tpu.memory_space<semaphore_mem>> -> memref<!tpu.dma_semaphore, #tpu.memory_space<semaphore_mem>>
    tpu.wait_dma2 semaphore(%217 : memref<!tpu.dma_semaphore, #tpu.memory_space<semaphore_mem>>) src(%arg6 : memref<32x49xf32, #tpu.memory_space<any>>) dst(%215 : memref<32x49xf32, #tpu.memory_space<any>>)
    %c4_i32_100 = arith.constant 4 : i32
    %c992_i32_101 = arith.constant 992 : i32
    %c0_i32_102 = arith.constant 0 : i32
    %218 = tpu.memref_slice %arg15[%c992_i32_101, %c0_i32_102] : memref<1280x49xf32, #tpu.memory_space<any>> -> memref<32x49xf32, #tpu.memory_space<any>>
    %219 = tpu.memref_slice %arg17[%c4_i32_100] : memref<13x!tpu.dma_semaphore, #tpu.memory_space<semaphore_mem>> -> memref<1x!tpu.dma_semaphore, #tpu.memory_space<semaphore_mem>>
    %220 = tpu.memref_squeeze %219 : memref<1x!tpu.dma_semaphore, #tpu.memory_space<semaphore_mem>> -> memref<!tpu.dma_semaphore, #tpu.memory_space<semaphore_mem>>
    tpu.wait_dma2 semaphore(%220 : memref<!tpu.dma_semaphore, #tpu.memory_space<semaphore_mem>>) src(%arg7 : memref<32x49xf32, #tpu.memory_space<any>>) dst(%218 : memref<32x49xf32, #tpu.memory_space<any>>)
    %c5_i32_103 = arith.constant 5 : i32
    %c1024_i32_104 = arith.constant 1024 : i32
    %c0_i32_105 = arith.constant 0 : i32
    %221 = tpu.memref_slice %arg15[%c1024_i32_104, %c0_i32_105] : memref<1280x49xf32, #tpu.memory_space<any>> -> memref<32x49xf32, #tpu.memory_space<any>>
    %222 = tpu.memref_slice %arg17[%c5_i32_103] : memref<13x!tpu.dma_semaphore, #tpu.memory_space<semaphore_mem>> -> memref<1x!tpu.dma_semaphore, #tpu.memory_space<semaphore_mem>>
    %223 = tpu.memref_squeeze %222 : memref<1x!tpu.dma_semaphore, #tpu.memory_space<semaphore_mem>> -> memref<!tpu.dma_semaphore, #tpu.memory_space<semaphore_mem>>
    tpu.wait_dma2 semaphore(%223 : memref<!tpu.dma_semaphore, #tpu.memory_space<semaphore_mem>>) src(%arg8 : memref<32x49xf32, #tpu.memory_space<any>>) dst(%221 : memref<32x49xf32, #tpu.memory_space<any>>)
    %c6_i32_106 = arith.constant 6 : i32
    %c1056_i32_107 = arith.constant 1056 : i32
    %c0_i32_108 = arith.constant 0 : i32
    %224 = tpu.memref_slice %arg15[%c1056_i32_107, %c0_i32_108] : memref<1280x49xf32, #tpu.memory_space<any>> -> memref<32x49xf32, #tpu.memory_space<any>>
    %225 = tpu.memref_slice %arg17[%c6_i32_106] : memref<13x!tpu.dma_semaphore, #tpu.memory_space<semaphore_mem>> -> memref<1x!tpu.dma_semaphore, #tpu.memory_space<semaphore_mem>>
    %226 = tpu.memref_squeeze %225 : memref<1x!tpu.dma_semaphore, #tpu.memory_space<semaphore_mem>> -> memref<!tpu.dma_semaphore, #tpu.memory_space<semaphore_mem>>
    tpu.wait_dma2 semaphore(%226 : memref<!tpu.dma_semaphore, #tpu.memory_space<semaphore_mem>>) src(%arg9 : memref<32x49xf32, #tpu.memory_space<any>>) dst(%224 : memref<32x49xf32, #tpu.memory_space<any>>)
    %c7_i32_109 = arith.constant 7 : i32
    %c1088_i32_110 = arith.constant 1088 : i32
    %c0_i32_111 = arith.constant 0 : i32
    %227 = tpu.memref_slice %arg15[%c1088_i32_110, %c0_i32_111] : memref<1280x49xf32, #tpu.memory_space<any>> -> memref<32x49xf32, #tpu.memory_space<any>>
    %228 = tpu.memref_slice %arg17[%c7_i32_109] : memref<13x!tpu.dma_semaphore, #tpu.memory_space<semaphore_mem>> -> memref<1x!tpu.dma_semaphore, #tpu.memory_space<semaphore_mem>>
    %229 = tpu.memref_squeeze %228 : memref<1x!tpu.dma_semaphore, #tpu.memory_space<semaphore_mem>> -> memref<!tpu.dma_semaphore, #tpu.memory_space<semaphore_mem>>
    tpu.wait_dma2 semaphore(%229 : memref<!tpu.dma_semaphore, #tpu.memory_space<semaphore_mem>>) src(%arg10 : memref<32x49xf32, #tpu.memory_space<any>>) dst(%227 : memref<32x49xf32, #tpu.memory_space<any>>)
    %c8_i32_112 = arith.constant 8 : i32
    %c1120_i32_113 = arith.constant 1120 : i32
    %c0_i32_114 = arith.constant 0 : i32
    %230 = tpu.memref_slice %arg15[%c1120_i32_113, %c0_i32_114] : memref<1280x49xf32, #tpu.memory_space<any>> -> memref<32x49xf32, #tpu.memory_space<any>>
    %231 = tpu.memref_slice %arg17[%c8_i32_112] : memref<13x!tpu.dma_semaphore, #tpu.memory_space<semaphore_mem>> -> memref<1x!tpu.dma_semaphore, #tpu.memory_space<semaphore_mem>>
    %232 = tpu.memref_squeeze %231 : memref<1x!tpu.dma_semaphore, #tpu.memory_space<semaphore_mem>> -> memref<!tpu.dma_semaphore, #tpu.memory_space<semaphore_mem>>
    tpu.wait_dma2 semaphore(%232 : memref<!tpu.dma_semaphore, #tpu.memory_space<semaphore_mem>>) src(%arg11 : memref<32x49xf32, #tpu.memory_space<any>>) dst(%230 : memref<32x49xf32, #tpu.memory_space<any>>)
    %c9_i32_115 = arith.constant 9 : i32
    %c1152_i32_116 = arith.constant 1152 : i32
    %c0_i32_117 = arith.constant 0 : i32
    %233 = tpu.memref_slice %arg15[%c1152_i32_116, %c0_i32_117] : memref<1280x49xf32, #tpu.memory_space<any>> -> memref<32x49xf32, #tpu.memory_space<any>>
    %234 = tpu.memref_slice %arg17[%c9_i32_115] : memref<13x!tpu.dma_semaphore, #tpu.memory_space<semaphore_mem>> -> memref<1x!tpu.dma_semaphore, #tpu.memory_space<semaphore_mem>>
    %235 = tpu.memref_squeeze %234 : memref<1x!tpu.dma_semaphore, #tpu.memory_space<semaphore_mem>> -> memref<!tpu.dma_semaphore, #tpu.memory_space<semaphore_mem>>
    tpu.wait_dma2 semaphore(%235 : memref<!tpu.dma_semaphore, #tpu.memory_space<semaphore_mem>>) src(%arg12 : memref<32x49xf32, #tpu.memory_space<any>>) dst(%233 : memref<32x49xf32, #tpu.memory_space<any>>)
    %c10_i32_118 = arith.constant 10 : i32
    %c1184_i32_119 = arith.constant 1184 : i32
    %c0_i32_120 = arith.constant 0 : i32
    %236 = tpu.memref_slice %arg15[%c1184_i32_119, %c0_i32_120] : memref<1280x49xf32, #tpu.memory_space<any>> -> memref<32x49xf32, #tpu.memory_space<any>>
    %237 = tpu.memref_slice %arg17[%c10_i32_118] : memref<13x!tpu.dma_semaphore, #tpu.memory_space<semaphore_mem>> -> memref<1x!tpu.dma_semaphore, #tpu.memory_space<semaphore_mem>>
    %238 = tpu.memref_squeeze %237 : memref<1x!tpu.dma_semaphore, #tpu.memory_space<semaphore_mem>> -> memref<!tpu.dma_semaphore, #tpu.memory_space<semaphore_mem>>
    tpu.wait_dma2 semaphore(%238 : memref<!tpu.dma_semaphore, #tpu.memory_space<semaphore_mem>>) src(%arg13 : memref<32x49xf32, #tpu.memory_space<any>>) dst(%236 : memref<32x49xf32, #tpu.memory_space<any>>)
    %c11_i32_121 = arith.constant 11 : i32
    %c1248_i32_122 = arith.constant 1248 : i32
    %c0_i32_123 = arith.constant 0 : i32
    %239 = tpu.memref_slice %arg15[%c1248_i32_122, %c0_i32_123] : memref<1280x49xf32, #tpu.memory_space<any>> -> memref<32x49xf32, #tpu.memory_space<any>>
    %240 = tpu.memref_slice %arg17[%c11_i32_121] : memref<13x!tpu.dma_semaphore, #tpu.memory_space<semaphore_mem>> -> memref<1x!tpu.dma_semaphore, #tpu.memory_space<semaphore_mem>>
    %241 = tpu.memref_squeeze %240 : memref<1x!tpu.dma_semaphore, #tpu.memory_space<semaphore_mem>> -> memref<!tpu.dma_semaphore, #tpu.memory_space<semaphore_mem>>
    tpu.wait_dma2 semaphore(%241 : memref<!tpu.dma_semaphore, #tpu.memory_space<semaphore_mem>>) src(%arg14 : memref<32x49xf32, #tpu.memory_space<any>>) dst(%239 : memref<32x49xf32, #tpu.memory_space<any>>)
    %c12_i32_124 = arith.constant 12 : i32
    %c1216_i32_125 = arith.constant 1216 : i32
    %c0_i32_126 = arith.constant 0 : i32
    %242 = tpu.memref_slice %arg15[%c1216_i32_125, %c0_i32_126] : memref<1280x49xf32, #tpu.memory_space<any>> -> memref<32x49xf32, #tpu.memory_space<any>>
    %243 = tpu.memref_slice %arg17[%c12_i32_124] : memref<13x!tpu.dma_semaphore, #tpu.memory_space<semaphore_mem>> -> memref<1x!tpu.dma_semaphore, #tpu.memory_space<semaphore_mem>>
    %244 = tpu.memref_squeeze %243 : memref<1x!tpu.dma_semaphore, #tpu.memory_space<semaphore_mem>> -> memref<!tpu.dma_semaphore, #tpu.memory_space<semaphore_mem>>
    tpu.wait_dma2 semaphore(%244 : memref<!tpu.dma_semaphore, #tpu.memory_space<semaphore_mem>>) src(%arg16 : memref<32x49xf32, #tpu.memory_space<vmem>>) dst(%242 : memref<32x49xf32, #tpu.memory_space<any>>)
    return
  }
  func.func @transform_0(%arg0: i32) -> (i32, i32) {
    %c0_i32 = arith.constant 0 : i32
    %c0_i32_0 = arith.constant 0 : i32
    %c0_i32_1 = arith.constant 0 : i32
    return %c0_i32, %c0_i32_0 : i32, i32
  }
  func.func @transform_1(%arg0: i32) -> (i32, i32, i32) {
    %c0_i32 = arith.constant 0 : i32
    %c0_i32_0 = arith.constant 0 : i32
    %c0_i32_1 = arith.constant 0 : i32
    %c0_i32_2 = arith.constant 0 : i32
    return %c0_i32, %c0_i32_0, %c0_i32_1 : i32, i32, i32
  }
}

</mosaic_0001>

<bundles_post_ra>
// kernel: forward.1
= control target key start
LH: loop header
LB: loop body
LE: loop exit
PB: predicated region body
PF: predicated region fallthrough
CT: control target
= control target key end

     0   :  { %s7236_s0 = inlined_call_operand.vmem [shape: f32[128,49], index: 0, kind: input, shape index: {}]   ;;  %s7237_s1 = inlined_call_operand.vmem [shape: f32[9,32,128], index: 1, kind: input, shape index: {}]   ;;  %s7238_s2 = inlined_call_operand.vmem [shape: f32[896,49], index: 2, kind: input, shape index: {}]   ;;  %s7239_s3 = inlined_call_operand.vmem [shape: f32[32,49], index: 3, kind: input, shape index: {}]   ;;  %s7240_s4 = inlined_call_operand.vmem [shape: f32[32,49], index: 4, kind: input, shape index: {}]   ;;  %s7241_s5 = inlined_call_operand.vmem [shape: f32[32,49], index: 5, kind: input, shape index: {}]   ;;  %s7242_s6 = inlined_call_operand.vmem [shape: f32[32,49], index: 6, kind: input, shape index: {}]   ;;  %s7243_s7 = inlined_call_operand.vmem [shape: f32[32,49], index: 7, kind: input, shape index: {}]   ;;  %s7244_s8 = inlined_call_operand.vmem [shape: f32[32,49], index: 8, kind: input, shape index: {}]   ;;  %s7245_s9 = inlined_call_operand.vmem [shape: f32[32,49], index: 9, kind: input, shape index: {}]   ;;  %s7246_s10 = inlined_call_operand.vmem [shape: f32[32,49], index: 10, kind: input, shape index: {}]   ;;  %s7247_s11 = inlined_call_operand.vmem [shape: f32[32,49], index: 11, kind: input, shape index: {}]   ;;  %s7248_s12 = inlined_call_operand.vmem [shape: f32[32,49], index: 12, kind: input, shape index: {}]   ;;  %s7249_s13 = inlined_call_operand.vmem [shape: f32[32,49], index: 13, kind: input, shape index: {}]   ;;  %s7250_s14 = inlined_call_operand.vmem [shape: f32[1280,49], index: 14, kind: output, shape index: {}]  }
   0x1   :  { %v55_v0 = vld [vmem:[%s7238_s2] sm:$0xff]  ;;  %v57_v1 = vld [vmem:[%s7238_s2 + $0x8] sm:$0xff]  ;;  %v59_v2 = vld [vmem:[%s7238_s2 + $0x10] sm:$0xff] }
   0x2   :  { %56 = vst [vmem:[%s7250_s14] sm:$0xff] %v55_v0  ;;  %58 = vst [vmem:[%s7250_s14 + $0x8] sm:$0xff] %v57_v1  ;;  %v61_v3 = vld [vmem:[%s7238_s2 + $0x18] sm:$0xff]  ;;  %v63_v4 = vld [vmem:[%s7238_s2 + $0x20] sm:$0xff] }
   0x3   :  { %60 = vst [vmem:[%s7250_s14 + $0x10] sm:$0xff] %v59_v2  ;;  %v65_v5 = vld [vmem:[%s7238_s2 + $0x28] sm:$0xff]  ;;  %62 = vst [vmem:[%s7250_s14 + $0x18] sm:$0xff] %v61_v3  ;;  %v67_v6 = vld [vmem:[%s7238_s2 + $0x30] sm:$0xff] }
   0x4   :  { %64 = vst [vmem:[%s7250_s14 + $0x20] sm:$0xff] %v63_v4  ;;  %66 = vst [vmem:[%s7250_s14 + $0x28] sm:$0xff] %v65_v5  ;;  %v69_v7 = vld [vmem:[%s7238_s2 + $0x38] sm:$0xff]  ;;  %v71_v8 = vld [vmem:[%s7238_s2 + $0x40] sm:$0xff] }
   0x5   :  { %68 = vst [vmem:[%s7250_s14 + $0x30] sm:$0xff] %v67_v6  ;;  %70 = vst [vmem:[%s7250_s14 + $0x38] sm:$0xff] %v69_v7  ;;  %v73_v9 = vld [vmem:[%s7238_s2 + $0x48] sm:$0xff]  ;;  %v75_v10 = vld [vmem:[%s7238_s2 + $0x50] sm:$0xff] }
   0x6   :  { %72 = vst [vmem:[%s7250_s14 + $0x40] sm:$0xff] %v71_v8  ;;  %v77_v11 = vld [vmem:[%s7238_s2 + $0x58] sm:$0xff]  ;;  %74 = vst [vmem:[%s7250_s14 + $0x48] sm:$0xff] %v73_v9  ;;  %v79_v12 = vld [vmem:[%s7238_s2 + $0x60] sm:$0xff] }
   0x7   :  { %76 = vst [vmem:[%s7250_s14 + $0x50] sm:$0xff] %v75_v10  ;;  %78 = vst [vmem:[%s7250_s14 + $0x58] sm:$0xff] %v77_v11  ;;  %v81_v13 = vld [vmem:[%s7238_s2 + $0x68] sm:$0xff]  ;;  %v83_v14 = vld [vmem:[%s7238_s2 + $0x70] sm:$0xff] }
   0x8   :  { %80 = vst [vmem:[%s7250_s14 + $0x60] sm:$0xff] %v79_v12  ;;  %82 = vst [vmem:[%s7250_s14 + $0x68] sm:$0xff] %v81_v13  ;;  %v85_v15 = vld [vmem:[%s7238_s2 + $0x78] sm:$0xff]  ;;  %v87_v16 = vld [vmem:[%s7238_s2 + $0x80] sm:$0xff] }
   0x9   :  { %84 = vst [vmem:[%s7250_s14 + $0x70] sm:$0xff] %v83_v14  ;;  %v89_v17 = vld [vmem:[%s7238_s2 + $0x88] sm:$0xff]  ;;  %86 = vst [vmem:[%s7250_s14 + $0x78] sm:$0xff] %v85_v15  ;;  %v91_v18 = vld [vmem:[%s7238_s2 + $0x90] sm:$0xff] }
   0xa   :  { %88 = vst [vmem:[%s7250_s14 + $0x80] sm:$0xff] %v87_v16  ;;  %90 = vst [vmem:[%s7250_s14 + $0x88] sm:$0xff] %v89_v17  ;;  %v93_v19 = vld [vmem:[%s7238_s2 + $0x98] sm:$0xff]  ;;  %v95_v20 = vld [vmem:[%s7238_s2 + $0xa0] sm:$0xff] }
   0xb   :  { %92 = vst [vmem:[%s7250_s14 + $0x90] sm:$0xff] %v91_v18  ;;  %94 = vst [vmem:[%s7250_s14 + $0x98] sm:$0xff] %v93_v19  ;;  %v97_v21 = vld [vmem:[%s7238_s2 + $0xa8] sm:$0xff]  ;;  %v99_v22 = vld [vmem:[%s7238_s2 + $0xb0] sm:$0xff] }
   0xc   :  { %96 = vst [vmem:[%s7250_s14 + $0xa0] sm:$0xff] %v95_v20  ;;  %v101_v23 = vld [vmem:[%s7238_s2 + $0xb8] sm:$0xff]  ;;  %98 = vst [vmem:[%s7250_s14 + $0xa8] sm:$0xff] %v97_v21  ;;  %v103_v24 = vld [vmem:[%s7238_s2 + $0xc0] sm:$0xff] }
   0xd   :  { %100 = vst [vmem:[%s7250_s14 + $0xb0] sm:$0xff] %v99_v22  ;;  %102 = vst [vmem:[%s7250_s14 + $0xb8] sm:$0xff] %v101_v23  ;;  %v105_v25 = vld [vmem:[%s7238_s2 + $0xc8] sm:$0xff]  ;;  %v107_v26 = vld [vmem:[%s7238_s2 + $0xd0] sm:$0xff] }
   0xe   :  { %104 = vst [vmem:[%s7250_s14 + $0xc0] sm:$0xff] %v103_v24  ;;  %106 = vst [vmem:[%s7250_s14 + $0xc8] sm:$0xff] %v105_v25  ;;  %v109_v27 = vld [vmem:[%s7238_s2 + $0xd8] sm:$0xff]  ;;  %v111_v28 = vld [vmem:[%s7238_s2 + $0xe0] sm:$0xff] }
   0xf   :  { %108 = vst [vmem:[%s7250_s14 + $0xd0] sm:$0xff] %v107_v26  ;;  %v113_v29 = vld [vmem:[%s7238_s2 + $0xe8] sm:$0xff]  ;;  %110 = vst [vmem:[%s7250_s14 + $0xd8] sm:$0xff] %v109_v27  ;;  %v115_v30 = vld [vmem:[%s7238_s2 + $0xf0] sm:$0xff] }
  0x10   :  { %112 = vst [vmem:[%s7250_s14 + $0xe0] sm:$0xff] %v111_v28  ;;  %114 = vst [vmem:[%s7250_s14 + $0xe8] sm:$0xff] %v113_v29  ;;  %v117_v31 = vld [vmem:[%s7238_s2 + $0xf8] sm:$0xff]  ;;  %v119_v32 = vld [vmem:[%s7238_s2 + $0x100] sm:$0xff] }
  0x11   :  { %116 = vst [vmem:[%s7250_s14 + $0xf0] sm:$0xff] %v115_v30  ;;  %118 = vst [vmem:[%s7250_s14 + $0xf8] sm:$0xff] %v117_v31  ;;  %v121_v33 = vld [vmem:[%s7238_s2 + $0x108] sm:$0xff]  ;;  %v123_v34 = vld [vmem:[%s7238_s2 + $0x110] sm:$0xff] }
  0x12   :  { %120 = vst [vmem:[%s7250_s14 + $0x100] sm:$0xff] %v119_v32  ;;  %v125_v35 = vld [vmem:[%s7238_s2 + $0x118] sm:$0xff]  ;;  %122 = vst [vmem:[%s7250_s14 + $0x108] sm:$0xff] %v121_v33  ;;  %v127_v36 = vld [vmem:[%s7238_s2 + $0x120] sm:$0xff] }
  0x13   :  { %124 = vst [vmem:[%s7250_s14 + $0x110] sm:$0xff] %v123_v34  ;;  %126 = vst [vmem:[%s7250_s14 + $0x118] sm:$0xff] %v125_v35  ;;  %v129_v37 = vld [vmem:[%s7238_s2 + $0x128] sm:$0xff]  ;;  %v131_v38 = vld [vmem:[%s7238_s2 + $0x130] sm:$0xff] }
  0x14   :  { %128 = vst [vmem:[%s7250_s14 + $0x120] sm:$0xff] %v127_v36  ;;  %130 = vst [vmem:[%s7250_s14 + $0x128] sm:$0xff] %v129_v37  ;;  %v133_v39 = vld [vmem:[%s7238_s2 + $0x138] sm:$0xff]  ;;  %v135_v40 = vld [vmem:[%s7238_s2 + $0x140] sm:$0xff] }
  0x15   :  { %132 = vst [vmem:[%s7250_s14 + $0x130] sm:$0xff] %v131_v38  ;;  %v137_v41 = vld [vmem:[%s7238_s2 + $0x148] sm:$0xff]  ;;  %134 = vst [vmem:[%s7250_s14 + $0x138] sm:$0xff] %v133_v39  ;;  %v139_v42 = vld [vmem:[%s7238_s2 + $0x150] sm:$0xff] }
  0x16   :  { %136 = vst [vmem:[%s7250_s14 + $0x140] sm:$0xff] %v135_v40  ;;  %138 = vst [vmem:[%s7250_s14 + $0x148] sm:$0xff] %v137_v41  ;;  %v141_v43 = vld [vmem:[%s7238_s2 + $0x158] sm:$0xff]  ;;  %v143_v44 = vld [vmem:[%s7238_s2 + $0x160] sm:$0xff] }
  0x17   :  { %140 = vst [vmem:[%s7250_s14 + $0x150] sm:$0xff] %v139_v42  ;;  %142 = vst [vmem:[%s7250_s14 + $0x158] sm:$0xff] %v141_v43  ;;  %v145_v45 = vld [vmem:[%s7238_s2 + $0x168] sm:$0xff]  ;;  %v147_v46 = vld [vmem:[%s7238_s2 + $0x170] sm:$0xff] }
  0x18   :  { %144 = vst [vmem:[%s7250_s14 + $0x160] sm:$0xff] %v143_v44  ;;  %v149_v47 = vld [vmem:[%s7238_s2 + $0x178] sm:$0xff]  ;;  %146 = vst [vmem:[%s7250_s14 + $0x168] sm:$0xff] %v145_v45  ;;  %v151_v48 = vld [vmem:[%s7238_s2 + $0x180] sm:$0xff] }
  0x19   :  { %148 = vst [vmem:[%s7250_s14 + $0x170] sm:$0xff] %v147_v46  ;;  %150 = vst [vmem:[%s7250_s14 + $0x178] sm:$0xff] %v149_v47  ;;  %v153_v49 = vld [vmem:[%s7238_s2 + $0x188] sm:$0xff]  ;;  %v155_v50 = vld [vmem:[%s7238_s2 + $0x190] sm:$0xff] }
  0x1a   :  { %152 = vst [vmem:[%s7250_s14 + $0x180] sm:$0xff] %v151_v48  ;;  %154 = vst [vmem:[%s7250_s14 + $0x188] sm:$0xff] %v153_v49  ;;  %v157_v51 = vld [vmem:[%s7238_s2 + $0x198] sm:$0xff]  ;;  %v159_v52 = vld [vmem:[%s7238_s2 + $0x1a0] sm:$0xff] }
  0x1b   :  { %156 = vst [vmem:[%s7250_s14 + $0x190] sm:$0xff] %v155_v50  ;;  %v161_v53 = vld [vmem:[%s7238_s2 + $0x1a8] sm:$0xff]  ;;  %158 = vst [vmem:[%s7250_s14 + $0x198] sm:$0xff] %v157_v51  ;;  %v163_v54 = vld [vmem:[%s7238_s2 + $0x1b0] sm:$0xff] }
  0x1c   :  { %160 = vst [vmem:[%s7250_s14 + $0x1a0] sm:$0xff] %v159_v52  ;;  %162 = vst [vmem:[%s7250_s14 + $0x1a8] sm:$0xff] %v161_v53  ;;  %v165_v55 = vld [vmem:[%s7238_s2 + $0x1b8] sm:$0xff]  ;;  %v167_v56 = vld [vmem:[%s7238_s2 + $0x1c0] sm:$0xff] }
  0x1d   :  { %164 = vst [vmem:[%s7250_s14 + $0x1b0] sm:$0xff] %v163_v54  ;;  %166 = vst [vmem:[%s7250_s14 + $0x1b8] sm:$0xff] %v165_v55  ;;  %v169_v57 = vld [vmem:[%s7238_s2 + $0x1c8] sm:$0xff]  ;;  %v171_v58 = vld [vmem:[%s7238_s2 + $0x1d0] sm:$0xff] }
  0x1e   :  { %168 = vst [vmem:[%s7250_s14 + $0x1c0] sm:$0xff] %v167_v56  ;;  %v173_v59 = vld [vmem:[%s7238_s2 + $0x1d8] sm:$0xff]  ;;  %170 = vst [vmem:[%s7250_s14 + $0x1c8] sm:$0xff] %v169_v57  ;;  %v175_v60 = vld [vmem:[%s7238_s2 + $0x1e0] sm:$0xff] }
  0x1f   :  { %172 = vst [vmem:[%s7250_s14 + $0x1d0] sm:$0xff] %v171_v58  ;;  %174 = vst [vmem:[%s7250_s14 + $0x1d8] sm:$0xff] %v173_v59  ;;  %v177_v61 = vld [vmem:[%s7238_s2 + $0x1e8] sm:$0xff]  ;;  %v179_v62 = vld [vmem:[%s7238_s2 + $0x1f0] sm:$0xff] }
  0x20   :  { %176 = vst [vmem:[%s7250_s14 + $0x1e0] sm:$0xff] %v175_v60  ;;  %178 = vst [vmem:[%s7250_s14 + $0x1e8] sm:$0xff] %v177_v61  ;;  %v181_v63 = vld [vmem:[%s7238_s2 + $0x1f8] sm:$0xff]  ;;  %v183_v0 = vld [vmem:[%s7238_s2 + $0x200] sm:$0xff] }
  0x21   :  { %180 = vst [vmem:[%s7250_s14 + $0x1f0] sm:$0xff] %v179_v62  ;;  %v185_v1 = vld [vmem:[%s7238_s2 + $0x208] sm:$0xff]  ;;  %182 = vst [vmem:[%s7250_s14 + $0x1f8] sm:$0xff] %v181_v63  ;;  %v187_v2 = vld [vmem:[%s7238_s2 + $0x210] sm:$0xff] }
  0x22   :  { %184 = vst [vmem:[%s7250_s14 + $0x200] sm:$0xff] %v183_v0  ;;  %186 = vst [vmem:[%s7250_s14 + $0x208] sm:$0xff] %v185_v1  ;;  %v189_v3 = vld [vmem:[%s7238_s2 + $0x218] sm:$0xff]  ;;  %v191_v4 = vld [vmem:[%s7238_s2 + $0x220] sm:$0xff] }
  0x23   :  { %188 = vst [vmem:[%s7250_s14 + $0x210] sm:$0xff] %v187_v2  ;;  %190 = vst [vmem:[%s7250_s14 + $0x218] sm:$0xff] %v189_v3  ;;  %v193_v5 = vld [vmem:[%s7238_s2 + $0x228] sm:$0xff]  ;;  %v195_v6 = vld [vmem:[%s7238_s2 + $0x230] sm:$0xff] }
  0x24   :  { %192 = vst [vmem:[%s7250_s14 + $0x220] sm:$0xff] %v191_v4  ;;  %v197_v7 = vld [vmem:[%s7238_s2 + $0x238] sm:$0xff]  ;;  %194 = vst [vmem:[%s7250_s14 + $0x228] sm:$0xff] %v193_v5  ;;  %v199_v8 = vld [vmem:[%s7238_s2 + $0x240] sm:$0xff] }
  0x25   :  { %196 = vst [vmem:[%s7250_s14 + $0x230] sm:$0xff] %v195_v6  ;;  %198 = vst [vmem:[%s7250_s14 + $0x238] sm:$0xff] %v197_v7  ;;  %v201_v9 = vld [vmem:[%s7238_s2 + $0x248] sm:$0xff]  ;;  %v203_v10 = vld [vmem:[%s7238_s2 + $0x250] sm:$0xff] }
  0x26   :  { %200 = vst [vmem:[%s7250_s14 + $0x240] sm:$0xff] %v199_v8  ;;  %202 = vst [vmem:[%s7250_s14 + $0x248] sm:$0xff] %v201_v9  ;;  %v205_v11 = vld [vmem:[%s7238_s2 + $0x258] sm:$0xff]  ;;  %v207_v12 = vld [vmem:[%s7238_s2 + $0x260] sm:$0xff] }
  0x27   :  { %204 = vst [vmem:[%s7250_s14 + $0x250] sm:$0xff] %v203_v10  ;;  %v209_v13 = vld [vmem:[%s7238_s2 + $0x268] sm:$0xff]  ;;  %206 = vst [vmem:[%s7250_s14 + $0x258] sm:$0xff] %v205_v11  ;;  %v211_v14 = vld [vmem:[%s7238_s2 + $0x270] sm:$0xff] }
  0x28   :  { %208 = vst [vmem:[%s7250_s14 + $0x260] sm:$0xff] %v207_v12  ;;  %210 = vst [vmem:[%s7250_s14 + $0x268] sm:$0xff] %v209_v13  ;;  %v213_v15 = vld [vmem:[%s7238_s2 + $0x278] sm:$0xff]  ;;  %v215_v16 = vld [vmem:[%s7238_s2 + $0x280] sm:$0xff] }
  0x29   :  { %212 = vst [vmem:[%s7250_s14 + $0x270] sm:$0xff] %v211_v14  ;;  %214 = vst [vmem:[%s7250_s14 + $0x278] sm:$0xff] %v213_v15  ;;  %v217_v17 = vld [vmem:[%s7238_s2 + $0x288] sm:$0xff]  ;;  %v219_v18 = vld [vmem:[%s7238_s2 + $0x290] sm:$0xff] }
  0x2a   :  { %216 = vst [vmem:[%s7250_s14 + $0x280] sm:$0xff] %v215_v16  ;;  %v221_v19 = vld [vmem:[%s7238_s2 + $0x298] sm:$0xff]  ;;  %218 = vst [vmem:[%s7250_s14 + $0x288] sm:$0xff] %v217_v17  ;;  %v223_v20 = vld [vmem:[%s7238_s2 + $0x2a0] sm:$0xff] }
  0x2b   :  { %220 = vst [vmem:[%s7250_s14 + $0x290] sm:$0xff] %v219_v18  ;;  %222 = vst [vmem:[%s7250_s14 + $0x298] sm:$0xff] %v221_v19  ;;  %v225_v21 = vld [vmem:[%s7238_s2 + $0x2a8] sm:$0xff]  ;;  %v227_v22 = vld [vmem:[%s7238_s2 + $0x2b0] sm:$0xff] }
  0x2c   :  { %224 = vst [vmem:[%s7250_s14 + $0x2a0] sm:$0xff] %v223_v20  ;;  %226 = vst [vmem:[%s7250_s14 + $0x2a8] sm:$0xff] %v225_v21  ;;  %v229_v23 = vld [vmem:[%s7238_s2 + $0x2b8] sm:$0xff]  ;;  %v231_v24 = vld [vmem:[%s7238_s2 + $0x2c0] sm:$0xff] }
  0x2d   :  { %228 = vst [vmem:[%s7250_s14 + $0x2b0] sm:$0xff] %v227_v22  ;;  %v233_v25 = vld [vmem:[%s7238_s2 + $0x2c8] sm:$0xff]  ;;  %230 = vst [vmem:[%s7250_s14 + $0x2b8] sm:$0xff] %v229_v23  ;;  %v235_v26 = vld [vmem:[%s7238_s2 + $0x2d0] sm:$0xff] }
  0x2e   :  { %232 = vst [vmem:[%s7250_s14 + $0x2c0] sm:$0xff] %v231_v24  ;;  %234 = vst [vmem:[%s7250_s14 + $0x2c8] sm:$0xff] %v233_v25  ;;  %v237_v27 = vld [vmem:[%s7238_s2 + $0x2d8] sm:$0xff]  ;;  %v239_v28 = vld [vmem:[%s7238_s2 + $0x2e0] sm:$0xff] }
  0x2f   :  { %236 = vst [vmem:[%s7250_s14 + $0x2d0] sm:$0xff] %v235_v26  ;;  %238 = vst [vmem:[%s7250_s14 + $0x2d8] sm:$0xff] %v237_v27  ;;  %v241_v29 = vld [vmem:[%s7238_s2 + $0x2e8] sm:$0xff]  ;;  %v243_v30 = vld [vmem:[%s7238_s2 + $0x2f0] sm:$0xff] }
  0x30   :  { %240 = vst [vmem:[%s7250_s14 + $0x2e0] sm:$0xff] %v239_v28  ;;  %v245_v31 = vld [vmem:[%s7238_s2 + $0x2f8] sm:$0xff]  ;;  %242 = vst [vmem:[%s7250_s14 + $0x2e8] sm:$0xff] %v241_v29  ;;  %v247_v32 = vld [vmem:[%s7238_s2 + $0x300] sm:$0xff] }
  0x31   :  { %244 = vst [vmem:[%s7250_s14 + $0x2f0] sm:$0xff] %v243_v30  ;;  %246 = vst [vmem:[%s7250_s14 + $0x2f8] sm:$0xff] %v245_v31  ;;  %v249_v33 = vld [vmem:[%s7238_s2 + $0x308] sm:$0xff]  ;;  %v251_v34 = vld [vmem:[%s7238_s2 + $0x310] sm:$0xff] }
  0x32   :  { %248 = vst [vmem:[%s7250_s14 + $0x300] sm:$0xff] %v247_v32  ;;  %250 = vst [vmem:[%s7250_s14 + $0x308] sm:$0xff] %v249_v33  ;;  %v253_v35 = vld [vmem:[%s7238_s2 + $0x318] sm:$0xff]  ;;  %v255_v36 = vld [vmem:[%s7238_s2 + $0x320] sm:$0xff] }
  0x33   :  { %252 = vst [vmem:[%s7250_s14 + $0x310] sm:$0xff] %v251_v34  ;;  %v257_v37 = vld [vmem:[%s7238_s2 + $0x328] sm:$0xff]  ;;  %254 = vst [vmem:[%s7250_s14 + $0x318] sm:$0xff] %v253_v35  ;;  %v259_v38 = vld [vmem:[%s7238_s2 + $0x330] sm:$0xff] }
  0x34   :  { %256 = vst [vmem:[%s7250_s14 + $0x320] sm:$0xff] %v255_v36  ;;  %258 = vst [vmem:[%s7250_s14 + $0x328] sm:$0xff] %v257_v37  ;;  %v261_v39 = vld [vmem:[%s7238_s2 + $0x338] sm:$0xff]  ;;  %v263_v40 = vld [vmem:[%s7238_s2 + $0x340] sm:$0xff] }
  0x35   :  { %260 = vst [vmem:[%s7250_s14 + $0x330] sm:$0xff] %v259_v38  ;;  %262 = vst [vmem:[%s7250_s14 + $0x338] sm:$0xff] %v261_v39  ;;  %v265_v41 = vld [vmem:[%s7238_s2 + $0x348] sm:$0xff]  ;;  %v267_v42 = vld [vmem:[%s7238_s2 + $0x350] sm:$0xff] }
  0x36   :  { %264 = vst [vmem:[%s7250_s14 + $0x340] sm:$0xff] %v263_v40  ;;  %v269_v43 = vld [vmem:[%s7238_s2 + $0x358] sm:$0xff]  ;;  %266 = vst [vmem:[%s7250_s14 + $0x348] sm:$0xff] %v265_v41  ;;  %v271_v44 = vld [vmem:[%s7238_s2 + $0x360] sm:$0xff] }
  0x37   :  { %268 = vst [vmem:[%s7250_s14 + $0x350] sm:$0xff] %v267_v42  ;;  %270 = vst [vmem:[%s7250_s14 + $0x358] sm:$0xff] %v269_v43  ;;  %v273_v45 = vld [vmem:[%s7238_s2 + $0x368] sm:$0xff]  ;;  %v275_v46 = vld [vmem:[%s7238_s2 + $0x370] sm:$0xff] }
  0x38   :  { %272 = vst [vmem:[%s7250_s14 + $0x360] sm:$0xff] %v271_v44  ;;  %274 = vst [vmem:[%s7250_s14 + $0x368] sm:$0xff] %v273_v45  ;;  %v277_v47 = vld [vmem:[%s7238_s2 + $0x378] sm:$0xff] }
  0x39   :  { %276 = vst [vmem:[%s7250_s14 + $0x370] sm:$0xff] %v275_v46  ;;  %278 = vst [vmem:[%s7250_s14 + $0x378] sm:$0xff] %v277_v47 }
  0x3a   :  { %286 = vsyncadd [#allocation3], 14336  ;;  %v321_v48 = vld [vmem:[%s7239_s3] sm:$0xff]  ;;  %v323_v49 = vld [vmem:[%s7239_s3 + $0x8] sm:$0xff] }
  0x3b   :  { %3444 = vst [vmem:[%s7250_s14 + $0x380] sm:$0xff] %v321_v48  ;;  %3445 = vst [vmem:[%s7250_s14 + $0x388] sm:$0xff] %v323_v49  ;;  %v325_v50 = vld [vmem:[%s7239_s3 + $0x10] sm:$0xff]  ;;  %v327_v51 = vld [vmem:[%s7239_s3 + $0x18] sm:$0xff] }
  0x3c   :  { %3446 = vst [vmem:[%s7250_s14 + $0x390] sm:$0xff] %v325_v50  ;;  %3447 = vst [vmem:[%s7250_s14 + $0x398] sm:$0xff] %v327_v51 }
  0x3d   :  { %336 = vsyncadd [#allocation3 + $0x1], 512  ;;  %v371_v52 = vld [vmem:[%s7240_s4] sm:$0xff]  ;;  %v373_v53 = vld [vmem:[%s7240_s4 + $0x8] sm:$0xff] }
  0x3e   :  { %3449 = vst [vmem:[%s7250_s14 + $0x3a0] sm:$0xff] %v371_v52  ;;  %3450 = vst [vmem:[%s7250_s14 + $0x3a8] sm:$0xff] %v373_v53  ;;  %v375_v54 = vld [vmem:[%s7240_s4 + $0x10] sm:$0xff]  ;;  %v377_v55 = vld [vmem:[%s7240_s4 + $0x18] sm:$0xff] }
  0x3f   :  { %3451 = vst [vmem:[%s7250_s14 + $0x3b0] sm:$0xff] %v375_v54  ;;  %3452 = vst [vmem:[%s7250_s14 + $0x3b8] sm:$0xff] %v377_v55 }
  0x40   :  { %386 = vsyncadd [#allocation3 + $0x2], 512  ;;  %v421_v56 = vld [vmem:[%s7241_s5] sm:$0xff]  ;;  %v423_v57 = vld [vmem:[%s7241_s5 + $0x8] sm:$0xff] }
  0x41   :  { %3454 = vst [vmem:[%s7250_s14 + $0x3c0] sm:$0xff] %v421_v56  ;;  %3455 = vst [vmem:[%s7250_s14 + $0x3c8] sm:$0xff] %v423_v57  ;;  %v425_v58 = vld [vmem:[%s7241_s5 + $0x10] sm:$0xff]  ;;  %v427_v59 = vld [vmem:[%s7241_s5 + $0x18] sm:$0xff] }
  0x42   :  { %3456 = vst [vmem:[%s7250_s14 + $0x3d0] sm:$0xff] %v425_v58  ;;  %3457 = vst [vmem:[%s7250_s14 + $0x3d8] sm:$0xff] %v427_v59 }
  0x43   :  { %436 = vsyncadd [#allocation3 + $0x3], 512  ;;  %v471_v60 = vld [vmem:[%s7242_s6] sm:$0xff]  ;;  %v473_v61 = vld [vmem:[%s7242_s6 + $0x8] sm:$0xff] }
  0x44   :  { %3459 = vst [vmem:[%s7250_s14 + $0x3e0] sm:$0xff] %v471_v60  ;;  %3460 = vst [vmem:[%s7250_s14 + $0x3e8] sm:$0xff] %v473_v61  ;;  %v475_v62 = vld [vmem:[%s7242_s6 + $0x10] sm:$0xff]  ;;  %v477_v63 = vld [vmem:[%s7242_s6 + $0x18] sm:$0xff] }
  0x45   :  { %3461 = vst [vmem:[%s7250_s14 + $0x3f0] sm:$0xff] %v475_v62  ;;  %3462 = vst [vmem:[%s7250_s14 + $0x3f8] sm:$0xff] %v477_v63 }
  0x46   :  { %486 = vsyncadd [#allocation3 + $0x4], 512  ;;  %v521_v0 = vld [vmem:[%s7243_s7] sm:$0xff]  ;;  %v523_v1 = vld [vmem:[%s7243_s7 + $0x8] sm:$0xff] }
  0x47   :  { %3464 = vst [vmem:[%s7250_s14 + $0x400] sm:$0xff] %v521_v0  ;;  %3465 = vst [vmem:[%s7250_s14 + $0x408] sm:$0xff] %v523_v1  ;;  %v525_v2 = vld [vmem:[%s7243_s7 + $0x10] sm:$0xff]  ;;  %v527_v3 = vld [vmem:[%s7243_s7 + $0x18] sm:$0xff] }
  0x48   :  { %3466 = vst [vmem:[%s7250_s14 + $0x410] sm:$0xff] %v525_v2  ;;  %3467 = vst [vmem:[%s7250_s14 + $0x418] sm:$0xff] %v527_v3 }
  0x49   :  { %536 = vsyncadd [#allocation3 + $0x5], 512  ;;  %v571_v4 = vld [vmem:[%s7244_s8] sm:$0xff]  ;;  %v573_v5 = vld [vmem:[%s7244_s8 + $0x8] sm:$0xff] }
  0x4a   :  { %3469 = vst [vmem:[%s7250_s14 + $0x420] sm:$0xff] %v571_v4  ;;  %3470 = vst [vmem:[%s7250_s14 + $0x428] sm:$0xff] %v573_v5  ;;  %v575_v6 = vld [vmem:[%s7244_s8 + $0x10] sm:$0xff]  ;;  %v577_v7 = vld [vmem:[%s7244_s8 + $0x18] sm:$0xff] }
  0x4b   :  { %3471 = vst [vmem:[%s7250_s14 + $0x430] sm:$0xff] %v575_v6  ;;  %3472 = vst [vmem:[%s7250_s14 + $0x438] sm:$0xff] %v577_v7 }
  0x4c   :  { %586 = vsyncadd [#allocation3 + $0x6], 512  ;;  %v621_v8 = vld [vmem:[%s7245_s9] sm:$0xff]  ;;  %v623_v9 = vld [vmem:[%s7245_s9 + $0x8] sm:$0xff] }
  0x4d   :  { %3474 = vst [vmem:[%s7250_s14 + $0x440] sm:$0xff] %v621_v8  ;;  %3475 = vst [vmem:[%s7250_s14 + $0x448] sm:$0xff] %v623_v9  ;;  %v625_v10 = vld [vmem:[%s7245_s9 + $0x10] sm:$0xff]  ;;  %v627_v11 = vld [vmem:[%s7245_s9 + $0x18] sm:$0xff] }
  0x4e   :  { %3476 = vst [vmem:[%s7250_s14 + $0x450] sm:$0xff] %v625_v10  ;;  %3477 = vst [vmem:[%s7250_s14 + $0x458] sm:$0xff] %v627_v11 }
  0x4f   :  { %636 = vsyncadd [#allocation3 + $0x7], 512  ;;  %v671_v12 = vld [vmem:[%s7246_s10] sm:$0xff]  ;;  %v673_v13 = vld [vmem:[%s7246_s10 + $0x8] sm:$0xff] }
  0x50   :  { %3479 = vst [vmem:[%s7250_s14 + $0x460] sm:$0xff] %v671_v12  ;;  %3480 = vst [vmem:[%s7250_s14 + $0x468] sm:$0xff] %v673_v13  ;;  %v675_v14 = vld [vmem:[%s7246_s10 + $0x10] sm:$0xff]  ;;  %v677_v15 = vld [vmem:[%s7246_s10 + $0x18] sm:$0xff] }
  0x51   :  { %3481 = vst [vmem:[%s7250_s14 + $0x470] sm:$0xff] %v675_v14  ;;  %3482 = vst [vmem:[%s7250_s14 + $0x478] sm:$0xff] %v677_v15 }
  0x52   :  { %686 = vsyncadd [#allocation3 + $0x8], 512  ;;  %v721_v16 = vld [vmem:[%s7247_s11] sm:$0xff]  ;;  %v723_v17 = vld [vmem:[%s7247_s11 + $0x8] sm:$0xff] }
  0x53   :  { %3484 = vst [vmem:[%s7250_s14 + $0x480] sm:$0xff] %v721_v16  ;;  %3485 = vst [vmem:[%s7250_s14 + $0x488] sm:$0xff] %v723_v17  ;;  %v725_v18 = vld [vmem:[%s7247_s11 + $0x10] sm:$0xff]  ;;  %v727_v19 = vld [vmem:[%s7247_s11 + $0x18] sm:$0xff] }
  0x54   :  { %3486 = vst [vmem:[%s7250_s14 + $0x490] sm:$0xff] %v725_v18  ;;  %3487 = vst [vmem:[%s7250_s14 + $0x498] sm:$0xff] %v727_v19 }
  0x55   :  { %736 = vsyncadd [#allocation3 + $0x9], 512  ;;  %v771_v20 = vld [vmem:[%s7248_s12] sm:$0xff]  ;;  %v773_v21 = vld [vmem:[%s7248_s12 + $0x8] sm:$0xff] }
  0x56   :  { %3489 = vst [vmem:[%s7250_s14 + $0x4a0] sm:$0xff] %v771_v20  ;;  %3490 = vst [vmem:[%s7250_s14 + $0x4a8] sm:$0xff] %v773_v21  ;;  %v775_v22 = vld [vmem:[%s7248_s12 + $0x10] sm:$0xff]  ;;  %v777_v23 = vld [vmem:[%s7248_s12 + $0x18] sm:$0xff] }
  0x57   :  { %3491 = vst [vmem:[%s7250_s14 + $0x4b0] sm:$0xff] %v775_v22  ;;  %3492 = vst [vmem:[%s7250_s14 + $0x4b8] sm:$0xff] %v777_v23 }
  0x58   :  { %786 = vsyncadd [#allocation3 + $0xa], 512  ;;  %v821_v24 = vld [vmem:[%s7249_s13] sm:$0xff]  ;;  %v823_v25 = vld [vmem:[%s7249_s13 + $0x8] sm:$0xff]  ;;  %v853_v28 = vlaneseq  ;;  %vm7251_vm0 = vcmask 400384  }
  0x59   :  { %3494 = vst [vmem:[%s7250_s14 + $0x4e0] sm:$0xff] %v821_v24  ;;  %3495 = vst [vmem:[%s7250_s14 + $0x4e8] sm:$0xff] %v823_v25  ;;  %v825_v26 = vld [vmem:[%s7249_s13 + $0x10] sm:$0xff]  ;;  %v827_v27 = vld [vmem:[%s7249_s13 + $0x18] sm:$0xff] }
  0x5a   :  { %3496 = vst [vmem:[%s7250_s14 + $0x4f0] sm:$0xff] %v825_v26  ;;  %3497 = vst [vmem:[%s7250_s14 + $0x4f8] sm:$0xff] %v827_v27  ;;  %v6185_v29 = vld [vmem:[%s7236_s0] sm:$0xff]  ;;  %v6187_v30 = vshrl.u32 %v853_v28, 7  ;;  %v6189_v31 = vand.u32 127, %v853_v28 }
  0x5b   :  { %4113 = vmatprep.mubr.msk.f32.mxu1 %vm7251_vm0, %v6185_v29  ;;  %4075 = vmatprep.mubr.msk.f32.mxu0 %vm7251_vm0, %v6185_v29 }
  0x5c   :  { %v6196_v32 = vadd.s32 8, %v6187_v30  ;;  %vm897_vm1 = vcmp.ge.s32.totalorder %v6189_v31, 7  ;;  %v1122_v33 = vadd.s32 4294967289, %v6189_v31  ;;  %v6201_v34 = vadd.s32 16, %v6187_v30 }
  0x5d   :  { %v6204_v35 = vadd.s32 24, %v6187_v30  ;;  %v6209_v36 = vadd.s32 32, %v6187_v30 }
  0x5e   :  { %vm1123_vm2 = vcmp.eq.s32.totalorder %v6187_v30, %v1122_v33  ;;  %vm1124_vm3 = vcmp.eq.s32.totalorder %v6196_v32, %v1122_v33 }
  0x5f   :  { %836 = vsyncadd [#allocation3 + $0xb], 512  ;;  %vm1125_vm5 = vcmp.eq.s32.totalorder %v6201_v34, %v1122_v33  ;;  %v6215_v37 = vadd.s32 40, %v6187_v30  ;;  %vm1126_vm7 = vcmp.eq.s32.totalorder %v6204_v35, %v1122_v33  ;;  %v6221_v38 = vadd.s32 48, %v6187_v30  ;;  %v6247_v42 = vld [vmem:[%s7236_s0 + $0x8] sm:$0xff]  ;;  %v6252_v43 = vld [vmem:[%s7236_s0 + $0x10] sm:$0xff] }
  0x60   :  { %vm1130_vm4 = vmand %vm1123_vm2, %vm897_vm1  ;;  %v5168_v39 = vmov 1.0|1.0   ;;  %vm1127_vm10 = vcmp.eq.s32.totalorder %v6209_v36, %v1122_v33  ;;  %v5169_v40 = vmov 0.0   ;;  %v6262_v44 = vld [vmem:[%s7236_s0 + $0x18] sm:$0xff]  ;;  %v6267_v45 = vld [vmem:[%s7236_s0 + $0x20] sm:$0xff]  ;;  %v889_v57 = vadd.s32 4294967288, %v6189_v31 }
  0x61   :  { %vm1131_vm6 = vmand %vm1124_vm3, %vm897_vm1  ;;  %vm1128_vm12 = vcmp.eq.s32.totalorder %v6215_v37, %v1122_v33  ;;  %vm1129_vm15 = vcmp.eq.s32.totalorder %v6221_v38, %v1122_v33  ;;  %v6276_v46 = vld [vmem:[%s7236_s0 + $0x28] sm:$0xff]  ;;  %v6281_v47 = vld [vmem:[%s7236_s0 + $0x30] sm:$0xff]  ;;  %v6447_v15 = vadd.s32 4294967290, %v6189_v31  ;;  %v6582_v21 = vadd.s32 1, %v6189_v31 }
  0x62   :  { %vm4719_vm8 = vmpackc.low %vm1131_vm6, %vm1130_vm4  ;;  %v6290_v48 = vld [vmem:[%s7236_s0 + $0x38] sm:$0xff]  ;;  %v6295_v49 = vld [vmem:[%s7236_s0 + $0x40] sm:$0xff]  ;;  %vm863_vm6 = vcmp.eq.s32.totalorder %v6189_v31, 0 }
  0x63   :  { %4720 = vmatprep.subr.msk.bf16.mxu1 %vm4719_vm8, %v5168_v39  ;;  %vm1132_vm9 = vmand %vm1125_vm5, %vm897_vm1  ;;  %vm969_vm5 = vcmask 1040384   ;;  %v6304_v50 = vld [vmem:[%s7236_s0 + $0x48] sm:$0xff]  ;;  %v6309_v51 = vld [vmem:[%s7236_s0 + $0x50] sm:$0xff] }
  0x64   :  { %4722 = vmatpush3.bf16.msk.msra.mxu1 %vm4719_vm8, %v5168_v39  ;;  %vm1133_vm11 = vmand %vm1126_vm7, %vm897_vm1  ;;  %v6318_v52 = vld [vmem:[%s7236_s0 + $0x58] sm:$0xff]  ;;  %v6323_v53 = vld [vmem:[%s7236_s0 + $0x60] sm:$0xff]  ;;  %vm865_vm7 = vcmp.eq.s32.totalorder %v6189_v31, 7 }
  0x65   :  { %vm4723_vm13 = vmpackc.low %vm1133_vm11, %vm1132_vm9  ;;  %v6332_v54 = vld [vmem:[%s7236_s0 + $0x68] sm:$0xff]  ;;  %v6337_v55 = vld [vmem:[%s7236_s0 + $0x70] sm:$0xff]  ;;  %vm869_vm9 = vcmp.eq.s32.totalorder %v6189_v31, 14  ;;  %vm873_vm11 = vcmp.eq.s32.totalorder %v6189_v31, 21 }
  0x66   :  { %4724 = vmatprep.subr.msk.bf16.mxu1 %vm4723_vm13, %v5168_v39  ;;  %vm1134_vm14 = vmand %vm1127_vm10, %vm897_vm1  ;;  %v6346_v56 = vld [vmem:[%s7236_s0 + $0x78] sm:$0xff]  ;;  %v3539_v5 = vld [vmem:[%s7237_s1 + $0x20] sm:$0xff] }
  0x67   :  { %vm1135_vm2 = vmand %vm1128_vm12, %vm897_vm1 }
  0x68   :  { %4726 = vmatpush3.bf16.msk.msra.mxu1 %vm4723_vm13, %v5168_v39  ;;  %vm4727_vm3 = vmpackc.low %vm1135_vm2, %vm1134_vm14  ;;  %vm877_vm13 = vcmp.eq.s32.totalorder %v6189_v31, 28 }
  0x69   :  { %4728 = vmatprep.subr.msk.bf16.mxu1 %vm4727_vm3, %v5168_v39  ;;  %vm1136_vm4 = vmand %vm1129_vm15, %vm897_vm1  ;;  %vm881_vm15 = vcmp.eq.s32.totalorder %v6189_v31, 35 }
  0x6a   :  { %v1143_v41 = vsel %vm1136_vm4, 1.0, %v5169_v40  ;;  %vm866_vm8 = vmor %vm863_vm6, %vm865_vm7  ;;  %vm891_vm6 = vcmp.eq.s32.totalorder %v6196_v32, %v889_v57 }
  0x6b   :  { %vm870_vm10 = vmor %vm866_vm8, %vm869_vm9  ;;  %vm5170_vm9 = vmmov 1  }
  0x6c   :  { %4730 = vmatpush3.bf16.msk.msra.mxu1 %vm4727_vm3, %v5168_v39  ;;  %vm874_vm12 = vmor %vm870_vm10, %vm873_vm11  ;;  %vm885_vm3 = vcmp.eq.s32.totalorder %v6189_v31, 42 }
  0x6d   :  { %4111 = vmatprep.subr.msk.mxu1 %vm969_vm5, %v1143_v41  ;;  %vm878_vm14 = vmor %vm874_vm12, %vm877_vm13  ;;  %vm892_vm12 = vcmp.eq.s32.totalorder %v6201_v34, %v889_v57  ;;  %vm893_vm13 = vcmp.eq.s32.totalorder %v6204_v35, %v889_v57 }
  0x6e   :  { %vm882_vm2 = vmor %vm878_vm14, %vm881_vm15 }
  0x6f   :  { %vm886_vm4 = vmor %vm882_vm2, %vm885_vm3  ;;  %vm894_vm3 = vcmp.eq.s32.totalorder %v6209_v36, %v889_v57 }
  0x70   :  { %4112 = vmatpush3.msk.msra.mxu1 %vm969_vm5, %v1143_v41  ;;  %vm899_vm8 = vmand %vm891_vm6, %vm897_vm1 }
  0x71   :  { %4114 = vmatmul.mubr.msk.f32.vlgmr.msra.gmra.mrb[0].mxu1 %vm7251_vm0, %v6247_v42  ;;  %vm6365_vm10 = vmxor %vm886_vm4, %vm5170_vm9  ;;  %vm895_vm4 = vcmp.eq.s32.totalorder %v6215_v37, %v889_v57 }
  0x72   :  { %4116 = vmatprep.mubr.msk.f32.mxu1 %vm7251_vm0, %v6252_v43  ;;  %vm907_vm14 = vmand %vm899_vm8, %vm6365_vm10 }
  0x73   :  { %v914_v60 = vsel %vm907_vm14, 1.0, %v5169_v40  ;;  %vm901_vm15 = vmand %vm893_vm13, %vm897_vm1  ;;  %vm896_vm13 = vcmp.eq.s32.totalorder %v6221_v38, %v889_v57 }
  0x74   :  { %vm909_vm6 = vmand %vm901_vm15, %vm6365_vm10  ;;  %vm7254_vm15 = vcmask 400384  }
  0x75   :  { %4117 = vmatmul.mubr.msk.f32.gmra.mrb[2].mxu1 %vm7251_vm0, %v6262_v44  ;;  %v916_v63 = vsel %vm909_vm6, 1.0, %v5169_v40  ;;  %vm903_vm8 = vmand %vm895_vm4, %vm897_vm1 }
  0x76   :  { %4119 = vmatprep.mubr.msk.f32.mxu1 %vm7251_vm0, %v6267_v45  ;;  %vm904_vm14 = vmand %vm896_vm13, %vm897_vm1 }
  0x79   :  { %4120 = vmatmul.mubr.msk.f32.gmra.mrb[4].mxu1 %vm7251_vm0, %v6276_v46 }
  0x7a   :  { %4122 = vmatprep.mubr.msk.f32.mxu1 %vm7251_vm0, %v6281_v47 }
  0x7d   :  { %4123 = vmatmul.mubr.msk.f32.gmra.mrb[6].mxu1 %vm7251_vm0, %v6290_v48 }
  0x7e   :  { %4125 = vmatprep.mubr.msk.f32.mxu1 %vm7251_vm0, %v6295_v49 }
  0x81   :  { %4126 = vmatmul.mubr.msk.f32.gmra.mrb[8].mxu1 %vm7251_vm0, %v6304_v50 }
  0x82   :  { %4128 = vmatprep.mubr.msk.f32.mxu1 %vm7251_vm0, %v6309_v51 }
  0x85   :  { %4129 = vmatmul.mubr.msk.f32.gmra.mrb[10].mxu1 %vm7251_vm0, %v6318_v52 }
  0x86   :  { %4131 = vmatprep.mubr.msk.f32.mxu1 %vm7251_vm0, %v6323_v53 }
  0x89   :  { %4132 = vmatmul.mubr.msk.f32.gmra.mrb[12].mxu1 %vm7251_vm0, %v6332_v54 }
  0x8a   :  { %4134 = vmatprep.mubr.msk.f32.mxu1 %vm7251_vm0, %v6337_v55 }
  0x8d   :  { %4135 = vmatmul.mubr.msk.f32.gmra.mrb[14].mxu1 %vm7251_vm0, %v6346_v56  ;;  %vm890_vm0 = vcmp.eq.s32.totalorder %v6187_v30, %v889_v57 }
  0x8e   :  { %vm898_vm7 = vmand %vm890_vm0, %vm897_vm1  ;;  %4169 = vmatprep.mubr.f32.mxu1 %v3539_v5 }
  0x8f   :  { %vm906_vm11 = vmand %vm898_vm7, %vm6365_vm10 }
  0x90   :  { %v913_v59 = vsel %vm906_vm11, 1.0, %v5169_v40  ;;  %vm900_vm0 = vmand %vm892_vm12, %vm897_vm1 }
  0x91   :  { %v4707_v61 = vpack.c.bf16 %v914_v60, %v913_v59  ;;  %vm908_vm2 = vmand %vm900_vm0, %vm6365_vm10 }
  0x92   :  { %v915_v62 = vsel %vm908_vm2, 1.0, %v5169_v40  ;;  %vm902_vm7 = vmand %vm894_vm3, %vm897_vm1 }
  0x93   :  { %4708 = vmatprep.subr.bf16.mxu0 %v4707_v61  ;;  %v4711_v0 = vpack.c.bf16 %v916_v63, %v915_v62  ;;  %vm910_vm11 = vmand %vm902_vm7, %vm6365_vm10 }
  0x94   :  { %4710 = vmatpush3.bf16.msra.mxu0 %v4707_v61  ;;  %vm911_vm12 = vmand %vm903_vm8, %vm6365_vm10  ;;  %v917_v1 = vsel %vm910_vm11, 1.0, %v5169_v40 }
  0x95   :  { %4712 = vmatprep.subr.bf16.mxu0 %v4711_v0  ;;  %v918_v2 = vsel %vm911_vm12, 1.0, %v5169_v40  ;;  %vm912_vm0 = vmand %vm904_vm14, %vm6365_vm10 }
  0x96   :  { %v4715_v3 = vpack.c.bf16 %v918_v2, %v917_v1  ;;  %v919_v4 = vsel %vm912_vm0, 1.0, %v5169_v40  ;;  %vm7255_vm2 = vmmov %vm7254_vm15 }
  0x97   :  { %vm7256_vm3 = vmmov %vm7255_vm2 }
  0x98   :  { %4714 = vmatpush3.bf16.msra.mxu0 %v4711_v0  ;;  %vm7257_vm4 = vmmov %vm7255_vm2 }
  0x99   :  { %4716 = vmatprep.subr.bf16.mxu0 %v4715_v3  ;;  %vm7258_vm6 = vmmov %vm7255_vm2 }
  0x9a   :  { %vm7259_vm7 = vmmov %vm7255_vm2 }
  0x9b   :  { %vm7260_vm8 = vmmov %vm7255_vm2 }
  0x9c   :  { %4718 = vmatpush3.bf16.msra.mxu0 %v4715_v3  ;;  %vm7261_vm11 = vmmov %vm7255_vm2 }
  0x9d   :  { %4073 = vmatprep.subr.msk.mxu0 %vm969_vm5, %v919_v4  ;;  %vm7262_vm12 = vmmov %vm7255_vm2 }
  0x9e   :  { %vm7263_vm13 = vmmov %vm7255_vm2 }
  0x9f   :  { %vm7264_vm14 = vmmov %vm7255_vm2 }
  0xa0   :  { %4074 = vmatpush3.msk.msra.mxu0 %vm969_vm5, %v919_v4  ;;  %vm7265_vm0 = vmmov %vm7255_vm2 }
  0xa1   :  { %4076 = vmatmul.mubr.msk.f32.vlgmr.msra.gmra.mrb[0].mxu0 %vm7254_vm15, %v6247_v42  ;;  %vm7266_vm15 = vmmov %vm7265_vm0 }
  0xa2   :  { %4078 = vmatprep.mubr.msk.f32.mxu0 %vm7255_vm2, %v6252_v43  ;;  %vm7267_vm2 = vmmov %vm7265_vm0 }
  0xa5   :  { %4079 = vmatmul.mubr.msk.f32.gmra.mrb[2].mxu0 %vm7256_vm3, %v6262_v44  ;;  %vm7268_vm3 = vmmov %vm7265_vm0 }
  0xa6   :  { %4081 = vmatprep.mubr.msk.f32.mxu0 %vm7257_vm4, %v6267_v45  ;;  %vm864_vm4 = vcmp.eq.s32.totalorder %v6189_v31, 6 }
  0xa9   :  { %4082 = vmatmul.mubr.msk.f32.gmra.mrb[4].mxu0 %vm7258_vm6, %v6276_v46  ;;  %vm867_vm6 = vcmp.eq.s32.totalorder %v6189_v31, 13 }
  0xaa   :  { %4084 = vmatprep.mubr.msk.f32.mxu0 %vm7259_vm7, %v6281_v47  ;;  %vm868_vm7 = vmor %vm864_vm4, %vm867_vm6  ;;  %vm1468_vm4 = vcmp.eq.s32.totalorder %v6187_v30, %v6447_v15 }
  0xad   :  { %4085 = vmatmul.mubr.msk.f32.gmra.mrb[6].mxu0 %vm7260_vm8, %v6290_v48  ;;  %vm871_vm8 = vcmp.eq.s32.totalorder %v6189_v31, 20 }
  0xae   :  { %4087 = vmatprep.mubr.msk.f32.mxu0 %vm7261_vm11, %v6295_v49  ;;  %vm872_vm11 = vmor %vm868_vm7, %vm871_vm8  ;;  %vm1469_vm7 = vcmp.eq.s32.totalorder %v6196_v32, %v6447_v15 }
  0xaf   :  { %vm6456_vm8 = vmand %vm1468_vm4, %vm897_vm1 }
  0xb1   :  { %4088 = vmatmul.mubr.msk.f32.gmra.mrb[8].mxu0 %vm7262_vm12, %v6304_v50  ;;  %vm875_vm12 = vcmp.eq.s32.totalorder %v6189_v31, 27 }
  0xb2   :  { %4090 = vmatprep.mubr.msk.f32.mxu0 %vm7263_vm13, %v6309_v51  ;;  %vm876_vm13 = vmor %vm872_vm11, %vm875_vm12 }
  0xb3   :  { %vm6467_vm12 = vmand %vm1469_vm7, %vm897_vm1 }
  0xb5   :  { %4091 = vmatmul.mubr.msk.f32.gmra.mrb[10].mxu0 %vm7264_vm14, %v6318_v52  ;;  %vm879_vm14 = vcmp.eq.s32.totalorder %v6189_v31, 34 }
  0xb6   :  { %4093 = vmatprep.mubr.msk.f32.mxu0 %vm7265_vm0, %v6323_v53  ;;  %vm880_vm0 = vmor %vm876_vm13, %vm879_vm14  ;;  %vm1470_vm13 = vcmp.eq.s32.totalorder %v6201_v34, %v6447_v15  ;;  %vm1471_vm14 = vcmp.eq.s32.totalorder %v6204_v35, %v6447_v15 }
  0xb9   :  { %4094 = vmatmul.mubr.msk.f32.gmra.mrb[12].mxu0 %vm7266_vm15, %v6332_v54  ;;  %vm883_vm15 = vcmp.eq.s32.totalorder %v6189_v31, 41 }
  0xba   :  { %4096 = vmatprep.mubr.msk.f32.mxu0 %vm7267_vm2, %v6337_v55  ;;  %vm884_vm2 = vmor %vm880_vm0, %vm883_vm15 }
  0xbb   :  { %vm6485_vm15 = vmand %vm1470_vm13, %vm897_vm1 }
  0xbd   :  { %4097 = vmatmul.mubr.msk.f32.gmra.mrb[14].mxu0 %vm7268_vm3, %v6346_v56  ;;  %vm887_vm3 = vcmp.eq.s32.totalorder %v6189_v31, 48 }
  0xbe   :  { %vm888_vm6 = vmor %vm884_vm2, %vm887_vm3  ;;  %vm1472_vm3 = vcmp.eq.s32.totalorder %v6209_v36, %v6447_v15 }
  0xbf   :  { %vm6461_vm11 = vmxor %vm888_vm6, %vm5170_vm9  ;;  %vm1473_vm6 = vcmp.eq.s32.totalorder %v6215_v37, %v6447_v15 }
  0xc0   :  { %vm1483_vm9 = vmand %vm6456_vm8, %vm6461_vm11 }
  0xc1   :  { %vm1484_vm0 = vmand %vm6467_vm12, %vm6461_vm11  ;;  %v1490_v60 = vsel %vm1483_vm9, 1.0, %v5169_v40 }
  0xc2   :  { %vm6491_vm2 = vmand %vm1471_vm14, %vm897_vm1  ;;  %v1491_v61 = vsel %vm1484_vm0, 1.0, %v5169_v40  ;;  %vm1474_vm14 = vcmp.eq.s32.totalorder %v6221_v38, %v6447_v15 }
  0xc3   :  { %vm1485_vm4 = vmand %vm6485_vm15, %vm6461_vm11  ;;  %v4795_v3 = vpack.c.bf16 %v1491_v61, %v1490_v60 }
  0xc4   :  { %vm1486_vm7 = vmand %vm6491_vm2, %vm6461_vm11  ;;  %v1492_v4 = vsel %vm1485_vm4, 1.0, %v5169_v40 }
  0xc5   :  { %vm6511_vm8 = vmand %vm1472_vm3, %vm897_vm1  ;;  %v1493_v5 = vsel %vm1486_vm7, 1.0, %v5169_v40 }
  0xc6   :  { %vm6517_vm12 = vmand %vm1473_vm6, %vm897_vm1 }
  0xc7   :  { %vm1487_vm13 = vmand %vm6511_vm8, %vm6461_vm11  ;;  %vm7285_vm8 = vcmask 400384  }
  0xc8   :  { %vm1488_vm9 = vmand %vm6517_vm12, %vm6461_vm11 }
  0xc9   :  { %vm6544_vm0 = vmand %vm1474_vm14, %vm897_vm1 }
  0xca   :  { %vm1489_vm1 = vmand %vm6544_vm0, %vm6461_vm11 }
  0xcb   :  { %v1496_v15 = vsel %vm1489_vm1, 1.0, %v5169_v40  ;;  %vm7286_vm1 = vmmov %vm7285_vm8 }
 0x144   :  { %v4115_v6 = vpop.f32.mrb[0].mxu1 }
 0x145   :  { %v1213_v7 = vpop.f32.mrb[1].mxu1 }
 0x146   :  { %v4731_v8 = vpack.c.bf16 %v4115_v6, %v1213_v7  ;;  %v1739_v6 = vadd.s32 4294967295, %v6189_v31  ;;  %v3540_v7 = vld [vmem:[%s7237_s1 + $0x28] sm:$0xff] }
 0x148   :  { %v4118_v9 = vpop.f32.mrb[2].mxu1  ;;  %4732 = vmatprep.subr.bf16.mxu1 %v4731_v8  ;;  %vm1740_vm15 = vcmp.eq.s32.totalorder %v6187_v30, %v1739_v6  ;;  %vm1741_vm2 = vcmp.eq.s32.totalorder %v6196_v32, %v1739_v6  ;;  %vm1742_vm3 = vcmp.eq.s32.totalorder %v6201_v34, %v1739_v6  ;;  %vm1743_vm6 = vcmp.eq.s32.totalorder %v6204_v35, %v1739_v6 }
 0x149   :  { %v1223_v10 = vpop.f32.mrb[3].mxu1  ;;  %4734 = vmatpush3.bf16.msra.mxu1 %v4731_v8  ;;  %v4799_v8 = vpack.c.bf16 %v1493_v5, %v1492_v4  ;;  %vm1747_vm4 = vmand %vm1740_vm15, %vm6365_vm10  ;;  %vm1745_vm14 = vcmp.eq.s32.totalorder %v6215_v37, %v1739_v6 }
 0x14a   :  { %v4735_v11 = vpack.c.bf16 %v4118_v9, %v1223_v10  ;;  %v3541_v9 = vld [vmem:[%s7237_s1 + $0x30] sm:$0xff]  ;;  %v1494_v10 = vsel %vm1487_vm13, 1.0, %v5169_v40  ;;  %vm1748_vm7 = vmand %vm1741_vm2, %vm6365_vm10  ;;  %vm1746_vm2 = vcmp.eq.s32.totalorder %v6221_v38, %v1739_v6 }
 0x14b   :  { %vm1749_vm12 = vmand %vm1742_vm3, %vm6365_vm10  ;;  %vm2098_vm3 = vcmp.eq.s32.totalorder %v6187_v30, %v6582_v21 }
 0x14c   :  { %v4121_v12 = vpop.f32.mrb[4].mxu1  ;;  %4736 = vmatprep.subr.bf16.mxu1 %v4735_v11  ;;  %vm1750_vm13 = vmand %vm1743_vm6, %vm6365_vm10  ;;  %vm2099_vm6 = vcmp.eq.s32.totalorder %v6196_v32, %v6582_v21 }
 0x14d   :  { %v1233_v13 = vpop.f32.mrb[5].mxu1  ;;  %4738 = vmatpush3.bf16.msra.mxu1 %v4735_v11  ;;  %v1495_v11 = vsel %vm1488_vm9, 1.0, %v5169_v40  ;;  %vm1744_vm9 = vcmp.eq.s32.totalorder %v6209_v36, %v1739_v6  ;;  %vm1752_vm15 = vmand %vm1745_vm14, %vm6365_vm10  ;;  %v1118_v6 = vld [vmem:[%s7237_s1] sm:$0xff] }
 0x14e   :  { %v4739_v14 = vpack.c.bf16 %v4121_v12, %v1233_v13  ;;  %v3542_v13 = vld [vmem:[%s7237_s1 + $0x38] sm:$0xff]  ;;  %vm1751_vm0 = vmand %vm1744_vm9, %vm6365_vm10  ;;  %4207 = vmatprep.mubr.f32.mxu0 %v1118_v6 }
 0x14f   :  { %v1758_v24 = vsel %vm1751_vm0, 1.0, %v5169_v40  ;;  %vm7289_vm9 = vmmov %vm7286_vm1 }
 0x150   :  { %v4124_v16 = vpop.f32.mrb[6].mxu1  ;;  %4740 = vmatprep.subr.bf16.mxu1 %v4739_v14  ;;  %vm7290_vm14 = vmmov %vm7286_vm1 }
 0x151   :  { %v1243_v17 = vpop.f32.mrb[7].mxu1  ;;  %4742 = vmatpush3.bf16.msra.mxu1 %v4739_v14  ;;  %v4803_v14 = vpack.c.bf16 %v1495_v11, %v1494_v10  ;;  %vm7291_vm0 = vmmov %vm7286_vm1  ;;  %v6859_v10 = vadd.s32 8, %v6189_v31 }
 0x152   :  { %v4743_v18 = vpack.c.bf16 %v4124_v16, %v1243_v17  ;;  %v1754_v16 = vsel %vm1747_vm4, 1.0, %v5169_v40  ;;  %v1755_v17 = vsel %vm1748_vm7, 1.0, %v5169_v40  ;;  %vm7287_vm4 = vmmov %vm7286_vm1 }
 0x153   :  { %vm1753_vm7 = vmand %vm1746_vm2, %vm6365_vm10 }
 0x154   :  { %v4127_v19 = vpop.f32.mrb[8].mxu1  ;;  %4744 = vmatprep.subr.bf16.mxu1 %v4743_v18  ;;  %vm7293_vm2 = vmmov %vm7291_vm0 }
 0x155   :  { %v1253_v20 = vpop.f32.mrb[9].mxu1  ;;  %4746 = vmatpush3.bf16.msra.mxu1 %v4743_v18  ;;  %v1756_v18 = vsel %vm1749_vm12, 1.0, %v5169_v40  ;;  %vm7288_vm12 = vmmov %vm7286_vm1 }
 0x156   :  { %v4747_v22 = vpack.c.bf16 %v4127_v19, %v1253_v20  ;;  %v1757_v19 = vsel %vm1750_vm13, 1.0, %v5169_v40  ;;  %v4839_v20 = vpack.c.bf16 %v1755_v17, %v1754_v16  ;;  %vm2106_vm13 = vmand %vm2099_vm6, %vm6461_vm11  ;;  %vm2100_vm6 = vcmp.eq.s32.totalorder %v6201_v34, %v6582_v21 }
 0x158   :  { %v4130_v25 = vpop.f32.mrb[10].mxu1  ;;  %4748 = vmatprep.subr.bf16.mxu1 %v4747_v22 }
 0x159   :  { %v1263_v26 = vpop.f32.mrb[11].mxu1  ;;  %4750 = vmatpush3.bf16.msra.mxu1 %v4747_v22  ;;  %v4843_v22 = vpack.c.bf16 %v1757_v19, %v1756_v18 }
 0x15a   :  { %v4751_v27 = vpack.c.bf16 %v4130_v25, %v1263_v26  ;;  %v1759_v25 = vsel %vm1752_vm15, 1.0, %v5169_v40  ;;  %vm7292_vm15 = vmmov %vm7291_vm0 }
 0x15b   :  { %v4847_v26 = vpack.c.bf16 %v1759_v25, %v1758_v24  ;;  %v6769_v24 = vadd.s32 7, %v6189_v31 }
 0x15c   :  { %v4133_v33 = vpop.f32.mrb[12].mxu1  ;;  %4752 = vmatprep.subr.bf16.mxu1 %v4751_v27 }
 0x15d   :  { %v1273_v57 = vpop.f32.mrb[13].mxu1  ;;  %4754 = vmatpush3.bf16.msra.mxu1 %v4751_v27  ;;  %v1760_v27 = vsel %vm1753_vm7, 1.0, %v5169_v40  ;;  %vm7297_vm7 = vmmov %vm7291_vm0 }
 0x15e   :  { %v4755_v59 = vpack.c.bf16 %v4133_v33, %v1273_v57  ;;  %v2113_v33 = vsel %vm2106_vm13, 1.0, %v5169_v40  ;;  %vm7298_vm13 = vmmov %vm7291_vm0  ;;  %v6644_v57 = vadd.s32 6, %v6189_v31 }
 0x160   :  { %v4136_v62 = vpop.f32.mrb[14].mxu1  ;;  %4756 = vmatprep.subr.bf16.mxu1 %v4755_v59 }
 0x161   :  { %v1283_v0 = vpop.f32.mrb[15].mxu1  ;;  %4758 = vmatpush3.bf16.msra.mxu1 %v4755_v59 }
 0x162   :  { %v4759_v2 = vpack.c.bf16 %v4136_v62, %v1283_v0 }
 0x164   :  { %4760 = vmatprep.subr.bf16.mxu1 %v4759_v2 }
 0x165   :  { %4762 = vmatpush3.bf16.msra.mxu1 %v4759_v2 }
 0x166   :  { %4796 = vmatprep.subr.bf16.mxu1 %v4795_v3 }
 0x168   :  { %4170 = vmatmul.mubr.f32.vlgmr.msra.gmra.mrb[16].mxu1 %v3540_v7 }
 0x169   :  { %4798 = vmatpush3.bf16.msra.mxu1 %v4795_v3  ;;  %4172 = vmatprep.mubr.f32.mxu1 %v3541_v9 }
 0x16a   :  { %4800 = vmatprep.subr.bf16.mxu1 %v4799_v8 }
 0x16c   :  { %4173 = vmatmul.mubr.f32.gmra.mrb[18].mxu1 %v3542_v13 }
 0x16d   :  { %4802 = vmatpush3.bf16.msra.mxu1 %v4799_v8  ;;  %4227 = vmatprep.mubr.msk.f32.mxu1 %vm7285_vm8, %v6185_v29  ;;  %vm2105_vm8 = vmand %vm2098_vm3, %vm6461_vm11 }
 0x16e   :  { %4804 = vmatprep.subr.bf16.mxu1 %v4803_v14  ;;  %v2112_v28 = vsel %vm2105_vm8, 1.0, %v5169_v40  ;;  %vm7295_vm3 = vmmov %vm7291_vm0  ;;  %vm2101_vm8 = vcmp.eq.s32.totalorder %v6204_v35, %v6582_v21 }
 0x16f   :  { %v4915_v41 = vpack.c.bf16 %v2113_v33, %v2112_v28 }
 0x171   :  { %4806 = vmatpush3.bf16.msra.mxu1 %v4803_v14 }
 0x172   :  { %4225 = vmatprep.subr.msk.mxu1 %vm969_vm5, %v1496_v15 }
 0x174   :  { %v4077_v7 = vpop.f32.mrb[0].mxu0 }
 0x175   :  { %4226 = vmatpush3.msk.msra.mxu1 %vm969_vm5, %v1496_v15  ;;  %v1039_v8 = vpop.f32.mrb[1].mxu0 }
 0x176   :  { %4228 = vmatmul.mubr.msk.f32.vlgmr.msra.gmra.mrb[20].mxu1 %vm7286_vm1, %v6247_v42  ;;  %4840 = vmatprep.subr.bf16.mxu1 %v4839_v20  ;;  %vm7294_vm1 = vmmov %vm7291_vm0  ;;  %v4763_v9 = vpack.c.bf16 %v4077_v7, %v1039_v8  ;;  %v1119_v7 = vld [vmem:[%s7237_s1 + $0x8] sm:$0xff] }
 0x177   :  { %4842 = vmatpush3.bf16.msra.mxu1 %v4839_v20  ;;  %4230 = vmatprep.mubr.msk.f32.mxu1 %vm7287_vm4, %v6252_v43  ;;  %vm7296_vm4 = vmmov %vm7291_vm0 }
 0x178   :  { %4844 = vmatprep.subr.bf16.mxu1 %v4843_v22  ;;  %v4080_v11 = vpop.f32.mrb[2].mxu0  ;;  %4764 = vmatprep.subr.bf16.mxu0 %v4763_v9 }
 0x179   :  { %v1049_v13 = vpop.f32.mrb[3].mxu0  ;;  %4766 = vmatpush3.bf16.msra.mxu0 %v4763_v9 }
 0x17a   :  { %4231 = vmatmul.mubr.msk.f32.gmra.mrb[22].mxu1 %vm7288_vm12, %v6262_v44  ;;  %vm2107_vm12 = vmand %vm2100_vm6, %vm6461_vm11  ;;  %vm2362_vm6 = vcmp.eq.s32.totalorder %v6187_v30, %v6644_v57  ;;  %v4767_v14 = vpack.c.bf16 %v4080_v11, %v1049_v13 }
 0x17b   :  { %4233 = vmatprep.mubr.msk.f32.mxu1 %vm7289_vm9, %v6267_v45  ;;  %4846 = vmatpush3.bf16.msra.mxu1 %v4843_v22  ;;  %vm2108_vm9 = vmand %vm2101_vm8, %vm6461_vm11  ;;  %v2114_v59 = vsel %vm2107_vm12, 1.0, %v5169_v40  ;;  %vm2363_vm8 = vcmp.eq.s32.totalorder %v6196_v32, %v6644_v57  ;;  %vm2104_vm12 = vcmp.eq.s32.totalorder %v6221_v38, %v6582_v21 }
 0x17c   :  { %4848 = vmatprep.subr.bf16.mxu1 %v4847_v26  ;;  %v2115_v60 = vsel %vm2108_vm9, 1.0, %v5169_v40  ;;  %v4083_v17 = vpop.f32.mrb[4].mxu0  ;;  %4768 = vmatprep.subr.bf16.mxu0 %v4767_v14 }
 0x17d   :  { %v4919_v61 = vpack.c.bf16 %v2115_v60, %v2114_v59  ;;  %v1059_v18 = vpop.f32.mrb[5].mxu0  ;;  %4770 = vmatpush3.bf16.msra.mxu0 %v4767_v14 }
 0x17e   :  { %4234 = vmatmul.mubr.msk.f32.gmra.mrb[24].mxu1 %vm7290_vm14, %v6276_v46  ;;  %vm2102_vm14 = vcmp.eq.s32.totalorder %v6209_v36, %v6582_v21  ;;  %v4771_v20 = vpack.c.bf16 %v4083_v17, %v1059_v18 }
 0x17f   :  { %4236 = vmatprep.mubr.msk.f32.mxu1 %vm7291_vm0, %v6281_v47  ;;  %4850 = vmatpush3.bf16.msra.mxu1 %v4847_v26 }
 0x180   :  { %4301 = vmatprep.subr.msk.mxu1 %vm969_vm5, %v1760_v27  ;;  %v4086_v25 = vpop.f32.mrb[6].mxu0  ;;  %4772 = vmatprep.subr.bf16.mxu0 %v4771_v20 }
 0x181   :  { %4774 = vmatpush3.bf16.msra.mxu0 %v4771_v20 }
 0x182   :  { %4237 = vmatmul.mubr.msk.f32.gmra.mrb[26].mxu1 %vm7292_vm15, %v6290_v48  ;;  %vm2103_vm15 = vcmp.eq.s32.totalorder %v6215_v37, %v6582_v21 }
 0x183   :  { %4239 = vmatprep.mubr.msk.f32.mxu1 %vm7293_vm2, %v6295_v49  ;;  %4302 = vmatpush3.msk.msra.mxu1 %vm969_vm5, %v1760_v27  ;;  %vm2109_vm2 = vmand %vm2102_vm14, %vm6461_vm11  ;;  %v1069_v27 = vpop.f32.mrb[7].mxu0 }
 0x184   :  { %4916 = vmatprep.subr.bf16.mxu1 %v4915_v41  ;;  %v2116_v62 = vsel %vm2109_vm2, 1.0, %v5169_v40  ;;  %vm7302_vm14 = vmmov %vm7291_vm0  ;;  %v4775_v33 = vpack.c.bf16 %v4086_v25, %v1069_v27 }
 0x186   :  { %4240 = vmatmul.mubr.msk.f32.gmra.mrb[28].mxu1 %vm7294_vm1, %v6304_v50  ;;  %vm7299_vm1 = vmmov %vm7291_vm0  ;;  %4776 = vmatprep.subr.bf16.mxu0 %v4775_v33 }
 0x187   :  { %4242 = vmatprep.mubr.msk.f32.mxu1 %vm7295_vm3, %v6309_v51  ;;  %vm2110_vm3 = vmand %vm2103_vm15, %vm6461_vm11  ;;  %4778 = vmatpush3.bf16.msra.mxu0 %v4775_v33 }
 0x188   :  { %v2117_v63 = vsel %vm2110_vm3, 1.0, %v5169_v40  ;;  %vm2111_vm15 = vmand %vm2104_vm12, %vm6461_vm11 }
 0x189   :  { %v4923_v0 = vpack.c.bf16 %v2117_v63, %v2116_v62  ;;  %v2118_v1 = vsel %vm2111_vm15, 1.0, %v5169_v40  ;;  %vm7306_vm12 = vmmov %vm7299_vm1  ;;  %vm2365_vm15 = vcmp.eq.s32.totalorder %v6204_v35, %v6644_v57 }
 0x18a   :  { %4243 = vmatmul.mubr.msk.f32.gmra.mrb[30].mxu1 %vm7296_vm4, %v6318_v52  ;;  %vm7300_vm4 = vmmov %vm7291_vm0 }
 0x18b   :  { %4245 = vmatprep.mubr.msk.f32.mxu1 %vm7297_vm7, %v6323_v53  ;;  %vm2369_vm7 = vcmp.lt.s32.totalorder %v6189_v31, 42 }
 0x18c   :  { %vm2370_vm9 = vmand %vm2362_vm6, %vm2369_vm7 }
 0x18d   :  { %vm2377_vm2 = vmand %vm2370_vm9, %vm6365_vm10 }
 0x18e   :  { %4246 = vmatmul.mubr.msk.f32.gmra.mrb[32].mxu1 %vm7298_vm13, %v6332_v54  ;;  %vm7301_vm13 = vmmov %vm7291_vm0  ;;  %v2384_v2 = vsel %vm2377_vm2, 1.0, %v5169_v40 }
 0x18f   :  { %4248 = vmatprep.mubr.msk.f32.mxu1 %vm7291_vm0, %v6337_v55  ;;  %vm2371_vm0 = vmand %vm2363_vm8, %vm2369_vm7 }
 0x190   :  { %vm2378_vm3 = vmand %vm2371_vm0, %vm6365_vm10 }
 0x191   :  { %v2385_v3 = vsel %vm2378_vm3, 1.0, %v5169_v40  ;;  %vm7304_vm6 = vmmov %vm7299_vm1 }
 0x192   :  { %4249 = vmatmul.mubr.msk.f32.gmra.mrb[34].mxu1 %vm7299_vm1, %v6346_v56  ;;  %vm7305_vm8 = vmmov %vm7299_vm1  ;;  %v4959_v4 = vpack.c.bf16 %v2385_v3, %v2384_v2 }
 0x193   :  { %4303 = vmatprep.mubr.msk.f32.mxu1 %vm7300_vm4, %v6185_v29  ;;  %vm7303_vm4 = vmmov %vm7299_vm1 }
 0x194   :  { %vm7308_vm9 = vmmov %vm7299_vm1 }
 0x195   :  { %vm7309_vm0 = vmmov %vm7299_vm1 }
 0x196   :  { %4304 = vmatmul.mubr.msk.f32.vlgmr.msra.gmra.mrb[36].mxu1 %vm7301_vm13, %v6247_v42  ;;  %vm7307_vm13 = vmmov %vm7299_vm1 }
 0x197   :  { %4306 = vmatprep.mubr.msk.f32.mxu1 %vm7302_vm14, %v6252_v43  ;;  %4918 = vmatpush3.bf16.msra.mxu1 %v4915_v41  ;;  %vm2364_vm14 = vcmp.eq.s32.totalorder %v6201_v34, %v6644_v57  ;;  %vm6714_vm3 = vmand %vm2365_vm15, %vm2369_vm7  ;;  %v4089_v41 = vpop.f32.mrb[8].mxu0 }
 0x198   :  { %4920 = vmatprep.subr.bf16.mxu1 %v4919_v61  ;;  %vm6706_vm2 = vmand %vm2364_vm14, %vm2369_vm7 }
 0x19a   :  { %4307 = vmatmul.mubr.msk.f32.gmra.mrb[38].mxu1 %vm7299_vm1, %v6262_v44  ;;  %vm7312_vm1 = vmmov %vm7309_vm0 }
 0x19b   :  { %4309 = vmatprep.mubr.msk.f32.mxu1 %vm7303_vm4, %v6267_v45  ;;  %4922 = vmatpush3.bf16.msra.mxu1 %v4919_v61  ;;  %vm7315_vm4 = vmmov %vm7309_vm0 }
 0x19c   :  { %4924 = vmatprep.subr.bf16.mxu1 %v4923_v0 }
 0x19e   :  { %4310 = vmatmul.mubr.msk.f32.gmra.mrb[40].mxu1 %vm7304_vm6, %v6276_v46  ;;  %vm2366_vm6 = vcmp.eq.s32.totalorder %v6209_v36, %v6644_v57 }
 0x19f   :  { %4312 = vmatprep.mubr.msk.f32.mxu1 %vm7305_vm8, %v6281_v47  ;;  %4926 = vmatpush3.bf16.msra.mxu1 %v4923_v0  ;;  %vm2379_vm8 = vmand %vm6706_vm2, %vm6365_vm10 }
 0x1a0   :  { %4415 = vmatprep.subr.msk.mxu1 %vm969_vm5, %v2118_v1  ;;  %vm6736_vm14 = vmand %vm2366_vm6, %vm2369_vm7  ;;  %v2386_v15 = vsel %vm2379_vm8, 1.0, %v5169_v40  ;;  %vm2368_vm6 = vcmp.eq.s32.totalorder %v6221_v38, %v6644_v57 }
 0x1a1   :  { %vm2381_vm2 = vmand %vm6736_vm14, %vm6365_vm10 }
 0x1a2   :  { %4313 = vmatmul.mubr.msk.f32.gmra.mrb[42].mxu1 %vm7306_vm12, %v6290_v48  ;;  %vm2367_vm12 = vcmp.eq.s32.totalorder %v6215_v37, %v6644_v57  ;;  %v2388_v21 = vsel %vm2381_vm2, 1.0, %v5169_v40  ;;  %vm7323_vm8 = vmmov %vm7309_vm0  ;;  %vm2635_vm2 = vcmp.eq.s32.totalorder %v6196_v32, %v6769_v24  ;;  %v1079_v57 = vpop.f32.mrb[9].mxu0 }
 0x1a3   :  { %4315 = vmatprep.mubr.msk.f32.mxu1 %vm7307_vm13, %v6295_v49  ;;  %4416 = vmatpush3.msk.msra.mxu1 %vm969_vm5, %v2118_v1  ;;  %vm2380_vm13 = vmand %vm6714_vm3, %vm6365_vm10  ;;  %v4779_v59 = vpack.c.bf16 %v4089_v41, %v1079_v57  ;;  %v4092_v61 = vpop.f32.mrb[10].mxu0 }
 0x1a4   :  { %4960 = vmatprep.subr.bf16.mxu1 %v4959_v4  ;;  %vm6744_vm15 = vmand %vm2367_vm12, %vm2369_vm7  ;;  %v2387_v16 = vsel %vm2380_vm13, 1.0, %v5169_v40  ;;  %v1089_v62 = vpop.f32.mrb[11].mxu0 }
 0x1a5   :  { %vm2382_vm3 = vmand %vm6744_vm15, %vm6365_vm10  ;;  %v4963_v19 = vpack.c.bf16 %v2387_v16, %v2386_v15  ;;  %4780 = vmatprep.subr.bf16.mxu0 %v4779_v59  ;;  %v4783_v63 = vpack.c.bf16 %v4092_v61, %v1089_v62  ;;  %v4095_v0 = vpop.f32.mrb[12].mxu0  ;;  %v6988_v15 = vld [vmem:[%s7236_s0] sm:$0xff] }
 0x1a6   :  { %4316 = vmatmul.mubr.msk.f32.gmra.mrb[44].mxu1 %vm7308_vm9, %v6304_v50  ;;  %vm7316_vm9 = vmmov %vm7309_vm0  ;;  %v2389_v22 = vsel %vm2382_vm3, 1.0, %v5169_v40  ;;  %4782 = vmatpush3.bf16.msra.mxu0 %v4779_v59  ;;  %v1099_v1 = vpop.f32.mrb[13].mxu0 }
 0x1a7   :  { %4318 = vmatprep.mubr.msk.f32.mxu1 %vm7309_vm0, %v6309_v51  ;;  %vm7324_vm12 = vmmov %vm7309_vm0  ;;  %v4967_v28 = vpack.c.bf16 %v2389_v22, %v2388_v21  ;;  %4784 = vmatprep.subr.bf16.mxu0 %v4783_v63  ;;  %v4787_v2 = vpack.c.bf16 %v4095_v0, %v1099_v1  ;;  %v4098_v3 = vpop.f32.mrb[14].mxu0  ;;  %v3581_v1 = vld [vmem:[%s7237_s1 + $0x60] sm:$0xff] }
 0x1a8   :  { %vm6775_vm13 = vmand %vm2368_vm6, %vm2369_vm7 }
 0x1a9   :  { %vm2383_vm14 = vmand %vm6775_vm13, %vm6365_vm10 }
 0x1aa   :  { %4319 = vmatmul.mubr.msk.f32.gmra.mrb[46].mxu1 %vm7312_vm1, %v6318_v52  ;;  %vm7321_vm1 = vmmov %vm7309_vm0  ;;  %v2390_v58 = vsel %vm2383_vm14, 1.0, %v5169_v40  ;;  %4786 = vmatpush3.bf16.msra.mxu0 %v4783_v63  ;;  %v3563_v63 = vld [vmem:[%s7237_s1 + $0x58] sm:$0xff] }
 0x1ab   :  { %4321 = vmatprep.mubr.msk.f32.mxu1 %vm7315_vm4, %v6323_v53  ;;  %vm7322_vm4 = vmmov %vm7309_vm0  ;;  %4788 = vmatprep.subr.bf16.mxu0 %v4787_v2 }
 0x1ac   :  { %vm7328_vm15 = vmmov %vm7321_vm1 }
 0x1ad   :  { %vm6802_vm3 = vmand %vm2635_vm2, %vm2369_vm7  ;;  %vm2637_vm2 = vcmp.eq.s32.totalorder %v6204_v35, %v6769_v24 }
 0x1ae   :  { %4322 = vmatmul.mubr.msk.f32.gmra.mrb[48].mxu1 %vm7316_vm9, %v6332_v54  ;;  %vm7327_vm9 = vmmov %vm7309_vm0  ;;  %4790 = vmatpush3.bf16.msra.mxu0 %v4787_v2 }
 0x1af   :  { %4324 = vmatprep.mubr.msk.f32.mxu1 %vm7309_vm0, %v6337_v55  ;;  %vm2634_vm0 = vcmp.eq.s32.totalorder %v6187_v30, %v6769_v24  ;;  %vm7336_vm13 = vmmov %vm7321_vm1  ;;  %v3562_v30 = vld [vmem:[%s7237_s1 + $0x50] sm:$0xff] }
 0x1b0   :  { %vm6794_vm10 = vmand %vm2634_vm0, %vm2369_vm7 }
 0x1b1   :  { %vm5003_vm6 = vmpackc.low %vm6802_vm3, %vm6794_vm10 }
 0x1b2   :  { %4325 = vmatmul.mubr.msk.f32.gmra.mrb[50].mxu1 %vm7321_vm1, %v6346_v56  ;;  %vm7338_vm14 = vmmov %vm7321_vm1 }
 0x1b3   :  { %4417 = vmatprep.mubr.msk.f32.mxu1 %vm7322_vm4, %v6185_v29  ;;  %vm7333_vm4 = vmmov %vm7321_vm1 }
 0x1b4   :  { %vm7339_vm0 = vmmov %vm7321_vm1 }
 0x1b6   :  { %4418 = vmatmul.mubr.msk.f32.vlgmr.msra.gmra.mrb[52].mxu1 %vm7323_vm8, %v6247_v42  ;;  %vm7334_vm8 = vmmov %vm7321_vm1 }
 0x1b7   :  { %4420 = vmatprep.mubr.msk.f32.mxu1 %vm7324_vm12, %v6252_v43  ;;  %4962 = vmatpush3.bf16.msra.mxu1 %v4959_v4  ;;  %vm7335_vm12 = vmmov %vm7321_vm1  ;;  %v1109_v4 = vpop.f32.mrb[15].mxu0 }
 0x1b8   :  { %4964 = vmatprep.subr.bf16.mxu1 %v4963_v19  ;;  %v4791_v5 = vpack.c.bf16 %v4098_v3, %v1109_v4 }
 0x1ba   :  { %4421 = vmatmul.mubr.msk.f32.gmra.mrb[54].mxu1 %vm7327_vm9, %v6262_v44  ;;  %vm7337_vm9 = vmmov %vm7321_vm1  ;;  %4792 = vmatprep.subr.bf16.mxu0 %v4791_v5 }
 0x1bb   :  { %4423 = vmatprep.mubr.msk.f32.mxu1 %vm7328_vm15, %v6267_v45  ;;  %4966 = vmatpush3.bf16.msra.mxu1 %v4963_v19  ;;  %vm2636_vm15 = vcmp.eq.s32.totalorder %v6201_v34, %v6769_v24 }
 0x1bc   :  { %4968 = vmatprep.subr.bf16.mxu1 %v4967_v28  ;;  %4794 = vmatpush3.bf16.msra.mxu0 %v4791_v5 }
 0x1be   :  { %4424 = vmatmul.mubr.msk.f32.gmra.mrb[56].mxu1 %vm7321_vm1, %v6276_v46  ;;  %vm7340_vm1 = vmmov %vm7339_vm0 }
 0x1bf   :  { %4426 = vmatprep.mubr.msk.f32.mxu1 %vm7333_vm4, %v6281_v47  ;;  %4970 = vmatpush3.bf16.msra.mxu1 %v4967_v28  ;;  %vm7341_vm4 = vmmov %vm7339_vm0 }
 0x1c0   :  { %4491 = vmatprep.subr.msk.mxu1 %vm969_vm5, %v2390_v58  ;;  %4208 = vmatmul.mubr.f32.vlgmr.msra.gmra.mrb[16].mxu0 %v1119_v7 }
 0x1c2   :  { %4427 = vmatmul.mubr.msk.f32.gmra.mrb[58].mxu1 %vm7334_vm8, %v6290_v48  ;;  %vm6848_vm8 = vmand %vm2636_vm15, %vm2369_vm7 }
 0x1c3   :  { %4429 = vmatprep.mubr.msk.f32.mxu1 %vm7335_vm12, %v6295_v49  ;;  %4492 = vmatpush3.msk.msra.mxu1 %vm969_vm5, %v2390_v58  ;;  %vm6854_vm12 = vmand %vm2637_vm2, %vm2369_vm7  ;;  %v3561_v58 = vld [vmem:[%s7237_s1 + $0x48] sm:$0xff] }
 0x1c4   :  { %5004 = vmatprep.subr.msk.bf16.mxu1 %vm5003_vm6, %v5168_v39  ;;  %vm5007_vm15 = vmpackc.low %vm6854_vm12, %vm6848_vm8  ;;  %vm2640_vm8 = vcmp.eq.s32.totalorder %v6221_v38, %v6769_v24 }
 0x1c5   :  { %vm7352_vm12 = vmmov %vm7339_vm0 }
 0x1c6   :  { %4430 = vmatmul.mubr.msk.f32.gmra.mrb[60].mxu1 %vm7336_vm13, %v6304_v50  ;;  %vm2638_vm13 = vcmp.eq.s32.totalorder %v6209_v36, %v6769_v24 }
 0x1c7   :  { %4432 = vmatprep.mubr.msk.f32.mxu1 %vm7337_vm9, %v6309_v51  ;;  %vm7346_vm9 = vmmov %vm7339_vm0 }
 0x1c8   :  { %vm6875_vm2 = vmand %vm2638_vm13, %vm2369_vm7 }
 0x1ca   :  { %4433 = vmatmul.mubr.msk.f32.gmra.mrb[62].mxu1 %vm7338_vm14, %v6318_v52  ;;  %vm2639_vm14 = vcmp.eq.s32.totalorder %v6215_v37, %v6769_v24 }
 0x1cb   :  { %4435 = vmatprep.mubr.msk.f32.mxu1 %vm7339_vm0, %v6323_v53 }
 0x1ce   :  { %4436 = vmatmul.mubr.msk.f32.gmra.mrb[64].mxu1 %vm7340_vm1, %v6332_v54  ;;  %vm2899_vm1 = vcmp.eq.s32.totalorder %v6196_v32, %v6859_v10 }
 0x1cf   :  { %4438 = vmatprep.mubr.msk.f32.mxu1 %vm7341_vm4, %v6337_v55  ;;  %vm6883_vm4 = vmand %vm2639_vm14, %vm2369_vm7 }
 0x1d0   :  { %vm2906_vm13 = vmand %vm2899_vm1, %vm2369_vm7 }
 0x1d1   :  { %vm5011_vm14 = vmpackc.low %vm6883_vm4, %vm6875_vm2 }
 0x1d2   :  { %4439 = vmatmul.mubr.msk.f32.gmra.mrb[66].mxu1 %vm7346_vm9, %v6346_v56  ;;  %vm7351_vm9 = vmmov %vm7339_vm0 }
 0x1d3   :  { %4493 = vmatprep.mubr.msk.f32.mxu1 %vm7339_vm0, %v6185_v29  ;;  %vm2647_vm0 = vmand %vm2640_vm8, %vm2369_vm7  ;;  %vm2900_vm8 = vcmp.eq.s32.totalorder %v6201_v34, %v6859_v10  ;;  %v1121_v34 = vld [vmem:[%s7237_s1 + $0x18] sm:$0xff] }
 0x1d4   :  { %vm2913_vm10 = vmand %vm2906_vm13, %vm6461_vm11  ;;  %v2654_v29 = vsel %vm2647_vm0, 1.0, %v5169_v40  ;;  %vm2901_vm13 = vcmp.eq.s32.totalorder %v6204_v35, %v6859_v10  ;;  %v3560_v35 = vld [vmem:[%s7237_s1 + $0x40] sm:$0xff] }
 0x1d5   :  { %vm7353_vm3 = vmmov %vm7351_vm9  ;;  %v2920_v32 = vsel %vm2913_vm10, 1.0, %v5169_v40 }
 0x1d6   :  { %4494 = vmatmul.mubr.msk.f32.vlgmr.msra.gmra.mrb[68].mxu1 %vm7351_vm9, %v6247_v42  ;;  %vm7355_vm2 = vmmov %vm7353_vm3  ;;  %v5047_v13 = vpack.c.bf16 %v2920_v32, %v5169_v40 }
 0x1d7   :  { %4496 = vmatprep.mubr.msk.f32.mxu1 %vm7352_vm12, %v6252_v43  ;;  %5006 = vmatpush3.bf16.msk.msra.mxu1 %vm5003_vm6, %v5168_v39  ;;  %vm7354_vm6 = vmmov %vm7353_vm3 }
 0x1d8   :  { %5008 = vmatprep.subr.msk.bf16.mxu1 %vm5007_vm15, %v5168_v39  ;;  %vm7357_vm1 = vmmov %vm7355_vm2 }
 0x1d9   :  { %vm7358_vm4 = vmmov %vm7357_vm1 }
 0x1da   :  { %4497 = vmatmul.mubr.msk.f32.gmra.mrb[70].mxu1 %vm7351_vm9, %v6262_v44  ;;  %vm7359_vm12 = vmmov %vm7357_vm1 }
 0x1db   :  { %4499 = vmatprep.mubr.msk.f32.mxu1 %vm7353_vm3, %v6267_v45  ;;  %5010 = vmatpush3.bf16.msk.msra.mxu1 %vm5007_vm15, %v5168_v39  ;;  %vm7356_vm15 = vmmov %vm7355_vm2  ;;  %vm2902_vm3 = vcmp.eq.s32.totalorder %v6209_v36, %v6859_v10 }
 0x1dc   :  { %5012 = vmatprep.subr.msk.bf16.mxu1 %vm5011_vm14, %v5168_v39  ;;  %vm7362_vm0 = vmmov %vm7357_vm1 }
 0x1dd   :  { %vm2908_vm9 = vmand %vm2901_vm13, %vm2369_vm7 }
 0x1de   :  { %4500 = vmatmul.mubr.msk.f32.gmra.mrb[72].mxu1 %vm7354_vm6, %v6276_v46  ;;  %vm7363_vm10 = vmmov %vm7362_vm0 }
 0x1df   :  { %4502 = vmatprep.mubr.msk.f32.mxu1 %vm7355_vm2, %v6281_v47  ;;  %5014 = vmatpush3.bf16.msk.msra.mxu1 %vm5011_vm14, %v5168_v39  ;;  %v1120_v39 = vld [vmem:[%s7237_s1 + $0x10] sm:$0xff]  ;;  %vm6943_vm14 = vmand %vm2900_vm8, %vm2369_vm7  ;;  %vm2903_vm2 = vcmp.eq.s32.totalorder %v6215_v37, %v6859_v10 }
 0x1e0   :  { %4567 = vmatprep.subr.msk.mxu1 %vm969_vm5, %v2654_v29  ;;  %4210 = vmatprep.mubr.f32.mxu0 %v1120_v39  ;;  %vm2914_vm6 = vmand %vm6943_vm14, %vm6461_vm11 }
 0x1e1   :  { %4211 = vmatmul.mubr.f32.gmra.mrb[18].mxu0 %v1121_v34  ;;  %vm7365_vm8 = vmmov %vm7362_vm0  ;;  %v2921_v36 = vsel %vm2914_vm6, 1.0, %v5169_v40 }
 0x1e2   :  { %4503 = vmatmul.mubr.msk.f32.gmra.mrb[74].mxu1 %vm7356_vm15, %v6290_v48  ;;  %4283 = vmatprep.mubr.f32.mxu0 %v3560_v35  ;;  %vm2915_vm15 = vmand %vm2908_vm9, %vm6461_vm11 }
 0x1e3   :  { %4505 = vmatprep.mubr.msk.f32.mxu1 %vm7357_vm1, %v6295_v49  ;;  %4568 = vmatpush3.msk.msra.mxu1 %vm969_vm5, %v2654_v29  ;;  %vm7364_vm1 = vmmov %vm7362_vm0  ;;  %v2922_v37 = vsel %vm2915_vm15, 1.0, %v5169_v40 }
 0x1e4   :  { %5048 = vmatprep.subr.bf16.mxu1 %v5047_v13  ;;  %vm7366_vm14 = vmmov %vm7362_vm0  ;;  %v5051_v16 = vpack.c.bf16 %v2922_v37, %v2921_v36  ;;  %v5127_v36 = vld [vmem:[%s7236_s0 + $0x8] sm:$0xff] }
 0x1e5   :  { %vm7367_vm9 = vmmov %vm7364_vm1  ;;  %v4883_v37 = vpack.c.bf16 %v5127_v36, %v6988_v15 }
 0x1e6   :  { %4506 = vmatmul.mubr.msk.f32.gmra.mrb[76].mxu1 %vm7358_vm4, %v6304_v50  ;;  %vm2909_vm4 = vmand %vm2902_vm3, %vm2369_vm7 }
 0x1e7   :  { %4508 = vmatprep.mubr.msk.f32.mxu1 %vm7359_vm12, %v6309_v51  ;;  %vm2910_vm12 = vmand %vm2903_vm2, %vm2369_vm7 }
 0x1e8   :  { %vm2916_vm13 = vmand %vm2909_vm4, %vm6461_vm11 }
 0x1e9   :  { %v2923_v17 = vsel %vm2916_vm13, 1.0, %v5169_v40  ;;  %vm7368_vm3 = vmmov %vm7364_vm1 }
 0x1ea   :  { %4509 = vmatmul.mubr.msk.f32.gmra.mrb[78].mxu1 %vm7362_vm0, %v6318_v52  ;;  %vm2917_vm0 = vmand %vm2910_vm12, %vm6461_vm11 }
 0x1eb   :  { %4511 = vmatprep.mubr.msk.f32.mxu1 %vm7363_vm10, %v6323_v53  ;;  %vm2904_vm10 = vcmp.eq.s32.totalorder %v6221_v38, %v6859_v10  ;;  %v2924_v18 = vsel %vm2917_vm0, 1.0, %v5169_v40  ;;  %vm7369_vm6 = vmmov %vm7364_vm1 }
 0x1ec   :  { %vm2911_vm2 = vmand %vm2904_vm10, %vm2369_vm7  ;;  %v5055_v19 = vpack.c.bf16 %v2924_v18, %v2923_v17  ;;  %v3582_v18 = vld [vmem:[%s7237_s1 + $0x68] sm:$0xff] }
 0x1ed   :  { %vm7370_vm15 = vmmov %vm7364_vm1 }
 0x1ee   :  { %4512 = vmatmul.mubr.msk.f32.gmra.mrb[80].mxu1 %vm7364_vm1, %v6332_v54  ;;  %vm2918_vm1 = vmand %vm2911_vm2, %vm6461_vm11 }
 0x1ef   :  { %4514 = vmatprep.mubr.msk.f32.mxu1 %vm7365_vm8, %v6337_v55  ;;  %vm7371_vm4 = vmmov %vm7368_vm3  ;;  %v2925_v38 = vsel %vm2918_vm1, 1.0, %v5169_v40 }
 0x1f0   :  { %vm7372_vm8 = vmmov %vm7368_vm3 }
 0x1f1   :  { %vm7373_vm7 = vmmov %vm7368_vm3 }
 0x1f2   :  { %4515 = vmatmul.mubr.msk.f32.gmra.mrb[82].mxu1 %vm7366_vm14, %v6346_v56  ;;  %vm7374_vm12 = vmmov %vm7368_vm3 }
 0x1f3   :  { %4569 = vmatprep.mubr.msk.f32.mxu1 %vm7367_vm9, %v6988_v15  ;;  %vm7375_vm11 = vmmov %vm7368_vm3 }
 0x1f4   :  { %vm7376_vm13 = vmmov %vm7368_vm3 }
 0x1f5   :  { %vm7377_vm14 = vmmov %vm7368_vm3 }
 0x1f6   :  { %4570 = vmatmul.mubr.msk.f32.vlgmr.msra.gmra.mrb[84].mxu1 %vm7368_vm3, %v6247_v42  ;;  %vm7378_vm0 = vmmov %vm7368_vm3 }
 0x1f7   :  { %4572 = vmatprep.mubr.msk.f32.mxu1 %vm7369_vm6, %v6252_v43  ;;  %5050 = vmatpush3.bf16.msra.mxu1 %v5047_v13  ;;  %vm7379_vm9 = vmmov %vm7378_vm0 }
 0x1f8   :  { %5052 = vmatprep.subr.bf16.mxu1 %v5051_v16  ;;  %vm7380_vm10 = vmmov %vm7378_vm0 }
 0x1f9   :  { %vm7381_vm3 = vmmov %vm7378_vm0 }
 0x1fa   :  { %4573 = vmatmul.mubr.msk.f32.gmra.mrb[86].mxu1 %vm7370_vm15, %v6262_v44  ;;  %vm7383_vm6 = vmmov %vm7378_vm0 }
 0x1fb   :  { %4575 = vmatprep.mubr.msk.f32.mxu1 %vm7371_vm4, %v6267_v45  ;;  %5054 = vmatpush3.bf16.msra.mxu1 %v5051_v16  ;;  %vm7384_vm2 = vmmov %vm7378_vm0 }
 0x1fc   :  { %5056 = vmatprep.subr.bf16.mxu1 %v5055_v19  ;;  %vm7385_vm15 = vmmov %vm7378_vm0 }
 0x1fd   :  { %vm7386_vm1 = vmmov %vm7378_vm0 }
 0x1fe   :  { %4576 = vmatmul.mubr.msk.f32.gmra.mrb[88].mxu1 %vm7372_vm8, %v6276_v46  ;;  %vm7387_vm4 = vmmov %vm7378_vm0 }
 0x1ff   :  { %4578 = vmatprep.mubr.msk.f32.mxu1 %vm7373_vm7, %v6281_v47  ;;  %5058 = vmatpush3.bf16.msra.mxu1 %v5055_v19  ;;  %vm7388_vm8 = vmmov %vm7378_vm0 }
 0x200   :  { %4643 = vmatprep.subr.msk.mxu1 %vm969_vm5, %v2925_v38  ;;  %vm7389_vm7 = vmmov %vm7378_vm0 }
 0x202   :  { %4579 = vmatmul.mubr.msk.f32.gmra.mrb[90].mxu1 %vm7374_vm12, %v6290_v48  ;;  %vm7390_vm12 = vmmov %vm7378_vm0 }
 0x203   :  { %4581 = vmatprep.mubr.msk.f32.mxu1 %vm7375_vm11, %v6295_v49  ;;  %4644 = vmatpush3.msk.msra.mxu1 %vm969_vm5, %v2925_v38  ;;  %vm7382_vm5 = vmmov %vm7378_vm0  ;;  %v5128_v38 = vld [vmem:[%s7236_s0 + $0x10] sm:$0xff] }
 0x204   :  { %vm7391_vm11 = vmmov %vm7378_vm0 }
 0x206   :  { %4582 = vmatmul.mubr.msk.f32.gmra.mrb[92].mxu1 %vm7376_vm13, %v6304_v50  ;;  %vm7392_vm13 = vmmov %vm7378_vm0 }
 0x207   :  { %4584 = vmatprep.mubr.msk.f32.mxu1 %vm7377_vm14, %v6309_v51  ;;  %vm7393_vm14 = vmmov %vm7378_vm0 }
 0x20a   :  { %4585 = vmatmul.mubr.msk.f32.gmra.mrb[94].mxu1 %vm7378_vm0, %v6318_v52 }
 0x20b   :  { %4587 = vmatprep.mubr.msk.f32.mxu1 %vm7379_vm9, %v6323_v53  ;;  %vm7394_vm9 = vmmov %vm7378_vm0 }
 0x20e   :  { %4588 = vmatmul.mubr.msk.f32.gmra.mrb[96].mxu1 %vm7380_vm10, %v6332_v54  ;;  %vm7395_vm10 = vmmov %vm7378_vm0 }
 0x20f   :  { %4590 = vmatprep.mubr.msk.f32.mxu1 %vm7381_vm3, %v6337_v55  ;;  %vm7396_vm3 = vmmov %vm7378_vm0 }
 0x212   :  { %4591 = vmatmul.mubr.msk.f32.gmra.mrb[98].mxu1 %vm7382_vm5, %v6346_v56  ;;  %vm7397_vm5 = vmmov %vm7378_vm0 }
 0x213   :  { %4645 = vmatprep.mubr.msk.f32.mxu1 %vm7383_vm6, %v6988_v15  ;;  %vm7398_vm6 = vmmov %vm7378_vm0 }
 0x216   :  { %4646 = vmatmul.mubr.msk.f32.vlgmr.msra.gmra.mrb[100].mxu1 %vm7384_vm2, %v6247_v42  ;;  %vm7399_vm2 = vmmov %vm7378_vm0 }
 0x217   :  { %4648 = vmatprep.mubr.msk.f32.mxu1 %vm7385_vm15, %v6252_v43  ;;  %vm7400_vm15 = vmmov %vm7378_vm0 }
 0x21a   :  { %4649 = vmatmul.mubr.msk.f32.gmra.mrb[102].mxu1 %vm7386_vm1, %v6262_v44  ;;  %vm7401_vm1 = vmmov %vm7378_vm0 }
 0x21b   :  { %4651 = vmatprep.mubr.msk.f32.mxu1 %vm7387_vm4, %v6267_v45 }
 0x21e   :  { %4652 = vmatmul.mubr.msk.f32.gmra.mrb[104].mxu1 %vm7388_vm8, %v6276_v46 }
 0x21f   :  { %4654 = vmatprep.mubr.msk.f32.mxu1 %vm7389_vm7, %v6281_v47 }
 0x222   :  { %4655 = vmatmul.mubr.msk.f32.gmra.mrb[106].mxu1 %vm7390_vm12, %v6290_v48 }
 0x223   :  { %4657 = vmatprep.mubr.msk.f32.mxu1 %vm7391_vm11, %v6295_v49 }
 0x226   :  { %4658 = vmatmul.mubr.msk.f32.gmra.mrb[108].mxu1 %vm7392_vm13, %v6304_v50 }
 0x227   :  { %4660 = vmatprep.mubr.msk.f32.mxu1 %vm7393_vm14, %v6309_v51 }
 0x22a   :  { %4661 = vmatmul.mubr.msk.f32.gmra.mrb[110].mxu1 %vm7378_vm0, %v6318_v52 }
 0x22b   :  { %4663 = vmatprep.mubr.msk.f32.mxu1 %vm7394_vm9, %v6323_v53 }
 0x22e   :  { %4664 = vmatmul.mubr.msk.f32.gmra.mrb[112].mxu1 %vm7395_vm10, %v6332_v54 }
 0x22f   :  { %4666 = vmatprep.mubr.msk.f32.mxu1 %vm7396_vm3, %v6337_v55 }
 0x232   :  { %4667 = vmatmul.mubr.msk.f32.gmra.mrb[114].mxu1 %vm7397_vm5, %v6346_v56 }
 0x23b   :  { %v7065_v31 = vpop.f32.mrb[16].mxu1 }
 0x23c   :  { %v7067_v40 = vpop.f32.mrb[17].mxu1 }
 0x23f   :  { %v7069_v42 = vpop.f32.mrb[18].mxu1 }
 0x240   :  { %v7071_v43 = vpop.f32.mrb[19].mxu1 }
 0x249   :  { %v4229_v44 = vpop.f32.mrb[20].mxu1 }
 0x24a   :  { %v1566_v45 = vpop.f32.mrb[21].mxu1 }
 0x24b   :  { %v4807_v46 = vpack.c.bf16 %v4229_v44, %v1566_v45  ;;  %v5129_v44 = vld [vmem:[%s7236_s0 + $0x18] sm:$0xff]  ;;  %v3583_v45 = vld [vmem:[%s7237_s1 + $0x70] sm:$0xff] }
 0x24c   :  { %v4887_v15 = vpack.c.bf16 %v5129_v44, %v5128_v38 }
 0x24d   :  { %v4232_v47 = vpop.f32.mrb[22].mxu1  ;;  %4808 = vmatprep.subr.bf16.mxu0 %v4807_v46 }
 0x24e   :  { %v1576_v48 = vpop.f32.mrb[23].mxu1  ;;  %4810 = vmatpush3.bf16.msra.mxu0 %v4807_v46  ;;  %v3675_v46 = vld [vmem:[%s7237_s1 + $0x100] sm:$0xff] }
 0x24f   :  { %v4811_v49 = vpack.c.bf16 %v4232_v47, %v1576_v48  ;;  %4701 = vmatprep.mubr.f32.mxu1 %v3675_v46 }
 0x251   :  { %v4235_v50 = vpop.f32.mrb[24].mxu1  ;;  %4812 = vmatprep.subr.bf16.mxu0 %v4811_v49 }
 0x252   :  { %v1586_v51 = vpop.f32.mrb[25].mxu1  ;;  %4814 = vmatpush3.bf16.msra.mxu0 %v4811_v49  ;;  %v3584_v49 = vld [vmem:[%s7237_s1 + $0x78] sm:$0xff] }
 0x253   :  { %v4815_v52 = vpack.c.bf16 %v4235_v50, %v1586_v51  ;;  %v5130_v51 = vld [vmem:[%s7236_s0 + $0x20] sm:$0xff] }
 0x255   :  { %v4238_v53 = vpop.f32.mrb[26].mxu1  ;;  %4816 = vmatprep.subr.bf16.mxu0 %v4815_v52 }
 0x256   :  { %v1596_v54 = vpop.f32.mrb[27].mxu1  ;;  %4818 = vmatpush3.bf16.msra.mxu0 %v4815_v52  ;;  %v5131_v52 = vld [vmem:[%s7236_s0 + $0x28] sm:$0xff] }
 0x257   :  { %v4819_v55 = vpack.c.bf16 %v4238_v53, %v1596_v54  ;;  %v4891_v53 = vpack.c.bf16 %v5131_v52, %v5130_v51  ;;  %v3585_v54 = vld [vmem:[%s7237_s1 + $0x80] sm:$0xff] }
 0x259   :  { %v4241_v56 = vpop.f32.mrb[28].mxu1  ;;  %4820 = vmatprep.subr.bf16.mxu0 %v4819_v55 }
 0x25a   :  { %v1606_v23 = vpop.f32.mrb[29].mxu1  ;;  %4822 = vmatpush3.bf16.msra.mxu0 %v4819_v55 }
 0x25b   :  { %v4823_v20 = vpack.c.bf16 %v4241_v56, %v1606_v23 }
 0x25d   :  { %v4244_v21 = vpop.f32.mrb[30].mxu1  ;;  %4824 = vmatprep.subr.bf16.mxu0 %v4823_v20 }
 0x25e   :  { %v1616_v22 = vpop.f32.mrb[31].mxu1  ;;  %4826 = vmatpush3.bf16.msra.mxu0 %v4823_v20  ;;  %v5132_v20 = vld [vmem:[%s7236_s0 + $0x30] sm:$0xff] }
 0x25f   :  { %v4827_v24 = vpack.c.bf16 %v4244_v21, %v1616_v22  ;;  %v5133_v21 = vld [vmem:[%s7236_s0 + $0x38] sm:$0xff] }
 0x260   :  { %v4895_v22 = vpack.c.bf16 %v5133_v21, %v5132_v20  ;;  %v3607_v20 = vld [vmem:[%s7237_s1 + $0xa8] sm:$0xff] }
 0x261   :  { %v4247_v25 = vpop.f32.mrb[32].mxu1  ;;  %4828 = vmatprep.subr.bf16.mxu0 %v4827_v24 }
 0x262   :  { %v1626_v26 = vpop.f32.mrb[33].mxu1  ;;  %4830 = vmatpush3.bf16.msra.mxu0 %v4827_v24 }
 0x263   :  { %v4831_v27 = vpack.c.bf16 %v4247_v25, %v1626_v26 }
 0x265   :  { %v4250_v28 = vpop.f32.mrb[34].mxu1  ;;  %4832 = vmatprep.subr.bf16.mxu0 %v4831_v27 }
 0x266   :  { %v1636_v33 = vpop.f32.mrb[35].mxu1  ;;  %4834 = vmatpush3.bf16.msra.mxu0 %v4831_v27  ;;  %v5134_v27 = vld [vmem:[%s7236_s0 + $0x40] sm:$0xff] }
 0x267   :  { %v4835_v41 = vpack.c.bf16 %v4250_v28, %v1636_v33  ;;  %v5135_v28 = vld [vmem:[%s7236_s0 + $0x48] sm:$0xff] }
 0x268   :  { %v4899_v33 = vpack.c.bf16 %v5135_v28, %v5134_v27  ;;  %v3627_v28 = vld [vmem:[%s7237_s1 + $0xc0] sm:$0xff] }
 0x269   :  { %4836 = vmatprep.subr.bf16.mxu0 %v4835_v41  ;;  %v4305_v57 = vpop.f32.mrb[36].mxu1 }
 0x26a   :  { %4838 = vmatpush3.bf16.msra.mxu0 %v4835_v41  ;;  %v1830_v59 = vpop.f32.mrb[37].mxu1 }
 0x26b   :  { %v4851_v60 = vpack.c.bf16 %v4305_v57, %v1830_v59 }
 0x26d   :  { %v4308_v61 = vpop.f32.mrb[38].mxu1  ;;  %4852 = vmatprep.subr.bf16.mxu0 %v4851_v60  ;;  %4284 = vmatmul.mubr.f32.vlgmr.msra.gmra.mrb[16].mxu0 %v3561_v58  ;;  %v5136_v58 = vld [vmem:[%s7236_s0 + $0x50] sm:$0xff] }
 0x26e   :  { %v1840_v62 = vpop.f32.mrb[39].mxu1  ;;  %4854 = vmatpush3.bf16.msra.mxu0 %v4851_v60  ;;  %4286 = vmatprep.mubr.f32.mxu0 %v3562_v30  ;;  %v5137_v60 = vld [vmem:[%s7236_s0 + $0x58] sm:$0xff] }
 0x26f   :  { %v4855_v0 = vpack.c.bf16 %v4308_v61, %v1840_v62  ;;  %v4903_v30 = vpack.c.bf16 %v5137_v60, %v5136_v58 }
 0x271   :  { %v4311_v2 = vpop.f32.mrb[40].mxu1  ;;  %4856 = vmatprep.subr.bf16.mxu0 %v4855_v0  ;;  %4287 = vmatmul.mubr.f32.gmra.mrb[18].mxu0 %v3563_v63 }
 0x272   :  { %v1850_v3 = vpop.f32.mrb[41].mxu1  ;;  %4858 = vmatpush3.bf16.msra.mxu0 %v4855_v0  ;;  %4359 = vmatprep.mubr.f32.mxu0 %v3581_v1  ;;  %v5138_v0 = vld [vmem:[%s7236_s0 + $0x60] sm:$0xff]  ;;  %v5139_v1 = vld [vmem:[%s7236_s0 + $0x68] sm:$0xff] }
 0x273   :  { %v4859_v4 = vpack.c.bf16 %v4311_v2, %v1850_v3  ;;  %v4907_v2 = vpack.c.bf16 %v5139_v1, %v5138_v0 }
 0x275   :  { %v4314_v5 = vpop.f32.mrb[42].mxu1  ;;  %4860 = vmatprep.subr.bf16.mxu0 %v4859_v4 }
 0x276   :  { %v1860_v6 = vpop.f32.mrb[43].mxu1  ;;  %4862 = vmatpush3.bf16.msra.mxu0 %v4859_v4 }
 0x277   :  { %v4863_v7 = vpack.c.bf16 %v4314_v5, %v1860_v6  ;;  %v5140_v6 = vld [vmem:[%s7236_s0 + $0x70] sm:$0xff] }
 0x279   :  { %v4317_v8 = vpop.f32.mrb[44].mxu1  ;;  %4864 = vmatprep.subr.bf16.mxu0 %v4863_v7 }
 0x27a   :  { %v1870_v9 = vpop.f32.mrb[45].mxu1  ;;  %4866 = vmatpush3.bf16.msra.mxu0 %v4863_v7  ;;  %v5141_v7 = vld [vmem:[%s7236_s0 + $0x78] sm:$0xff] }
 0x27b   :  { %v4867_v10 = vpack.c.bf16 %v4317_v8, %v1870_v9  ;;  %v4911_v8 = vpack.c.bf16 %v5141_v7, %v5140_v6 }
 0x27d   :  { %v4320_v11 = vpop.f32.mrb[46].mxu1  ;;  %4868 = vmatprep.subr.bf16.mxu0 %v4867_v10 }
 0x27e   :  { %v1880_v12 = vpop.f32.mrb[47].mxu1  ;;  %4870 = vmatpush3.bf16.msra.mxu0 %v4867_v10 }
 0x27f   :  { %v4871_v29 = vpack.c.bf16 %v4320_v11, %v1880_v12 }
 0x281   :  { %v4323_v32 = vpop.f32.mrb[48].mxu1  ;;  %4872 = vmatprep.subr.bf16.mxu0 %v4871_v29 }
 0x282   :  { %v1890_v13 = vpop.f32.mrb[49].mxu1  ;;  %4874 = vmatpush3.bf16.msra.mxu0 %v4871_v29 }
 0x283   :  { %v4875_v39 = vpack.c.bf16 %v4323_v32, %v1890_v13  ;;  %v3586_v32 = vld [vmem:[%s7237_s1 + $0x88] sm:$0xff] }
 0x285   :  { %v4326_v14 = vpop.f32.mrb[50].mxu1  ;;  %4876 = vmatprep.subr.bf16.mxu0 %v4875_v39 }
 0x286   :  { %v1900_v34 = vpop.f32.mrb[51].mxu1  ;;  %4878 = vmatpush3.bf16.msra.mxu0 %v4875_v39  ;;  %v3587_v39 = vld [vmem:[%s7237_s1 + $0x90] sm:$0xff] }
 0x287   :  { %v4879_v35 = vpack.c.bf16 %v4326_v14, %v1900_v34 }
 0x289   :  { %4880 = vmatprep.subr.bf16.mxu0 %v4879_v35  ;;  %v4419_v16 = vpop.f32.mrb[52].mxu1 }
 0x28a   :  { %4882 = vmatpush3.bf16.msra.mxu0 %v4879_v35  ;;  %v2188_v17 = vpop.f32.mrb[53].mxu1  ;;  %v3588_v35 = vld [vmem:[%s7237_s1 + $0x98] sm:$0xff] }
 0x28b   :  { %v7092_v19 = vpack.c.bf16 %v4419_v16, %v2188_v17  ;;  %4884 = vmatprep.subr.bf16.mxu0 %v4883_v37 }
 0x28d   :  { %4360 = vmatmul.mubr.f32.vlgmr.msra.gmra.mrb[16].mxu0 %v3582_v18  ;;  %v4422_v47 = vpop.f32.mrb[54].mxu1 }
 0x28e   :  { %4886 = vmatpush3.bf16.msra.mxu0 %v4883_v37  ;;  %v2198_v48 = vpop.f32.mrb[55].mxu1  ;;  %4362 = vmatprep.mubr.f32.mxu0 %v3583_v45  ;;  %v3606_v37 = vld [vmem:[%s7237_s1 + $0xa0] sm:$0xff] }
 0x28f   :  { %v7109_v50 = vpack.c.bf16 %v4422_v47, %v2198_v48  ;;  %4888 = vmatprep.subr.bf16.mxu0 %v4887_v15 }
 0x291   :  { %v4425_v55 = vpop.f32.mrb[56].mxu1  ;;  %4363 = vmatmul.mubr.f32.gmra.mrb[18].mxu0 %v3584_v49 }
 0x292   :  { %4890 = vmatpush3.bf16.msra.mxu0 %v4887_v15  ;;  %v2208_v56 = vpop.f32.mrb[57].mxu1  ;;  %4397 = vmatprep.mubr.f32.mxu0 %v3585_v54 }
 0x293   :  { %v7120_v23 = vpack.c.bf16 %v4425_v55, %v2208_v56  ;;  %4892 = vmatprep.subr.bf16.mxu0 %v4891_v53 }
 0x295   :  { %v4428_v24 = vpop.f32.mrb[58].mxu1 }
 0x296   :  { %4894 = vmatpush3.bf16.msra.mxu0 %v4891_v53  ;;  %v2218_v25 = vpop.f32.mrb[59].mxu1 }
 0x297   :  { %v4939_v26 = vpack.c.bf16 %v4428_v24, %v2218_v25  ;;  %4896 = vmatprep.subr.bf16.mxu0 %v4895_v22 }
 0x299   :  { %v4431_v41 = vpop.f32.mrb[60].mxu1 }
 0x29a   :  { %4898 = vmatpush3.bf16.msra.mxu0 %v4895_v22  ;;  %v2228_v57 = vpop.f32.mrb[61].mxu1  ;;  %v3608_v22 = vld [vmem:[%s7237_s1 + $0xb0] sm:$0xff] }
 0x29b   :  { %v4943_v59 = vpack.c.bf16 %v4431_v41, %v2228_v57  ;;  %4900 = vmatprep.subr.bf16.mxu0 %v4899_v33 }
 0x29d   :  { %v4434_v61 = vpop.f32.mrb[62].mxu1 }
 0x29e   :  { %4902 = vmatpush3.bf16.msra.mxu0 %v4899_v33  ;;  %v2238_v62 = vpop.f32.mrb[63].mxu1 }
 0x29f   :  { %v4947_v63 = vpack.c.bf16 %v4434_v61, %v2238_v62  ;;  %4904 = vmatprep.subr.bf16.mxu0 %v4903_v30 }
 0x2a1   :  { %v4437_v3 = vpop.f32.mrb[64].mxu1 }
 0x2a2   :  { %4906 = vmatpush3.bf16.msra.mxu0 %v4903_v30  ;;  %v2248_v4 = vpop.f32.mrb[65].mxu1 }
 0x2a3   :  { %v4951_v5 = vpack.c.bf16 %v4437_v3, %v2248_v4  ;;  %4908 = vmatprep.subr.bf16.mxu0 %v4907_v2 }
 0x2a5   :  { %v4440_v9 = vpop.f32.mrb[66].mxu1 }
 0x2a6   :  { %4910 = vmatpush3.bf16.msra.mxu0 %v4907_v2  ;;  %v2258_v10 = vpop.f32.mrb[67].mxu1 }
 0x2a7   :  { %v4955_v11 = vpack.c.bf16 %v4440_v9, %v2258_v10  ;;  %4912 = vmatprep.subr.bf16.mxu0 %v4911_v8  ;;  %v3628_v10 = vld [vmem:[%s7237_s1 + $0xc8] sm:$0xff] }
 0x2a9   :  { %v4495_v12 = vpop.f32.mrb[68].mxu1 }
 0x2aa   :  { %4914 = vmatpush3.bf16.msra.mxu0 %v4911_v8  ;;  %v2460_v29 = vpop.f32.mrb[69].mxu1 }
 0x2ab   :  { %4928 = vmatprep.subr.bf16.mxu0 %v7092_v19  ;;  %v4971_v13 = vpack.c.bf16 %v4495_v12, %v2460_v29  ;;  %v3629_v12 = vld [vmem:[%s7237_s1 + $0xd0] sm:$0xff] }
 0x2ad   :  { %4398 = vmatmul.mubr.f32.vlgmr.msra.gmra.mrb[16].mxu0 %v3586_v32  ;;  %v4498_v14 = vpop.f32.mrb[70].mxu1 }
 0x2ae   :  { %4930 = vmatpush3.bf16.msra.mxu0 %v7092_v19  ;;  %v2470_v34 = vpop.f32.mrb[71].mxu1  ;;  %4400 = vmatprep.mubr.f32.mxu0 %v3587_v39 }
 0x2af   :  { %4932 = vmatprep.subr.bf16.mxu0 %v7109_v50  ;;  %v4975_v36 = vpack.c.bf16 %v4498_v14, %v2470_v34  ;;  %v3654_v14 = vld [vmem:[%s7237_s1 + $0xe0] sm:$0xff] }
 0x2b1   :  { %v4501_v16 = vpop.f32.mrb[72].mxu1  ;;  %4401 = vmatmul.mubr.f32.gmra.mrb[18].mxu0 %v3588_v35 }
 0x2b2   :  { %4934 = vmatpush3.bf16.msra.mxu0 %v7109_v50  ;;  %v2480_v17 = vpop.f32.mrb[73].mxu1  ;;  %4473 = vmatprep.mubr.f32.mxu0 %v3606_v37 }
 0x2b3   :  { %4936 = vmatprep.subr.bf16.mxu0 %v7120_v23  ;;  %v4979_v18 = vpack.c.bf16 %v4501_v16, %v2480_v17 }
 0x2b5   :  { %v4504_v19 = vpop.f32.mrb[74].mxu1 }
 0x2b6   :  { %4938 = vmatpush3.bf16.msra.mxu0 %v7120_v23  ;;  %v2490_v38 = vpop.f32.mrb[75].mxu1 }
 0x2b7   :  { %4940 = vmatprep.subr.bf16.mxu0 %v4939_v26  ;;  %v4983_v44 = vpack.c.bf16 %v4504_v19, %v2490_v38 }
 0x2b9   :  { %v4507_v15 = vpop.f32.mrb[76].mxu1 }
 0x2ba   :  { %4942 = vmatpush3.bf16.msra.mxu0 %v4939_v26  ;;  %v2500_v45 = vpop.f32.mrb[77].mxu1  ;;  %v3609_v26 = vld [vmem:[%s7237_s1 + $0xb8] sm:$0xff] }
 0x2bb   :  { %4944 = vmatprep.subr.bf16.mxu0 %v4943_v59  ;;  %v4987_v46 = vpack.c.bf16 %v4507_v15, %v2500_v45 }
 0x2bd   :  { %v4510_v47 = vpop.f32.mrb[78].mxu1 }
 0x2be   :  { %4946 = vmatpush3.bf16.msra.mxu0 %v4943_v59  ;;  %v2510_v48 = vpop.f32.mrb[79].mxu1 }
 0x2bf   :  { %4948 = vmatprep.subr.bf16.mxu0 %v4947_v63  ;;  %v4991_v49 = vpack.c.bf16 %v4510_v47, %v2510_v48 }
 0x2c1   :  { %v4513_v50 = vpop.f32.mrb[80].mxu1 }
 0x2c2   :  { %4950 = vmatpush3.bf16.msra.mxu0 %v4947_v63  ;;  %v2520_v51 = vpop.f32.mrb[81].mxu1 }
 0x2c3   :  { %4952 = vmatprep.subr.bf16.mxu0 %v4951_v5  ;;  %v4995_v52 = vpack.c.bf16 %v4513_v50, %v2520_v51 }
 0x2c5   :  { %v4516_v53 = vpop.f32.mrb[82].mxu1 }
 0x2c6   :  { %4954 = vmatpush3.bf16.msra.mxu0 %v4951_v5  ;;  %v2530_v54 = vpop.f32.mrb[83].mxu1 }
 0x2c7   :  { %4956 = vmatprep.subr.bf16.mxu0 %v4955_v11  ;;  %v4999_v55 = vpack.c.bf16 %v4516_v53, %v2530_v54  ;;  %v3676_v53 = vld [vmem:[%s7237_s1 + $0x108] sm:$0xff]  ;;  %v3656_v54 = vld [vmem:[%s7237_s1 + $0xf0] sm:$0xff] }
 0x2c9   :  { %v4571_v56 = vpop.f32.mrb[84].mxu1 }
 0x2ca   :  { %4958 = vmatpush3.bf16.msra.mxu0 %v4955_v11  ;;  %v2724_v23 = vpop.f32.mrb[85].mxu1 }
 0x2cb   :  { %4972 = vmatprep.subr.bf16.mxu0 %v4971_v13  ;;  %v5015_v21 = vpack.c.bf16 %v4571_v56, %v2724_v23  ;;  %v3657_v56 = vld [vmem:[%s7237_s1 + $0xf8] sm:$0xff] }
 0x2cc   :  { %v3678_v23 = vld [vmem:[%s7237_s1 + $0x118] sm:$0xff] }
 0x2cd   :  { %4474 = vmatmul.mubr.f32.vlgmr.msra.gmra.mrb[16].mxu0 %v3607_v20  ;;  %v4574_v24 = vpop.f32.mrb[86].mxu1 }
 0x2ce   :  { %4974 = vmatpush3.bf16.msra.mxu0 %v4971_v13  ;;  %v2734_v25 = vpop.f32.mrb[87].mxu1  ;;  %4476 = vmatprep.mubr.f32.mxu0 %v3608_v22  ;;  %v3630_v13 = vld [vmem:[%s7237_s1 + $0xd8] sm:$0xff] }
 0x2cf   :  { %4976 = vmatprep.subr.bf16.mxu0 %v4975_v36  ;;  %v5019_v27 = vpack.c.bf16 %v4574_v24, %v2734_v25 }
 0x2d1   :  { %v4577_v33 = vpop.f32.mrb[88].mxu1  ;;  %4477 = vmatmul.mubr.f32.gmra.mrb[18].mxu0 %v3609_v26 }
 0x2d2   :  { %4978 = vmatpush3.bf16.msra.mxu0 %v4975_v36  ;;  %v2744_v41 = vpop.f32.mrb[89].mxu1  ;;  %4549 = vmatprep.mubr.f32.mxu0 %v3627_v28 }
 0x2d3   :  { %4980 = vmatprep.subr.bf16.mxu0 %v4979_v18  ;;  %v5023_v57 = vpack.c.bf16 %v4577_v33, %v2744_v41 }
 0x2d5   :  { %v4580_v59 = vpop.f32.mrb[90].mxu1 }
 0x2d6   :  { %4982 = vmatpush3.bf16.msra.mxu0 %v4979_v18  ;;  %v2754_v58 = vpop.f32.mrb[91].mxu1 }
 0x2d7   :  { %4984 = vmatprep.subr.bf16.mxu0 %v4983_v44  ;;  %v5027_v60 = vpack.c.bf16 %v4580_v59, %v2754_v58 }
 0x2d9   :  { %v4583_v30 = vpop.f32.mrb[92].mxu1 }
 0x2da   :  { %4986 = vmatpush3.bf16.msra.mxu0 %v4983_v44  ;;  %v2764_v61 = vpop.f32.mrb[93].mxu1 }
 0x2db   :  { %4988 = vmatprep.subr.bf16.mxu0 %v4987_v46  ;;  %v5031_v62 = vpack.c.bf16 %v4583_v30, %v2764_v61 }
 0x2dd   :  { %v4586_v63 = vpop.f32.mrb[94].mxu1 }
 0x2de   :  { %4990 = vmatpush3.bf16.msra.mxu0 %v4987_v46  ;;  %v2774_v0 = vpop.f32.mrb[95].mxu1 }
 0x2df   :  { %4992 = vmatprep.subr.bf16.mxu0 %v4991_v49  ;;  %v5035_v1 = vpack.c.bf16 %v4586_v63, %v2774_v0 }
 0x2e1   :  { %v4589_v2 = vpop.f32.mrb[96].mxu1 }
 0x2e2   :  { %4994 = vmatpush3.bf16.msra.mxu0 %v4991_v49  ;;  %v2784_v3 = vpop.f32.mrb[97].mxu1 }
 0x2e3   :  { %4996 = vmatprep.subr.bf16.mxu0 %v4995_v52  ;;  %v5039_v4 = vpack.c.bf16 %v4589_v2, %v2784_v3 }
 0x2e5   :  { %v4592_v5 = vpop.f32.mrb[98].mxu1 }
 0x2e6   :  { %4998 = vmatpush3.bf16.msra.mxu0 %v4995_v52  ;;  %v2794_v6 = vpop.f32.mrb[99].mxu1  ;;  %v3655_v52 = vld [vmem:[%s7237_s1 + $0xe8] sm:$0xff] }
 0x2e7   :  { %5000 = vmatprep.subr.bf16.mxu0 %v4999_v55  ;;  %v7182_v7 = vpack.c.bf16 %v4592_v5, %v2794_v6 }
 0x2e9   :  { %v4647_v8 = vpop.f32.mrb[100].mxu1 }
 0x2ea   :  { %5002 = vmatpush3.bf16.msra.mxu0 %v4999_v55  ;;  %v2995_v9 = vpop.f32.mrb[101].mxu1  ;;  %v3677_v55 = vld [vmem:[%s7237_s1 + $0x110] sm:$0xff] }
 0x2eb   :  { %v5059_v11 = vpack.c.bf16 %v4647_v8, %v2995_v9  ;;  %5016 = vmatprep.subr.bf16.mxu0 %v5015_v21 }
 0x2ed   :  { %v4650_v29 = vpop.f32.mrb[102].mxu1  ;;  %5060 = vmatprep.subr.bf16.mxu1 %v5059_v11  ;;  %4550 = vmatmul.mubr.f32.vlgmr.msra.gmra.mrb[16].mxu0 %v3628_v10 }
 0x2ee   :  { %5018 = vmatpush3.bf16.msra.mxu0 %v5015_v21  ;;  %v3005_v32 = vpop.f32.mrb[103].mxu1  ;;  %5062 = vmatpush3.bf16.msra.mxu1 %v5059_v11 }
 0x2ef   :  { %v5063_v39 = vpack.c.bf16 %v4650_v29, %v3005_v32  ;;  %5020 = vmatprep.subr.bf16.mxu0 %v5019_v27  ;;  %4552 = vmatprep.mubr.f32.mxu0 %v3629_v12 }
 0x2f1   :  { %v4653_v34 = vpop.f32.mrb[104].mxu1  ;;  %5064 = vmatprep.subr.bf16.mxu1 %v5063_v39  ;;  %4553 = vmatmul.mubr.f32.gmra.mrb[18].mxu0 %v3630_v13 }
 0x2f2   :  { %5022 = vmatpush3.bf16.msra.mxu0 %v5019_v27  ;;  %v3015_v35 = vpop.f32.mrb[105].mxu1  ;;  %5066 = vmatpush3.bf16.msra.mxu1 %v5063_v39 }
 0x2f3   :  { %v5067_v36 = vpack.c.bf16 %v4653_v34, %v3015_v35  ;;  %5024 = vmatprep.subr.bf16.mxu0 %v5023_v57  ;;  %4625 = vmatprep.mubr.f32.mxu0 %v3654_v14 }
 0x2f5   :  { %v4656_v37 = vpop.f32.mrb[106].mxu1  ;;  %5068 = vmatprep.subr.bf16.mxu1 %v5067_v36 }
 0x2f6   :  { %5026 = vmatpush3.bf16.msra.mxu0 %v5023_v57  ;;  %v3025_v16 = vpop.f32.mrb[107].mxu1  ;;  %5070 = vmatpush3.bf16.msra.mxu1 %v5067_v36 }
 0x2f7   :  { %v5071_v17 = vpack.c.bf16 %v4656_v37, %v3025_v16  ;;  %5028 = vmatprep.subr.bf16.mxu0 %v5027_v60 }
 0x2f9   :  { %v4659_v18 = vpop.f32.mrb[108].mxu1  ;;  %5072 = vmatprep.subr.bf16.mxu1 %v5071_v17 }
 0x2fa   :  { %5030 = vmatpush3.bf16.msra.mxu0 %v5027_v60  ;;  %v3035_v19 = vpop.f32.mrb[109].mxu1  ;;  %5074 = vmatpush3.bf16.msra.mxu1 %v5071_v17 }
 0x2fb   :  { %v5075_v38 = vpack.c.bf16 %v4659_v18, %v3035_v19  ;;  %5032 = vmatprep.subr.bf16.mxu0 %v5031_v62 }
 0x2fd   :  { %v4662_v44 = vpop.f32.mrb[110].mxu1  ;;  %5076 = vmatprep.subr.bf16.mxu1 %v5075_v38 }
 0x2fe   :  { %5034 = vmatpush3.bf16.msra.mxu0 %v5031_v62  ;;  %v3045_v15 = vpop.f32.mrb[111].mxu1  ;;  %5078 = vmatpush3.bf16.msra.mxu1 %v5075_v38 }
 0x2ff   :  { %v5079_v45 = vpack.c.bf16 %v4662_v44, %v3045_v15  ;;  %5036 = vmatprep.subr.bf16.mxu0 %v5035_v1 }
 0x301   :  { %v4665_v46 = vpop.f32.mrb[112].mxu1  ;;  %5080 = vmatprep.subr.bf16.mxu1 %v5079_v45 }
 0x302   :  { %5038 = vmatpush3.bf16.msra.mxu0 %v5035_v1  ;;  %v3055_v47 = vpop.f32.mrb[113].mxu1  ;;  %5082 = vmatpush3.bf16.msra.mxu1 %v5079_v45 }
 0x303   :  { %v5083_v48 = vpack.c.bf16 %v4665_v46, %v3055_v47  ;;  %5040 = vmatprep.subr.bf16.mxu0 %v5039_v4 }
 0x305   :  { %v4668_v49 = vpop.f32.mrb[114].mxu1  ;;  %5084 = vmatprep.subr.bf16.mxu1 %v5083_v48 }
 0x306   :  { %5042 = vmatpush3.bf16.msra.mxu0 %v5039_v4  ;;  %v3065_v50 = vpop.f32.mrb[115].mxu1  ;;  %5086 = vmatpush3.bf16.msra.mxu1 %v5083_v48 }
 0x307   :  { %v5087_v51 = vpack.c.bf16 %v4668_v49, %v3065_v50  ;;  %5044 = vmatprep.subr.bf16.mxu0 %v7182_v7 }
 0x309   :  { %5088 = vmatprep.subr.bf16.mxu1 %v5087_v51 }
 0x30a   :  { %5046 = vmatpush3.bf16.msra.mxu0 %v7182_v7  ;;  %5090 = vmatpush3.bf16.msra.mxu1 %v5087_v51 }
 0x30d   :  { %4626 = vmatmul.mubr.f32.vlgmr.msra.gmra.mrb[16].mxu0 %v3655_v52  ;;  %4702 = vmatmul.mubr.f32.vlgmr.msra.gmra.mrb[116].mxu1 %v3676_v53 }
 0x30e   :  { %4628 = vmatprep.mubr.f32.mxu0 %v3656_v54  ;;  %4704 = vmatprep.mubr.f32.mxu1 %v3677_v55 }
 0x311   :  { %4629 = vmatmul.mubr.f32.gmra.mrb[18].mxu0 %v3657_v56  ;;  %4705 = vmatmul.mubr.f32.gmra.mrb[118].mxu1 %v3678_v23 }
 0x3e0   :  { %v4627_v20 = vpop.f32.mrb[16].mxu0  ;;  %v4703_v21 = vpop.f32.mrb[116].mxu1 }
 0x3e1   :  { %v5091_v22 = vadd.f32 %v4627_v20, %v7065_v31  ;;  %v2874_v24 = vpop.f32.mrb[17].mxu0  ;;  %v3145_v25 = vpop.f32.mrb[117].mxu1 }
 0x3e2   :  { %v5093_v26 = vadd.f32 %v2874_v24, %v7067_v40 }
 0x3e3   :  { %v5092_v27 = vadd.f32 %v5091_v22, %v4703_v21 }
 0x3e4   :  { %v5094_v28 = vadd.f32 %v5093_v26, %v3145_v25  ;;  %v4630_v33 = vpop.f32.mrb[18].mxu0  ;;  %v4706_v41 = vpop.f32.mrb[118].mxu1 }
 0x3e5   :  { %3169 = vst.msk [vmem:[#allocation2 + $0x8] sm:$0xff] %vm7398_vm6, %v5092_v27  ;;  %v5095_v57 = vadd.f32 %v4630_v33, %v7069_v42  ;;  %v2884_v59 = vpop.f32.mrb[19].mxu0  ;;  %v3155_v58 = vpop.f32.mrb[119].mxu1 }
 0x3e6   :  { %3168 = vst.msk [vmem:[#allocation2] sm:$0xff] %vm7399_vm2, %v5094_v28  ;;  %v5097_v60 = vadd.f32 %v2884_v59, %v7071_v43 }
 0x3e7   :  { %v5096_v30 = vadd.f32 %v5095_v57, %v4706_v41 }
 0x3e8   :  { %v5098_v31 = vadd.f32 %v5097_v60, %v3155_v58 }
 0x3e9   :  { %3171 = vst.msk [vmem:[#allocation2 + $0x18] sm:$0xff] %vm7400_vm15, %v5096_v30 }
 0x3ea   :  { %3170 = vst.msk [vmem:[#allocation2 + $0x10] sm:$0xff] %vm7401_vm1, %v5098_v31 }
 0x3ec   :  { %v3208_v40 = vld [vmem:[#allocation2 + $0x8] sm:$0xff] }
 0x3ed   :  { %3680 = vst [vmem:[%s7250_s14 + $0x4c8] sm:$0xff] %v3208_v40  ;;  %v3206_v61 = vld [vmem:[#allocation2] sm:$0xff] }
 0x3ee   :  { %3679 = vst [vmem:[%s7250_s14 + $0x4c0] sm:$0xff] %v3206_v61 }
 0x3f0   :  { %v3212_v42 = vld [vmem:[#allocation2 + $0x18] sm:$0xff] }
 0x3f1   :  { %3682 = vst [vmem:[%s7250_s14 + $0x4d8] sm:$0xff] %v3212_v42  ;;  %v3210_v43 = vld [vmem:[#allocation2 + $0x10] sm:$0xff] }
 0x3f2   :  { %3681 = vst [vmem:[%s7250_s14 + $0x4d0] sm:$0xff] %v3210_v43 }
 0x3f3   :  { %3221 = vsyncadd [#allocation3 + $0xc], 512 }
 0x3f4   :  { %5142 = dma.done.wait [#allocation3], 14336 }
 0x3f5   :  { %5143 = vsyncadd [#allocation3], 4294952960 }
 0x3f6   :  { %5144 = dma.done.wait [#allocation3 + $0x1], 512 }
 0x3f7   :  { %5145 = vsyncadd [#allocation3 + $0x1], 4294966784 }
 0x3f8   :  { %5146 = dma.done.wait [#allocation3 + $0x2], 512 }
 0x3f9   :  { %5147 = vsyncadd [#allocation3 + $0x2], 4294966784 }
 0x3fa   :  { %5148 = dma.done.wait [#allocation3 + $0x3], 512 }
 0x3fb   :  { %5149 = vsyncadd [#allocation3 + $0x3], 4294966784 }
 0x3fc   :  { %5150 = dma.done.wait [#allocation3 + $0x4], 512 }
 0x3fd   :  { %5151 = vsyncadd [#allocation3 + $0x4], 4294966784 }
 0x3fe   :  { %5152 = dma.done.wait [#allocation3 + $0x5], 512 }
 0x3ff   :  { %5153 = vsyncadd [#allocation3 + $0x5], 4294966784 }
 0x400   :  { %5154 = dma.done.wait [#allocation3 + $0x6], 512 }
 0x401   :  { %5155 = vsyncadd [#allocation3 + $0x6], 4294966784 }
 0x402   :  { %5156 = dma.done.wait [#allocation3 + $0x7], 512 }
 0x403   :  { %5157 = vsyncadd [#allocation3 + $0x7], 4294966784 }
 0x404   :  { %5158 = dma.done.wait [#allocation3 + $0x8], 512 }
 0x405   :  { %5159 = vsyncadd [#allocation3 + $0x8], 4294966784 }
 0x406   :  { %5160 = dma.done.wait [#allocation3 + $0x9], 512 }
 0x407   :  { %5161 = vsyncadd [#allocation3 + $0x9], 4294966784 }
 0x408   :  { %5162 = dma.done.wait [#allocation3 + $0xa], 512 }
 0x409   :  { %5163 = vsyncadd [#allocation3 + $0xa], 4294966784 }
 0x40a   :  { %5164 = dma.done.wait [#allocation3 + $0xb], 512 }
 0x40b   :  { %5165 = vsyncadd [#allocation3 + $0xb], 4294966784 }
 0x40c   :  { %5166 = dma.done.wait [#allocation3 + $0xc], 512 }
 0x40d   :  { %5167 = vsyncadd [#allocation3 + $0xc], 4294966784 }
 0x40e   :  { %3250 = vsyncmov [#allocation3] }
 0x411   :  { %s3251_s14 = vpop.sfrf %3250 }
 0x412   :  { %p3684_p0 = scmp.ne.s32.totalorder %s3251_s14, 0 }
 0x414   :  { %3255 = shalt.err (%p3684_p0)  }
 0x415   :  { %3257 = vsyncmov [#allocation3 + $0x1] }
 0x418   :  { %s3258_s11 = vpop.sfrf %3257 }
 0x419   :  { %p3685_p1 = scmp.ne.s32.totalorder %s3258_s11, 0 }
 0x41b   :  { %3262 = shalt.err (%p3685_p1)  }
 0x41c   :  { %3264 = vsyncmov [#allocation3 + $0x2] }
 0x41f   :  { %s3265_s13 = vpop.sfrf %3264 }
 0x420   :  { %p3686_p2 = scmp.ne.s32.totalorder %s3265_s13, 0 }
 0x422   :  { %3269 = shalt.err (%p3686_p2)  }
 0x423   :  { %3271 = vsyncmov [#allocation3 + $0x3] }
 0x426   :  { %s3272_s4 = vpop.sfrf %3271 }
 0x427   :  { %p3687_p3 = scmp.ne.s32.totalorder %s3272_s4, 0 }
 0x429   :  { %3276 = shalt.err (%p3687_p3)  }
 0x42a   :  { %3278 = vsyncmov [#allocation3 + $0x4] }
 0x42d   :  { %s3279_s8 = vpop.sfrf %3278 }
 0x42e   :  { %p3688_p4 = scmp.ne.s32.totalorder %s3279_s8, 0 }
 0x430   :  { %3283 = shalt.err (%p3688_p4)  }
 0x431   :  { %3285 = vsyncmov [#allocation3 + $0x5] }
 0x434   :  { %s3286_s16 = vpop.sfrf %3285 }
 0x435   :  { %p3689_p5 = scmp.ne.s32.totalorder %s3286_s16, 0 }
 0x437   :  { %3290 = shalt.err (%p3689_p5)  }
 0x438   :  { %3292 = vsyncmov [#allocation3 + $0x6] }
 0x43b   :  { %s3293_s17 = vpop.sfrf %3292 }
 0x43c   :  { %p3690_p6 = scmp.ne.s32.totalorder %s3293_s17, 0 }
 0x43e   :  { %3297 = shalt.err (%p3690_p6)  }
 0x43f   :  { %3299 = vsyncmov [#allocation3 + $0x7] }
 0x442   :  { %s3300_s3 = vpop.sfrf %3299 }
 0x443   :  { %p3691_p7 = scmp.ne.s32.totalorder %s3300_s3, 0 }
 0x445   :  { %3304 = shalt.err (%p3691_p7)  }
 0x446   :  { %3306 = vsyncmov [#allocation3 + $0x8] }
 0x449   :  { %s3307_s18 = vpop.sfrf %3306 }
 0x44a   :  { %p3692_p8 = scmp.ne.s32.totalorder %s3307_s18, 0 }
 0x44c   :  { %3311 = shalt.err (%p3692_p8)  }
 0x44d   :  { %3313 = vsyncmov [#allocation3 + $0x9] }
 0x450   :  { %s3314_s19 = vpop.sfrf %3313 }
 0x451   :  { %p3693_p9 = scmp.ne.s32.totalorder %s3314_s19, 0 }
 0x453   :  { %3318 = shalt.err (%p3693_p9)  }
 0x454   :  { %3320 = vsyncmov [#allocation3 + $0xa] }
 0x457   :  { %s3321_s20 = vpop.sfrf %3320 }
 0x458   :  { %p3694_p10 = scmp.ne.s32.totalorder %s3321_s20, 0 }
 0x45a   :  { %3325 = shalt.err (%p3694_p10)  }
 0x45b   :  { %3327 = vsyncmov [#allocation3 + $0xb] }
 0x45e   :  { %s3328_s7 = vpop.sfrf %3327 }
 0x45f   :  { %p3695_p11 = scmp.ne.s32.totalorder %s3328_s7, 0 }
 0x461   :  { %3332 = shalt.err (%p3695_p11)  }
 0x462   :  { %3334 = vsyncmov [#allocation3 + $0xc] }
 0x465   :  { %s3335_s10 = vpop.sfrf %3334 }
 0x466   :  { %p3696_p12 = scmp.ne.s32.totalorder %s3335_s10, 0 }
 0x468   :  { %3339 = shalt.err (%p3696_p12)  }

</bundles_post_ra>
